<compile_context>
chip_gen: v7x
topology: tpu7x:2x2x1
jax: 0.10.0
libtpu: 0.0.40
codegen_flags: <defaults>
</compile_context>

<pallas_src>
import functools

import numpy as np
import jax
import jax.numpy as jnp
from jax.experimental import pallas as pl
from jax.experimental.pallas import tpu as pltpu


# --------------------- cached resampling constants (glue) --------------------

@functools.lru_cache(maxsize=None)
def _interp_matrix_pytorch_bilinear(out_size, in_size):
    """F.interpolate(mode='bilinear', align_corners=False) on one axis."""
    scale = in_size / out_size
    dst = np.arange(out_size, dtype=np.float64)
    src = np.maximum((dst + 0.5) * scale - 0.5, 0.0)
    i0 = np.minimum(np.floor(src).astype(np.int64), in_size - 1)
    i1 = np.minimum(i0 + 1, in_size - 1)
    frac = src - i0
    m = np.zeros((out_size, in_size), dtype=np.float32)
    m[np.arange(out_size), i0] += (1.0 - frac).astype(np.float32)
    m[np.arange(out_size), i1] += frac.astype(np.float32)
    return m


@functools.lru_cache(maxsize=None)
def _gridsample_tent_matrix(out_size, in_size):
    """F.grid_sample (bilinear, zeros padding, align_corners=False) weights
    along one axis, for coords c = idx/(out_size-1)*2 - 1 as built in Slice.
    Note: out_size == 1 deliberately avoids the torch division-by-zero."""
    dst = np.arange(out_size, dtype=np.float64)
    if out_size > 1:
        c = dst / (out_size - 1) * 2.0 - 1.0
    else:
        c = np.zeros(1)
    src = ((c + 1.0) * in_size - 1.0) / 2.0
    taps = np.arange(in_size, dtype=np.float64)
    w = np.maximum(0.0, 1.0 - np.abs(src[:, None] - taps[None, :]))
    return w.astype(np.float32)


@functools.lru_cache(maxsize=None)
def _lowres_sub_taps(low_size, full_size, step=8):
    """Bilinear taps of F.interpolate(low_size) sampled at stride-8 positions
    (the only low-res pixels the three stride-2 1x1 convs ever read)."""
    scale = full_size / low_size
    dst = np.arange(0, low_size, step, dtype=np.float64)
    src = np.maximum((dst + 0.5) * scale - 0.5, 0.0)
    i0 = np.minimum(np.floor(src).astype(np.int64), full_size - 1)
    i1 = np.minimum(i0 + 1, full_size - 1)
    frac = (src - i0).astype(np.float32)
    return (i0.astype(np.int32), i1.astype(np.int32),
            (1.0 - frac).astype(np.float32), frac.astype(np.float32))


# ------------------------- tile sizing / VMEM budget --------------------------

def _round_up(x, m):
    return ((x + m - 1) // m) * m


def _vmem_limit_bytes():
    """Generation-aware scoped-VMEM limit (~3/4 of physical; 48MiB on v7x,
    96MiB on v5e/v6e). Falls back to the v7x-safe value if the query fails."""
    cap = 64 * 1024 * 1024
    try:
        info = pltpu.get_tpu_info()
        cap = int(getattr(info, "vmem_capacity_bytes", cap))
    except Exception:
        pass
    return max(32 * 1024 * 1024, min((cap * 3) // 4, 112 * 1024 * 1024))


def _tile_vmem_bytes(trows, Wp, K, nc, n_in, n_out, gw):
    """Conservative per-tile VMEM estimate (f32, lane-padded)."""
    f = 4
    row = trows * Wp * f
    img = 2 * n_in * row                       # double-buffered image block
    out = 2 * n_out * row                      # double-buffered output block
    grid = 2 * K * trows * max(gw, 128) * f    # lane-padded grid block, x2
    bt = 2 * max(gw, 8) * Wp * f               # column-tent weights
    gsp = nc * row                             # one luma bin's tent slab
    work = (n_out + 8) * row                   # accumulators + guide/wz temps
    return img + out + grid + bt + gsp + work


def _pick_trows(H, Wp, K, nc, n_in, n_out, gw, budget):
    """Largest row tile (multiple of 8) that fits the budget; no divisibility
    requirement on H — the wrapper zero-pads to a tile multiple."""
    cap = _round_up(max(H, 1), 8)
    for t in sorted({256, 128, 64, 32, 16, 8, cap}, reverse=True):
        if t > cap:
            continue
        if _tile_vmem_bytes(t, Wp, K, nc, n_in, n_out, gw) <= budget:
            return t
    return 8


# ------------------- fused GuideNN + Slice + ApplyCoeffs kernel ---------------

def _guide_slice_apply_kernel(gp_ref, grid_ref, bt_ref, img_ref, o_ref, *,
                              luma_bins, n_in, n_out, guide_pts, trows):
    nc = n_out * (n_in + 1)
    width = img_ref.shape[2]

    imgs = [img_ref[c] for c in range(n_in)]
    bt = bt_ref[...]                       # [gw, Wp], resident

    # GuideNN: 3 -> guide_pts (ReLU) -> 1 (tanh); VPU/EUP from SMEM scalars.
    b1_off = n_in * guide_pts
    w2_off = b1_off + guide_pts
    b2_off = w2_off + guide_pts
    g_acc = jnp.zeros((trows, width), jnp.float32)
    for j in range(guide_pts):
        h = imgs[0] * gp_ref[j]
        for c in range(1, n_in):
            h = h + imgs[c] * gp_ref[c * guide_pts + j]
        h = jnp.maximum(h + gp_ref[b1_off + j], 0.0)
        g_acc = g_acc + h * gp_ref[w2_off + j]
    guide = jnp.tanh(g_acc + gp_ref[b2_off])

    # Luma coordinate of grid_sample (zeros padding, align_corners=False).
    iz = (guide + 1.0) * (0.5 * luma_bins) - 0.5

    # Per-luma-bin spatial tent (one MXU matmul per bin) folded straight into
    # the n_out accumulators: peak temporary is a single [nc*trows, Wp] slab.
    accs = [jnp.zeros((trows, width), jnp.float32) for _ in range(n_out)]
    for d in range(luma_bins):
        gsp = jnp.dot(grid_ref[d * nc * trows:(d + 1) * nc * trows, :], bt,
                      preferred_element_type=jnp.float32)      # [nc*trows, Wp]
        wz = jnp.maximum(1.0 - jnp.abs(iz - float(d)), 0.0)
        for o in range(n_out):
            base = o * (n_in + 1) * trows
            aff = gsp[base + n_in * trows:base + (n_in + 1) * trows, :]
            for c in range(n_in):
                aff = aff + imgs[c] * gsp[base + c * trows:base + (c + 1) * trows, :]
            accs[o] = accs[o] + wz * aff

    for o in range(n_out):
        o_ref[o] = accs[o]                 # lane-dense store (last dim = Wp)


def guide_slice_apply(gparams, grid_blocked, bt, image, *, luma_bins, n_in,
                      n_out, guide_pts, trows, vmem_limit_bytes):
    N, _, Hp, Wp = image.shape
    R = grid_blocked.shape[1]
    KT = grid_blocked.shape[2]
    gw = grid_blocked.shape[3]
    kern = functools.partial(_guide_slice_apply_kernel, luma_bins=luma_bins,
                             n_in=n_in, n_out=n_out, guide_pts=guide_pts,
                             trows=trows)
    return pl.pallas_call(
        kern,
        out_shape=jax.ShapeDtypeStruct((N, n_out, Hp, Wp), jnp.float32),
        grid_spec=pltpu.PrefetchScalarGridSpec(
            num_scalar_prefetch=0,
            grid=(N, R),
            in_specs=[
                # GuideNN weights/biases: scalars in SMEM.
                pl.BlockSpec(memory_space=pltpu.MemorySpace.SMEM),
                # Row-contracted bilateral grid, rows pre-blocked (k*trows+r);
                # bin-major channel order so each bin is a contiguous slab.
                pl.BlockSpec((None, None, KT, gw), lambda n, r: (n, r, 0, 0)),
                # Column tent weights: constant block, stays VMEM-resident.
                pl.BlockSpec((gw, Wp), lambda n, r: (0, 0)),
                # Full-res image tile, channels-first (no wrapper transpose).
                pl.BlockSpec((None, n_in, trows, Wp), lambda n, r: (n, 0, r, 0)),
            ],
            out_specs=pl.BlockSpec((None, n_out, trows, Wp),
                                   lambda n, r: (n, 0, r, 0)),
        ),
        compiler_params=pltpu.CompilerParams(
            dimension_semantics=("parallel", "parallel"),   # megacore / v7x TCs
            vmem_limit_bytes=int(vmem_limit_bytes),
        ),
    )(gparams, grid_blocked, bt, image)


# ------------------------------- parameters ----------------------------------

def init_params(key, luma_bins, n_in=3, n_out=3, guide_hidden=16):
    def dense(k, cin, cout, wscale=0.1):
        kw, kb = jax.random.split(k)
        w = (wscale * jax.random.normal(kw, (cin, cout))).astype(jnp.float32)
        b = (0.01 * jax.random.normal(kb, (1, cout))).astype(jnp.float32)
        return w, b

    ks = jax.random.split(key, 6)
    nc = n_out * (n_in + 1)
    return {
        "splat_1": dense(ks[0], n_in, 16),
        "splat_2": dense(ks[1], 16, 32),
        "splat_3": dense(ks[2], 32, 32),
        "prediction": dense(ks[3], 32, luma_bins * nc),
        "guide_1": dense(ks[4], n_in, guide_hidden),
        "guide_2": dense(ks[5], guide_hidden, 1),
    }


# ----------------------------- full forward pass -----------------------------

def bilateral_net_forward(image_nchw, val, params, lowres, luma_bins,
                          n_in=3, n_out=3):
    # TODO(synk): iteratively_upsample=True branch (F.upsample loop) not
    #             implemented; spatial_bins / channel_multiplier / guide_pts
    #             head are unused by the module's default forward.
    N, _, H, W = image_nchw.shape
    lh, lw = lowres
    nc = n_out * (n_in + 1)
    K = luma_bins * nc

    # --- low-res path: gather only the stride-8 bilinear taps the stride-2
    # 1x1 convs read; the four tiny pointwise layers run as plain JAX matmuls.
    i0h, i1h, wh0, wh1 = (jnp.asarray(t) for t in _lowres_sub_taps(lh, H))
    i0w, i1w, ww0, ww1 = (jnp.asarray(t) for t in _lowres_sub_taps(lw, W))
    rows = (jnp.take(image_nchw, i0h, axis=2) * wh0[None, None, :, None]
            + jnp.take(image_nchw, i1h, axis=2) * wh1[None, None, :, None])
    low_sub = (jnp.take(rows, i0w, axis=3) * ww0
               + jnp.take(rows, i1w, axis=3) * ww1)          # [N, n_in, gh, gw]
    gh, gw = int(low_sub.shape[2]), int(low_sub.shape[3])

    x = jnp.transpose(low_sub, (0, 2, 3, 1)).reshape(-1, n_in)
    h = x @ params["splat_1"][0] + params["splat_1"][1] + val
    h = jnp.maximum(h @ params["splat_2"][0] + params["splat_2"][1], 0.0)
    h = jnp.maximum(h @ params["splat_3"][0] + params["splat_3"][1], 0.0)
    pred = h @ params["prediction"][0] + params["prediction"][1]
    # torch.stack(torch.split(...)): grid channel index k = d*nc + c (bin-major)
    grid4 = pred.reshape(N, gh, gw, K)

    # --- tile sizing (generation-aware VMEM budget) + zero padding.
    Wp = _round_up(W, 128)                 # lane-dense stores / VPU tiles
    vmem_limit = _vmem_limit_bytes()
    trows = _pick_trows(H, Wp, K, nc, n_in, n_out, gw,
                        vmem_limit - 6 * 1024 * 1024)
    Hp = _round_up(H, trows)
    R = Hp // trows

    image_p = image_nchw
    if Hp != H or Wp != W:                 # zeros, so padded rows/cols are benign
        image_p = jnp.pad(image_nchw, ((0, 0), (0, 0), (0, Hp - H), (0, Wp - W)))

    # --- separable spatial tent: row contraction here (tiny), column tent in
    # the fused kernel.  No dense [HW, gh*gw] matrix is ever built.
    A = _gridsample_tent_matrix(H, gh)                         # [H, gh]
    if Hp != H:
        A = np.pad(A, ((0, Hp - H), (0, 0)))
    A = jnp.asarray(A)
    Btp = _gridsample_tent_matrix(W, gw).T                     # [gw, W]
    if Wp != W:
        Btp = np.pad(Btp, ((0, 0), (0, Wp - W)))
    Btp = jnp.asarray(Btp)

    gridR = jnp.einsum("hy,nyxk->nkhx", A, grid4)              # [N, K, Hp, gw]
    grid_blocked = jnp.transpose(
        gridR.reshape(N, K, R, trows, gw), (0, 2, 1, 3, 4)
    ).reshape(N, R, K * trows, gw)

    g_w1, g_b1 = params["guide_1"]
    g_w2, g_b2 = params["guide_2"]
    gparams = jnp.concatenate([g_w1.reshape(-1), g_b1.reshape(-1),
                               g_w2.reshape(-1), g_b2.reshape(-1)])

    out = guide_slice_apply(gparams, grid_blocked, Btp, image_p,
                            luma_bins=luma_bins, n_in=n_in, n_out=n_out,
                            guide_pts=int(g_w1.shape[1]), trows=trows,
                            vmem_limit_bytes=vmem_limit)
    if Hp != H or Wp != W:
        out = out[:, :, :H, :W]
    return out


# ------------------------ pure-JAX reference (check) -------------------------

def _pw_ref(x, w, b, act):
    y = x @ w + b
    if act == "relu":
        y = jnp.maximum(y, 0.0)
    elif act == "tanh":
        y = jnp.tanh(y)
    return y


def reference_forward(image_nchw, val, params, lowres, luma_bins, n_in=3, n_out=3):
    N, _, H, W = image_nchw.shape
    lh, lw = lowres
    nc = n_out * (n_in + 1)
    img_nhwc = jnp.transpose(image_nchw, (0, 2, 3, 1))
    dh = jnp.asarray(_interp_matrix_pytorch_bilinear(lh, H))
    dw = jnp.asarray(_interp_matrix_pytorch_bilinear(lw, W))
    low = jnp.einsum("ah,bw,nhwc->nabc", dh, dw, img_nhwc)

    x = _pw_ref(low[:, ::2, ::2, :], *params["splat_1"], "none") + val
    x = _pw_ref(x[:, ::2, ::2, :], *params["splat_2"], "relu")
    x = _pw_ref(x[:, ::2, ::2, :], *params["splat_3"], "relu")
    gh, gw = x.shape[1], x.shape[2]
    pred = _pw_ref(x, *params["prediction"], "none")
    grid3 = pred.reshape(N, gh * gw, luma_bins * nc)

    g1 = _pw_ref(img_nhwc, *params["guide_1"], "relu")
    guide = _pw_ref(g1, *params["guide_2"], "tanh").reshape(N, H * W, 1)

    a = _gridsample_tent_matrix(H, gh)
    bm = _gridsample_tent_matrix(W, gw)
    S = jnp.asarray(np.einsum("hy,wx->hwyx", a, bm).reshape(H * W, gh * gw))
    g_sp = jnp.einsum("pq,nqk->npk", S, grid3)
    iz = ((guide + 1.0) * luma_bins - 1.0) * 0.5
    d = jnp.arange(luma_bins, dtype=jnp.float32)[None, None, :]
    wz = jnp.maximum(0.0, 1.0 - jnp.abs(iz - d))
    coeff = jnp.einsum("npd,npdc->npc", wz,
                       g_sp.reshape(N, H * W, luma_bins, nc))
    img_pix = img_nhwc.reshape(N, H * W, n_in)
    outs = []
    for o in range(n_out):
        base = o * (n_in + 1)
        aff = coeff[:, :, base:base + n_in]
        bias = coeff[:, :, base + n_in:base + n_in + 1]
        outs.append(jnp.sum(img_pix * aff, axis=-1, keepdims=True) + bias)
    out_pix = jnp.concatenate(outs, axis=-1)
    return jnp.transpose(out_pix.reshape(N, H, W, n_out), (0, 3, 1, 2))


# ----------------------------------- main ------------------------------------

if __name__ == "__main__":
    key = jax.random.PRNGKey(0)
    kimg, kparam = jax.random.split(key)

    N, H, W = 2, 32, 32
    lowres = (16, 16)
    luma_bins = 4

    image = jax.random.normal(kimg, (N, 3, H, W), dtype=jnp.float32)
    val = jnp.float32(0.25)
    params = init_params(kparam, luma_bins)

    fwd = jax.jit(bilateral_net_forward,
                  static_argnames=("lowres", "luma_bins", "n_in", "n_out"))
    out = jax.block_until_ready(
        fwd(image, val, params, lowres=lowres, luma_bins=luma_bins))
    assert out.shape == (N, 3, H, W)

    ref = jax.block_until_ready(
        reference_forward(image, val, params, lowres, luma_bins))
    np.testing.assert_allclose(np.asarray(out), np.asarray(ref),
                               rtol=2e-3, atol=2e-3)
    print("KERNEL_OK")
</pallas_src>

<mosaic_0001>
module attributes {stable_mosaic.version = 11 : i64} {
  func.func @_guide_slice_apply_kernel(%arg0: i32, %arg1: i32, %arg2: memref<81xf32, #tpu.memory_space<smem>>, %arg3: memref<1x1x1536x2xf32, #tpu.memory_space<vmem>>, %arg4: memref<2x128xf32, #tpu.memory_space<vmem>>, %arg5: memref<1x3x32x128xf32, #tpu.memory_space<vmem>>, %arg6: memref<1x3x32x128xf32, #tpu.memory_space<vmem>>) attributes {dimension_semantics = [#tpu.dimension_semantics<parallel>, #tpu.dimension_semantics<parallel>], iteration_bounds = array<i64: 2, 1>, scalar_prefetch = 0 : i64, scratch_operands = 0 : i64, tpu.core_type = #tpu.core_type<tc>, window_params = [{transform_indices = @transform_0, window_bounds = array<i64: 81>}, {transform_indices = @transform_1, window_bounds = array<i64: 1, 1, 1536, 2>}, {pipeline_mode = #tpu.pipeline_mode<synchronous>, transform_indices = @transform_2, window_bounds = array<i64: 2, 128>}, {transform_indices = @transform_3, window_bounds = array<i64: 1, 3, 32, 128>}, {transform_indices = @transform_4, window_bounds = array<i64: 1, 3, 32, 128>}]} {
    %c0 = arith.constant 0 : index
    %c0_0 = arith.constant 0 : index
    %c0_1 = arith.constant 0 : index
    %c0_2 = arith.constant 0 : index
    %0 = vector.load %arg5[%c0, %c0_0, %c0_1, %c0_2] : memref<1x3x32x128xf32, #tpu.memory_space<vmem>>, vector<1x1x32x128xf32>
    %1 = vector.shape_cast %0 : vector<1x1x32x128xf32> to vector<32x128xf32>
    %c0_3 = arith.constant 0 : index
    %c1 = arith.constant 1 : index
    %c0_4 = arith.constant 0 : index
    %c0_5 = arith.constant 0 : index
    %2 = vector.load %arg5[%c0_3, %c1, %c0_4, %c0_5] : memref<1x3x32x128xf32, #tpu.memory_space<vmem>>, vector<1x1x32x128xf32>
    %3 = vector.shape_cast %2 : vector<1x1x32x128xf32> to vector<32x128xf32>
    %c0_6 = arith.constant 0 : index
    %c2 = arith.constant 2 : index
    %c0_7 = arith.constant 0 : index
    %c0_8 = arith.constant 0 : index
    %4 = vector.load %arg5[%c0_6, %c2, %c0_7, %c0_8] : memref<1x3x32x128xf32, #tpu.memory_space<vmem>>, vector<1x1x32x128xf32>
    %5 = vector.shape_cast %4 : vector<1x1x32x128xf32> to vector<32x128xf32>
    %c0_9 = arith.constant 0 : index
    %c0_10 = arith.constant 0 : index
    %6 = vector.load %arg4[%c0_9, %c0_10] : memref<2x128xf32, #tpu.memory_space<vmem>>, vector<2x128xf32>
    %cst = arith.constant 0.000000e+00 : f32
    %7 = vector.broadcast %cst : f32 to vector<32x128xf32>
    %c0_11 = arith.constant 0 : index
    %8 = memref.load %arg2[%c0_11] : memref<81xf32, #tpu.memory_space<smem>>
    %9 = vector.broadcast %8 : f32 to vector<32x128xf32>
    %10 = arith.mulf %1, %9 : vector<32x128xf32>
    %c16 = arith.constant 16 : index
    %11 = memref.load %arg2[%c16] : memref<81xf32, #tpu.memory_space<smem>>
    %12 = vector.broadcast %11 : f32 to vector<32x128xf32>
    %13 = arith.mulf %3, %12 : vector<32x128xf32>
    %14 = arith.addf %10, %13 : vector<32x128xf32>
    %c32 = arith.constant 32 : index
    %15 = memref.load %arg2[%c32] : memref<81xf32, #tpu.memory_space<smem>>
    %16 = vector.broadcast %15 : f32 to vector<32x128xf32>
    %17 = arith.mulf %5, %16 : vector<32x128xf32>
    %18 = arith.addf %14, %17 : vector<32x128xf32>
    %c48 = arith.constant 48 : index
    %19 = memref.load %arg2[%c48] : memref<81xf32, #tpu.memory_space<smem>>
    %20 = vector.broadcast %19 : f32 to vector<32x128xf32>
    %21 = arith.addf %18, %20 : vector<32x128xf32>
    %cst_12 = arith.constant 0.000000e+00 : f32
    %22 = vector.broadcast %cst_12 : f32 to vector<32x128xf32>
    %23 = arith.maximumf %21, %22 : vector<32x128xf32>
    %c64 = arith.constant 64 : index
    %24 = memref.load %arg2[%c64] : memref<81xf32, #tpu.memory_space<smem>>
    %25 = vector.broadcast %24 : f32 to vector<32x128xf32>
    %26 = arith.mulf %23, %25 : vector<32x128xf32>
    %27 = arith.addf %7, %26 : vector<32x128xf32>
    %c1_13 = arith.constant 1 : index
    %28 = memref.load %arg2[%c1_13] : memref<81xf32, #tpu.memory_space<smem>>
    %29 = vector.broadcast %28 : f32 to vector<32x128xf32>
    %30 = arith.mulf %1, %29 : vector<32x128xf32>
    %c17 = arith.constant 17 : index
    %31 = memref.load %arg2[%c17] : memref<81xf32, #tpu.memory_space<smem>>
    %32 = vector.broadcast %31 : f32 to vector<32x128xf32>
    %33 = arith.mulf %3, %32 : vector<32x128xf32>
    %34 = arith.addf %30, %33 : vector<32x128xf32>
    %c33 = arith.constant 33 : index
    %35 = memref.load %arg2[%c33] : memref<81xf32, #tpu.memory_space<smem>>
    %36 = vector.broadcast %35 : f32 to vector<32x128xf32>
    %37 = arith.mulf %5, %36 : vector<32x128xf32>
    %38 = arith.addf %34, %37 : vector<32x128xf32>
    %c49 = arith.constant 49 : index
    %39 = memref.load %arg2[%c49] : memref<81xf32, #tpu.memory_space<smem>>
    %40 = vector.broadcast %39 : f32 to vector<32x128xf32>
    %41 = arith.addf %38, %40 : vector<32x128xf32>
    %cst_14 = arith.constant 0.000000e+00 : f32
    %42 = vector.broadcast %cst_14 : f32 to vector<32x128xf32>
    %43 = arith.maximumf %41, %42 : vector<32x128xf32>
    %c65 = arith.constant 65 : index
    %44 = memref.load %arg2[%c65] : memref<81xf32, #tpu.memory_space<smem>>
    %45 = vector.broadcast %44 : f32 to vector<32x128xf32>
    %46 = arith.mulf %43, %45 : vector<32x128xf32>
    %47 = arith.addf %27, %46 : vector<32x128xf32>
    %c2_15 = arith.constant 2 : index
    %48 = memref.load %arg2[%c2_15] : memref<81xf32, #tpu.memory_space<smem>>
    %49 = vector.broadcast %48 : f32 to vector<32x128xf32>
    %50 = arith.mulf %1, %49 : vector<32x128xf32>
    %c18 = arith.constant 18 : index
    %51 = memref.load %arg2[%c18] : memref<81xf32, #tpu.memory_space<smem>>
    %52 = vector.broadcast %51 : f32 to vector<32x128xf32>
    %53 = arith.mulf %3, %52 : vector<32x128xf32>
    %54 = arith.addf %50, %53 : vector<32x128xf32>
    %c34 = arith.constant 34 : index
    %55 = memref.load %arg2[%c34] : memref<81xf32, #tpu.memory_space<smem>>
    %56 = vector.broadcast %55 : f32 to vector<32x128xf32>
    %57 = arith.mulf %5, %56 : vector<32x128xf32>
    %58 = arith.addf %54, %57 : vector<32x128xf32>
    %c50 = arith.constant 50 : index
    %59 = memref.load %arg2[%c50] : memref<81xf32, #tpu.memory_space<smem>>
    %60 = vector.broadcast %59 : f32 to vector<32x128xf32>
    %61 = arith.addf %58, %60 : vector<32x128xf32>
    %cst_16 = arith.constant 0.000000e+00 : f32
    %62 = vector.broadcast %cst_16 : f32 to vector<32x128xf32>
    %63 = arith.maximumf %61, %62 : vector<32x128xf32>
    %c66 = arith.constant 66 : index
    %64 = memref.load %arg2[%c66] : memref<81xf32, #tpu.memory_space<smem>>
    %65 = vector.broadcast %64 : f32 to vector<32x128xf32>
    %66 = arith.mulf %63, %65 : vector<32x128xf32>
    %67 = arith.addf %47, %66 : vector<32x128xf32>
    %c3 = arith.constant 3 : index
    %68 = memref.load %arg2[%c3] : memref<81xf32, #tpu.memory_space<smem>>
    %69 = vector.broadcast %68 : f32 to vector<32x128xf32>
    %70 = arith.mulf %1, %69 : vector<32x128xf32>
    %c19 = arith.constant 19 : index
    %71 = memref.load %arg2[%c19] : memref<81xf32, #tpu.memory_space<smem>>
    %72 = vector.broadcast %71 : f32 to vector<32x128xf32>
    %73 = arith.mulf %3, %72 : vector<32x128xf32>
    %74 = arith.addf %70, %73 : vector<32x128xf32>
    %c35 = arith.constant 35 : index
    %75 = memref.load %arg2[%c35] : memref<81xf32, #tpu.memory_space<smem>>
    %76 = vector.broadcast %75 : f32 to vector<32x128xf32>
    %77 = arith.mulf %5, %76 : vector<32x128xf32>
    %78 = arith.addf %74, %77 : vector<32x128xf32>
    %c51 = arith.constant 51 : index
    %79 = memref.load %arg2[%c51] : memref<81xf32, #tpu.memory_space<smem>>
    %80 = vector.broadcast %79 : f32 to vector<32x128xf32>
    %81 = arith.addf %78, %80 : vector<32x128xf32>
    %cst_17 = arith.constant 0.000000e+00 : f32
    %82 = vector.broadcast %cst_17 : f32 to vector<32x128xf32>
    %83 = arith.maximumf %81, %82 : vector<32x128xf32>
    %c67 = arith.constant 67 : index
    %84 = memref.load %arg2[%c67] : memref<81xf32, #tpu.memory_space<smem>>
    %85 = vector.broadcast %84 : f32 to vector<32x128xf32>
    %86 = arith.mulf %83, %85 : vector<32x128xf32>
    %87 = arith.addf %67, %86 : vector<32x128xf32>
    %c4 = arith.constant 4 : index
    %88 = memref.load %arg2[%c4] : memref<81xf32, #tpu.memory_space<smem>>
    %89 = vector.broadcast %88 : f32 to vector<32x128xf32>
    %90 = arith.mulf %1, %89 : vector<32x128xf32>
    %c20 = arith.constant 20 : index
    %91 = memref.load %arg2[%c20] : memref<81xf32, #tpu.memory_space<smem>>
    %92 = vector.broadcast %91 : f32 to vector<32x128xf32>
    %93 = arith.mulf %3, %92 : vector<32x128xf32>
    %94 = arith.addf %90, %93 : vector<32x128xf32>
    %c36 = arith.constant 36 : index
    %95 = memref.load %arg2[%c36] : memref<81xf32, #tpu.memory_space<smem>>
    %96 = vector.broadcast %95 : f32 to vector<32x128xf32>
    %97 = arith.mulf %5, %96 : vector<32x128xf32>
    %98 = arith.addf %94, %97 : vector<32x128xf32>
    %c52 = arith.constant 52 : index
    %99 = memref.load %arg2[%c52] : memref<81xf32, #tpu.memory_space<smem>>
    %100 = vector.broadcast %99 : f32 to vector<32x128xf32>
    %101 = arith.addf %98, %100 : vector<32x128xf32>
    %cst_18 = arith.constant 0.000000e+00 : f32
    %102 = vector.broadcast %cst_18 : f32 to vector<32x128xf32>
    %103 = arith.maximumf %101, %102 : vector<32x128xf32>
    %c68 = arith.constant 68 : index
    %104 = memref.load %arg2[%c68] : memref<81xf32, #tpu.memory_space<smem>>
    %105 = vector.broadcast %104 : f32 to vector<32x128xf32>
    %106 = arith.mulf %103, %105 : vector<32x128xf32>
    %107 = arith.addf %87, %106 : vector<32x128xf32>
    %c5 = arith.constant 5 : index
    %108 = memref.load %arg2[%c5] : memref<81xf32, #tpu.memory_space<smem>>
    %109 = vector.broadcast %108 : f32 to vector<32x128xf32>
    %110 = arith.mulf %1, %109 : vector<32x128xf32>
    %c21 = arith.constant 21 : index
    %111 = memref.load %arg2[%c21] : memref<81xf32, #tpu.memory_space<smem>>
    %112 = vector.broadcast %111 : f32 to vector<32x128xf32>
    %113 = arith.mulf %3, %112 : vector<32x128xf32>
    %114 = arith.addf %110, %113 : vector<32x128xf32>
    %c37 = arith.constant 37 : index
    %115 = memref.load %arg2[%c37] : memref<81xf32, #tpu.memory_space<smem>>
    %116 = vector.broadcast %115 : f32 to vector<32x128xf32>
    %117 = arith.mulf %5, %116 : vector<32x128xf32>
    %118 = arith.addf %114, %117 : vector<32x128xf32>
    %c53 = arith.constant 53 : index
    %119 = memref.load %arg2[%c53] : memref<81xf32, #tpu.memory_space<smem>>
    %120 = vector.broadcast %119 : f32 to vector<32x128xf32>
    %121 = arith.addf %118, %120 : vector<32x128xf32>
    %cst_19 = arith.constant 0.000000e+00 : f32
    %122 = vector.broadcast %cst_19 : f32 to vector<32x128xf32>
    %123 = arith.maximumf %121, %122 : vector<32x128xf32>
    %c69 = arith.constant 69 : index
    %124 = memref.load %arg2[%c69] : memref<81xf32, #tpu.memory_space<smem>>
    %125 = vector.broadcast %124 : f32 to vector<32x128xf32>
    %126 = arith.mulf %123, %125 : vector<32x128xf32>
    %127 = arith.addf %107, %126 : vector<32x128xf32>
    %c6 = arith.constant 6 : index
    %128 = memref.load %arg2[%c6] : memref<81xf32, #tpu.memory_space<smem>>
    %129 = vector.broadcast %128 : f32 to vector<32x128xf32>
    %130 = arith.mulf %1, %129 : vector<32x128xf32>
    %c22 = arith.constant 22 : index
    %131 = memref.load %arg2[%c22] : memref<81xf32, #tpu.memory_space<smem>>
    %132 = vector.broadcast %131 : f32 to vector<32x128xf32>
    %133 = arith.mulf %3, %132 : vector<32x128xf32>
    %134 = arith.addf %130, %133 : vector<32x128xf32>
    %c38 = arith.constant 38 : index
    %135 = memref.load %arg2[%c38] : memref<81xf32, #tpu.memory_space<smem>>
    %136 = vector.broadcast %135 : f32 to vector<32x128xf32>
    %137 = arith.mulf %5, %136 : vector<32x128xf32>
    %138 = arith.addf %134, %137 : vector<32x128xf32>
    %c54 = arith.constant 54 : index
    %139 = memref.load %arg2[%c54] : memref<81xf32, #tpu.memory_space<smem>>
    %140 = vector.broadcast %139 : f32 to vector<32x128xf32>
    %141 = arith.addf %138, %140 : vector<32x128xf32>
    %cst_20 = arith.constant 0.000000e+00 : f32
    %142 = vector.broadcast %cst_20 : f32 to vector<32x128xf32>
    %143 = arith.maximumf %141, %142 : vector<32x128xf32>
    %c70 = arith.constant 70 : index
    %144 = memref.load %arg2[%c70] : memref<81xf32, #tpu.memory_space<smem>>
    %145 = vector.broadcast %144 : f32 to vector<32x128xf32>
    %146 = arith.mulf %143, %145 : vector<32x128xf32>
    %147 = arith.addf %127, %146 : vector<32x128xf32>
    %c7 = arith.constant 7 : index
    %148 = memref.load %arg2[%c7] : memref<81xf32, #tpu.memory_space<smem>>
    %149 = vector.broadcast %148 : f32 to vector<32x128xf32>
    %150 = arith.mulf %1, %149 : vector<32x128xf32>
    %c23 = arith.constant 23 : index
    %151 = memref.load %arg2[%c23] : memref<81xf32, #tpu.memory_space<smem>>
    %152 = vector.broadcast %151 : f32 to vector<32x128xf32>
    %153 = arith.mulf %3, %152 : vector<32x128xf32>
    %154 = arith.addf %150, %153 : vector<32x128xf32>
    %c39 = arith.constant 39 : index
    %155 = memref.load %arg2[%c39] : memref<81xf32, #tpu.memory_space<smem>>
    %156 = vector.broadcast %155 : f32 to vector<32x128xf32>
    %157 = arith.mulf %5, %156 : vector<32x128xf32>
    %158 = arith.addf %154, %157 : vector<32x128xf32>
    %c55 = arith.constant 55 : index
    %159 = memref.load %arg2[%c55] : memref<81xf32, #tpu.memory_space<smem>>
    %160 = vector.broadcast %159 : f32 to vector<32x128xf32>
    %161 = arith.addf %158, %160 : vector<32x128xf32>
    %cst_21 = arith.constant 0.000000e+00 : f32
    %162 = vector.broadcast %cst_21 : f32 to vector<32x128xf32>
    %163 = arith.maximumf %161, %162 : vector<32x128xf32>
    %c71 = arith.constant 71 : index
    %164 = memref.load %arg2[%c71] : memref<81xf32, #tpu.memory_space<smem>>
    %165 = vector.broadcast %164 : f32 to vector<32x128xf32>
    %166 = arith.mulf %163, %165 : vector<32x128xf32>
    %167 = arith.addf %147, %166 : vector<32x128xf32>
    %c8 = arith.constant 8 : index
    %168 = memref.load %arg2[%c8] : memref<81xf32, #tpu.memory_space<smem>>
    %169 = vector.broadcast %168 : f32 to vector<32x128xf32>
    %170 = arith.mulf %1, %169 : vector<32x128xf32>
    %c24 = arith.constant 24 : index
    %171 = memref.load %arg2[%c24] : memref<81xf32, #tpu.memory_space<smem>>
    %172 = vector.broadcast %171 : f32 to vector<32x128xf32>
    %173 = arith.mulf %3, %172 : vector<32x128xf32>
    %174 = arith.addf %170, %173 : vector<32x128xf32>
    %c40 = arith.constant 40 : index
    %175 = memref.load %arg2[%c40] : memref<81xf32, #tpu.memory_space<smem>>
    %176 = vector.broadcast %175 : f32 to vector<32x128xf32>
    %177 = arith.mulf %5, %176 : vector<32x128xf32>
    %178 = arith.addf %174, %177 : vector<32x128xf32>
    %c56 = arith.constant 56 : index
    %179 = memref.load %arg2[%c56] : memref<81xf32, #tpu.memory_space<smem>>
    %180 = vector.broadcast %179 : f32 to vector<32x128xf32>
    %181 = arith.addf %178, %180 : vector<32x128xf32>
    %cst_22 = arith.constant 0.000000e+00 : f32
    %182 = vector.broadcast %cst_22 : f32 to vector<32x128xf32>
    %183 = arith.maximumf %181, %182 : vector<32x128xf32>
    %c72 = arith.constant 72 : index
    %184 = memref.load %arg2[%c72] : memref<81xf32, #tpu.memory_space<smem>>
    %185 = vector.broadcast %184 : f32 to vector<32x128xf32>
    %186 = arith.mulf %183, %185 : vector<32x128xf32>
    %187 = arith.addf %167, %186 : vector<32x128xf32>
    %c9 = arith.constant 9 : index
    %188 = memref.load %arg2[%c9] : memref<81xf32, #tpu.memory_space<smem>>
    %189 = vector.broadcast %188 : f32 to vector<32x128xf32>
    %190 = arith.mulf %1, %189 : vector<32x128xf32>
    %c25 = arith.constant 25 : index
    %191 = memref.load %arg2[%c25] : memref<81xf32, #tpu.memory_space<smem>>
    %192 = vector.broadcast %191 : f32 to vector<32x128xf32>
    %193 = arith.mulf %3, %192 : vector<32x128xf32>
    %194 = arith.addf %190, %193 : vector<32x128xf32>
    %c41 = arith.constant 41 : index
    %195 = memref.load %arg2[%c41] : memref<81xf32, #tpu.memory_space<smem>>
    %196 = vector.broadcast %195 : f32 to vector<32x128xf32>
    %197 = arith.mulf %5, %196 : vector<32x128xf32>
    %198 = arith.addf %194, %197 : vector<32x128xf32>
    %c57 = arith.constant 57 : index
    %199 = memref.load %arg2[%c57] : memref<81xf32, #tpu.memory_space<smem>>
    %200 = vector.broadcast %199 : f32 to vector<32x128xf32>
    %201 = arith.addf %198, %200 : vector<32x128xf32>
    %cst_23 = arith.constant 0.000000e+00 : f32
    %202 = vector.broadcast %cst_23 : f32 to vector<32x128xf32>
    %203 = arith.maximumf %201, %202 : vector<32x128xf32>
    %c73 = arith.constant 73 : index
    %204 = memref.load %arg2[%c73] : memref<81xf32, #tpu.memory_space<smem>>
    %205 = vector.broadcast %204 : f32 to vector<32x128xf32>
    %206 = arith.mulf %203, %205 : vector<32x128xf32>
    %207 = arith.addf %187, %206 : vector<32x128xf32>
    %c10 = arith.constant 10 : index
    %208 = memref.load %arg2[%c10] : memref<81xf32, #tpu.memory_space<smem>>
    %209 = vector.broadcast %208 : f32 to vector<32x128xf32>
    %210 = arith.mulf %1, %209 : vector<32x128xf32>
    %c26 = arith.constant 26 : index
    %211 = memref.load %arg2[%c26] : memref<81xf32, #tpu.memory_space<smem>>
    %212 = vector.broadcast %211 : f32 to vector<32x128xf32>
    %213 = arith.mulf %3, %212 : vector<32x128xf32>
    %214 = arith.addf %210, %213 : vector<32x128xf32>
    %c42 = arith.constant 42 : index
    %215 = memref.load %arg2[%c42] : memref<81xf32, #tpu.memory_space<smem>>
    %216 = vector.broadcast %215 : f32 to vector<32x128xf32>
    %217 = arith.mulf %5, %216 : vector<32x128xf32>
    %218 = arith.addf %214, %217 : vector<32x128xf32>
    %c58 = arith.constant 58 : index
    %219 = memref.load %arg2[%c58] : memref<81xf32, #tpu.memory_space<smem>>
    %220 = vector.broadcast %219 : f32 to vector<32x128xf32>
    %221 = arith.addf %218, %220 : vector<32x128xf32>
    %cst_24 = arith.constant 0.000000e+00 : f32
    %222 = vector.broadcast %cst_24 : f32 to vector<32x128xf32>
    %223 = arith.maximumf %221, %222 : vector<32x128xf32>
    %c74 = arith.constant 74 : index
    %224 = memref.load %arg2[%c74] : memref<81xf32, #tpu.memory_space<smem>>
    %225 = vector.broadcast %224 : f32 to vector<32x128xf32>
    %226 = arith.mulf %223, %225 : vector<32x128xf32>
    %227 = arith.addf %207, %226 : vector<32x128xf32>
    %c11 = arith.constant 11 : index
    %228 = memref.load %arg2[%c11] : memref<81xf32, #tpu.memory_space<smem>>
    %229 = vector.broadcast %228 : f32 to vector<32x128xf32>
    %230 = arith.mulf %1, %229 : vector<32x128xf32>
    %c27 = arith.constant 27 : index
    %231 = memref.load %arg2[%c27] : memref<81xf32, #tpu.memory_space<smem>>
    %232 = vector.broadcast %231 : f32 to vector<32x128xf32>
    %233 = arith.mulf %3, %232 : vector<32x128xf32>
    %234 = arith.addf %230, %233 : vector<32x128xf32>
    %c43 = arith.constant 43 : index
    %235 = memref.load %arg2[%c43] : memref<81xf32, #tpu.memory_space<smem>>
    %236 = vector.broadcast %235 : f32 to vector<32x128xf32>
    %237 = arith.mulf %5, %236 : vector<32x128xf32>
    %238 = arith.addf %234, %237 : vector<32x128xf32>
    %c59 = arith.constant 59 : index
    %239 = memref.load %arg2[%c59] : memref<81xf32, #tpu.memory_space<smem>>
    %240 = vector.broadcast %239 : f32 to vector<32x128xf32>
    %241 = arith.addf %238, %240 : vector<32x128xf32>
    %cst_25 = arith.constant 0.000000e+00 : f32
    %242 = vector.broadcast %cst_25 : f32 to vector<32x128xf32>
    %243 = arith.maximumf %241, %242 : vector<32x128xf32>
    %c75 = arith.constant 75 : index
    %244 = memref.load %arg2[%c75] : memref<81xf32, #tpu.memory_space<smem>>
    %245 = vector.broadcast %244 : f32 to vector<32x128xf32>
    %246 = arith.mulf %243, %245 : vector<32x128xf32>
    %247 = arith.addf %227, %246 : vector<32x128xf32>
    %c12 = arith.constant 12 : index
    %248 = memref.load %arg2[%c12] : memref<81xf32, #tpu.memory_space<smem>>
    %249 = vector.broadcast %248 : f32 to vector<32x128xf32>
    %250 = arith.mulf %1, %249 : vector<32x128xf32>
    %c28 = arith.constant 28 : index
    %251 = memref.load %arg2[%c28] : memref<81xf32, #tpu.memory_space<smem>>
    %252 = vector.broadcast %251 : f32 to vector<32x128xf32>
    %253 = arith.mulf %3, %252 : vector<32x128xf32>
    %254 = arith.addf %250, %253 : vector<32x128xf32>
    %c44 = arith.constant 44 : index
    %255 = memref.load %arg2[%c44] : memref<81xf32, #tpu.memory_space<smem>>
    %256 = vector.broadcast %255 : f32 to vector<32x128xf32>
    %257 = arith.mulf %5, %256 : vector<32x128xf32>
    %258 = arith.addf %254, %257 : vector<32x128xf32>
    %c60 = arith.constant 60 : index
    %259 = memref.load %arg2[%c60] : memref<81xf32, #tpu.memory_space<smem>>
    %260 = vector.broadcast %259 : f32 to vector<32x128xf32>
    %261 = arith.addf %258, %260 : vector<32x128xf32>
    %cst_26 = arith.constant 0.000000e+00 : f32
    %262 = vector.broadcast %cst_26 : f32 to vector<32x128xf32>
    %263 = arith.maximumf %261, %262 : vector<32x128xf32>
    %c76 = arith.constant 76 : index
    %264 = memref.load %arg2[%c76] : memref<81xf32, #tpu.memory_space<smem>>
    %265 = vector.broadcast %264 : f32 to vector<32x128xf32>
    %266 = arith.mulf %263, %265 : vector<32x128xf32>
    %267 = arith.addf %247, %266 : vector<32x128xf32>
    %c13 = arith.constant 13 : index
    %268 = memref.load %arg2[%c13] : memref<81xf32, #tpu.memory_space<smem>>
    %269 = vector.broadcast %268 : f32 to vector<32x128xf32>
    %270 = arith.mulf %1, %269 : vector<32x128xf32>
    %c29 = arith.constant 29 : index
    %271 = memref.load %arg2[%c29] : memref<81xf32, #tpu.memory_space<smem>>
    %272 = vector.broadcast %271 : f32 to vector<32x128xf32>
    %273 = arith.mulf %3, %272 : vector<32x128xf32>
    %274 = arith.addf %270, %273 : vector<32x128xf32>
    %c45 = arith.constant 45 : index
    %275 = memref.load %arg2[%c45] : memref<81xf32, #tpu.memory_space<smem>>
    %276 = vector.broadcast %275 : f32 to vector<32x128xf32>
    %277 = arith.mulf %5, %276 : vector<32x128xf32>
    %278 = arith.addf %274, %277 : vector<32x128xf32>
    %c61 = arith.constant 61 : index
    %279 = memref.load %arg2[%c61] : memref<81xf32, #tpu.memory_space<smem>>
    %280 = vector.broadcast %279 : f32 to vector<32x128xf32>
    %281 = arith.addf %278, %280 : vector<32x128xf32>
    %cst_27 = arith.constant 0.000000e+00 : f32
    %282 = vector.broadcast %cst_27 : f32 to vector<32x128xf32>
    %283 = arith.maximumf %281, %282 : vector<32x128xf32>
    %c77 = arith.constant 77 : index
    %284 = memref.load %arg2[%c77] : memref<81xf32, #tpu.memory_space<smem>>
    %285 = vector.broadcast %284 : f32 to vector<32x128xf32>
    %286 = arith.mulf %283, %285 : vector<32x128xf32>
    %287 = arith.addf %267, %286 : vector<32x128xf32>
    %c14 = arith.constant 14 : index
    %288 = memref.load %arg2[%c14] : memref<81xf32, #tpu.memory_space<smem>>
    %289 = vector.broadcast %288 : f32 to vector<32x128xf32>
    %290 = arith.mulf %1, %289 : vector<32x128xf32>
    %c30 = arith.constant 30 : index
    %291 = memref.load %arg2[%c30] : memref<81xf32, #tpu.memory_space<smem>>
    %292 = vector.broadcast %291 : f32 to vector<32x128xf32>
    %293 = arith.mulf %3, %292 : vector<32x128xf32>
    %294 = arith.addf %290, %293 : vector<32x128xf32>
    %c46 = arith.constant 46 : index
    %295 = memref.load %arg2[%c46] : memref<81xf32, #tpu.memory_space<smem>>
    %296 = vector.broadcast %295 : f32 to vector<32x128xf32>
    %297 = arith.mulf %5, %296 : vector<32x128xf32>
    %298 = arith.addf %294, %297 : vector<32x128xf32>
    %c62 = arith.constant 62 : index
    %299 = memref.load %arg2[%c62] : memref<81xf32, #tpu.memory_space<smem>>
    %300 = vector.broadcast %299 : f32 to vector<32x128xf32>
    %301 = arith.addf %298, %300 : vector<32x128xf32>
    %cst_28 = arith.constant 0.000000e+00 : f32
    %302 = vector.broadcast %cst_28 : f32 to vector<32x128xf32>
    %303 = arith.maximumf %301, %302 : vector<32x128xf32>
    %c78 = arith.constant 78 : index
    %304 = memref.load %arg2[%c78] : memref<81xf32, #tpu.memory_space<smem>>
    %305 = vector.broadcast %304 : f32 to vector<32x128xf32>
    %306 = arith.mulf %303, %305 : vector<32x128xf32>
    %307 = arith.addf %287, %306 : vector<32x128xf32>
    %c15 = arith.constant 15 : index
    %308 = memref.load %arg2[%c15] : memref<81xf32, #tpu.memory_space<smem>>
    %309 = vector.broadcast %308 : f32 to vector<32x128xf32>
    %310 = arith.mulf %1, %309 : vector<32x128xf32>
    %c31 = arith.constant 31 : index
    %311 = memref.load %arg2[%c31] : memref<81xf32, #tpu.memory_space<smem>>
    %312 = vector.broadcast %311 : f32 to vector<32x128xf32>
    %313 = arith.mulf %3, %312 : vector<32x128xf32>
    %314 = arith.addf %310, %313 : vector<32x128xf32>
    %c47 = arith.constant 47 : index
    %315 = memref.load %arg2[%c47] : memref<81xf32, #tpu.memory_space<smem>>
    %316 = vector.broadcast %315 : f32 to vector<32x128xf32>
    %317 = arith.mulf %5, %316 : vector<32x128xf32>
    %318 = arith.addf %314, %317 : vector<32x128xf32>
    %c63 = arith.constant 63 : index
    %319 = memref.load %arg2[%c63] : memref<81xf32, #tpu.memory_space<smem>>
    %320 = vector.broadcast %319 : f32 to vector<32x128xf32>
    %321 = arith.addf %318, %320 : vector<32x128xf32>
    %cst_29 = arith.constant 0.000000e+00 : f32
    %322 = vector.broadcast %cst_29 : f32 to vector<32x128xf32>
    %323 = arith.maximumf %321, %322 : vector<32x128xf32>
    %c79 = arith.constant 79 : index
    %324 = memref.load %arg2[%c79] : memref<81xf32, #tpu.memory_space<smem>>
    %325 = vector.broadcast %324 : f32 to vector<32x128xf32>
    %326 = arith.mulf %323, %325 : vector<32x128xf32>
    %327 = arith.addf %307, %326 : vector<32x128xf32>
    %c80 = arith.constant 80 : index
    %328 = memref.load %arg2[%c80] : memref<81xf32, #tpu.memory_space<smem>>
    %329 = vector.broadcast %328 : f32 to vector<32x128xf32>
    %330 = arith.addf %327, %329 : vector<32x128xf32>
    %331 = math.tanh %330 : vector<32x128xf32>
    %cst_30 = arith.constant 1.000000e+00 : f32
    %332 = vector.broadcast %cst_30 : f32 to vector<32x128xf32>
    %333 = arith.addf %331, %332 : vector<32x128xf32>
    %cst_31 = arith.constant 2.000000e+00 : f32
    %334 = vector.broadcast %cst_31 : f32 to vector<32x128xf32>
    %335 = arith.mulf %333, %334 : vector<32x128xf32>
    %cst_32 = arith.constant 5.000000e-01 : f32
    %336 = vector.broadcast %cst_32 : f32 to vector<32x128xf32>
    %337 = arith.subf %335, %336 : vector<32x128xf32>
    %cst_33 = arith.constant 0.000000e+00 : f32
    %338 = vector.broadcast %cst_33 : f32 to vector<32x128xf32>
    %cst_34 = arith.constant 0.000000e+00 : f32
    %339 = vector.broadcast %cst_34 : f32 to vector<32x128xf32>
    %cst_35 = arith.constant 0.000000e+00 : f32
    %340 = vector.broadcast %cst_35 : f32 to vector<32x128xf32>
    %c0_36 = arith.constant 0 : index
    %c0_37 = arith.constant 0 : index
    %c0_38 = arith.constant 0 : index
    %c0_39 = arith.constant 0 : index
    %341 = vector.load %arg3[%c0_36, %c0_37, %c0_38, %c0_39] : memref<1x1x1536x2xf32, #tpu.memory_space<vmem>>, vector<1x1x384x2xf32>
    %342 = vector.shape_cast %341 : vector<1x1x384x2xf32> to vector<384x2xf32>
    %cst_40 = arith.constant dense<0.000000e+00> : vector<384x128xf32>
    %343 = tpu.matmul %342, %6, %cst_40 {dimension_numbers = #tpu.dot_dimension_numbers<[1], [0], [0], [1], [0, 0, 1, 1], [], []>} : vector<384x2xf32>, vector<2x128xf32>, vector<384x128xf32> -> vector<384x128xf32>
    %cst_41 = arith.constant 0.000000e+00 : f32
    %344 = vector.broadcast %cst_41 : f32 to vector<32x128xf32>
    %345 = arith.subf %337, %344 : vector<32x128xf32>
    %346 = math.absf %345 : vector<32x128xf32>
    %cst_42 = arith.constant 1.000000e+00 : f32
    %347 = vector.broadcast %cst_42 : f32 to vector<32x128xf32>
    %348 = arith.subf %347, %346 : vector<32x128xf32>
    %cst_43 = arith.constant 0.000000e+00 : f32
    %349 = vector.broadcast %cst_43 : f32 to vector<32x128xf32>
    %350 = arith.maximumf %348, %349 : vector<32x128xf32>
    %351 = vector.extract_strided_slice %343 {offsets = [96, 0], sizes = [32, 128], strides = [1, 1]} : vector<384x128xf32> to vector<32x128xf32>
    %352 = vector.extract_strided_slice %343 {offsets = [0, 0], sizes = [32, 128], strides = [1, 1]} : vector<384x128xf32> to vector<32x128xf32>
    %353 = arith.mulf %1, %352 : vector<32x128xf32>
    %354 = arith.addf %351, %353 : vector<32x128xf32>
    %355 = vector.extract_strided_slice %343 {offsets = [32, 0], sizes = [32, 128], strides = [1, 1]} : vector<384x128xf32> to vector<32x128xf32>
    %356 = arith.mulf %3, %355 : vector<32x128xf32>
    %357 = arith.addf %354, %356 : vector<32x128xf32>
    %358 = vector.extract_strided_slice %343 {offsets = [64, 0], sizes = [32, 128], strides = [1, 1]} : vector<384x128xf32> to vector<32x128xf32>
    %359 = arith.mulf %5, %358 : vector<32x128xf32>
    %360 = arith.addf %357, %359 : vector<32x128xf32>
    %361 = arith.mulf %350, %360 : vector<32x128xf32>
    %362 = arith.addf %338, %361 : vector<32x128xf32>
    %363 = vector.extract_strided_slice %343 {offsets = [224, 0], sizes = [32, 128], strides = [1, 1]} : vector<384x128xf32> to vector<32x128xf32>
    %364 = vector.extract_strided_slice %343 {offsets = [128, 0], sizes = [32, 128], strides = [1, 1]} : vector<384x128xf32> to vector<32x128xf32>
    %365 = arith.mulf %1, %364 : vector<32x128xf32>
    %366 = arith.addf %363, %365 : vector<32x128xf32>
    %367 = vector.extract_strided_slice %343 {offsets = [160, 0], sizes = [32, 128], strides = [1, 1]} : vector<384x128xf32> to vector<32x128xf32>
    %368 = arith.mulf %3, %367 : vector<32x128xf32>
    %369 = arith.addf %366, %368 : vector<32x128xf32>
    %370 = vector.extract_strided_slice %343 {offsets = [192, 0], sizes = [32, 128], strides = [1, 1]} : vector<384x128xf32> to vector<32x128xf32>
    %371 = arith.mulf %5, %370 : vector<32x128xf32>
    %372 = arith.addf %369, %371 : vector<32x128xf32>
    %373 = arith.mulf %350, %372 : vector<32x128xf32>
    %374 = arith.addf %339, %373 : vector<32x128xf32>
    %375 = vector.extract_strided_slice %343 {offsets = [352, 0], sizes = [32, 128], strides = [1, 1]} : vector<384x128xf32> to vector<32x128xf32>
    %376 = vector.extract_strided_slice %343 {offsets = [256, 0], sizes = [32, 128], strides = [1, 1]} : vector<384x128xf32> to vector<32x128xf32>
    %377 = arith.mulf %1, %376 : vector<32x128xf32>
    %378 = arith.addf %375, %377 : vector<32x128xf32>
    %379 = vector.extract_strided_slice %343 {offsets = [288, 0], sizes = [32, 128], strides = [1, 1]} : vector<384x128xf32> to vector<32x128xf32>
    %380 = arith.mulf %3, %379 : vector<32x128xf32>
    %381 = arith.addf %378, %380 : vector<32x128xf32>
    %382 = vector.extract_strided_slice %343 {offsets = [320, 0], sizes = [32, 128], strides = [1, 1]} : vector<384x128xf32> to vector<32x128xf32>
    %383 = arith.mulf %5, %382 : vector<32x128xf32>
    %384 = arith.addf %381, %383 : vector<32x128xf32>
    %385 = arith.mulf %350, %384 : vector<32x128xf32>
    %386 = arith.addf %340, %385 : vector<32x128xf32>
    %c0_44 = arith.constant 0 : index
    %c0_45 = arith.constant 0 : index
    %c384 = arith.constant 384 : index
    %c0_46 = arith.constant 0 : index
    %387 = vector.load %arg3[%c0_44, %c0_45, %c384, %c0_46] : memref<1x1x1536x2xf32, #tpu.memory_space<vmem>>, vector<1x1x384x2xf32>
    %388 = vector.shape_cast %387 : vector<1x1x384x2xf32> to vector<384x2xf32>
    %cst_47 = arith.constant dense<0.000000e+00> : vector<384x128xf32>
    %389 = tpu.matmul %388, %6, %cst_47 {dimension_numbers = #tpu.dot_dimension_numbers<[1], [0], [0], [1], [0, 0, 1, 1], [], []>} : vector<384x2xf32>, vector<2x128xf32>, vector<384x128xf32> -> vector<384x128xf32>
    %cst_48 = arith.constant 1.000000e+00 : f32
    %390 = vector.broadcast %cst_48 : f32 to vector<32x128xf32>
    %391 = arith.subf %337, %390 : vector<32x128xf32>
    %392 = math.absf %391 : vector<32x128xf32>
    %cst_49 = arith.constant 1.000000e+00 : f32
    %393 = vector.broadcast %cst_49 : f32 to vector<32x128xf32>
    %394 = arith.subf %393, %392 : vector<32x128xf32>
    %cst_50 = arith.constant 0.000000e+00 : f32
    %395 = vector.broadcast %cst_50 : f32 to vector<32x128xf32>
    %396 = arith.maximumf %394, %395 : vector<32x128xf32>
    %397 = vector.extract_strided_slice %389 {offsets = [96, 0], sizes = [32, 128], strides = [1, 1]} : vector<384x128xf32> to vector<32x128xf32>
    %398 = vector.extract_strided_slice %389 {offsets = [0, 0], sizes = [32, 128], strides = [1, 1]} : vector<384x128xf32> to vector<32x128xf32>
    %399 = arith.mulf %1, %398 : vector<32x128xf32>
    %400 = arith.addf %397, %399 : vector<32x128xf32>
    %401 = vector.extract_strided_slice %389 {offsets = [32, 0], sizes = [32, 128], strides = [1, 1]} : vector<384x128xf32> to vector<32x128xf32>
    %402 = arith.mulf %3, %401 : vector<32x128xf32>
    %403 = arith.addf %400, %402 : vector<32x128xf32>
    %404 = vector.extract_strided_slice %389 {offsets = [64, 0], sizes = [32, 128], strides = [1, 1]} : vector<384x128xf32> to vector<32x128xf32>
    %405 = arith.mulf %5, %404 : vector<32x128xf32>
    %406 = arith.addf %403, %405 : vector<32x128xf32>
    %407 = arith.mulf %396, %406 : vector<32x128xf32>
    %408 = arith.addf %362, %407 : vector<32x128xf32>
    %409 = vector.extract_strided_slice %389 {offsets = [224, 0], sizes = [32, 128], strides = [1, 1]} : vector<384x128xf32> to vector<32x128xf32>
    %410 = vector.extract_strided_slice %389 {offsets = [128, 0], sizes = [32, 128], strides = [1, 1]} : vector<384x128xf32> to vector<32x128xf32>
    %411 = arith.mulf %1, %410 : vector<32x128xf32>
    %412 = arith.addf %409, %411 : vector<32x128xf32>
    %413 = vector.extract_strided_slice %389 {offsets = [160, 0], sizes = [32, 128], strides = [1, 1]} : vector<384x128xf32> to vector<32x128xf32>
    %414 = arith.mulf %3, %413 : vector<32x128xf32>
    %415 = arith.addf %412, %414 : vector<32x128xf32>
    %416 = vector.extract_strided_slice %389 {offsets = [192, 0], sizes = [32, 128], strides = [1, 1]} : vector<384x128xf32> to vector<32x128xf32>
    %417 = arith.mulf %5, %416 : vector<32x128xf32>
    %418 = arith.addf %415, %417 : vector<32x128xf32>
    %419 = arith.mulf %396, %418 : vector<32x128xf32>
    %420 = arith.addf %374, %419 : vector<32x128xf32>
    %421 = vector.extract_strided_slice %389 {offsets = [352, 0], sizes = [32, 128], strides = [1, 1]} : vector<384x128xf32> to vector<32x128xf32>
    %422 = vector.extract_strided_slice %389 {offsets = [256, 0], sizes = [32, 128], strides = [1, 1]} : vector<384x128xf32> to vector<32x128xf32>
    %423 = arith.mulf %1, %422 : vector<32x128xf32>
    %424 = arith.addf %421, %423 : vector<32x128xf32>
    %425 = vector.extract_strided_slice %389 {offsets = [288, 0], sizes = [32, 128], strides = [1, 1]} : vector<384x128xf32> to vector<32x128xf32>
    %426 = arith.mulf %3, %425 : vector<32x128xf32>
    %427 = arith.addf %424, %426 : vector<32x128xf32>
    %428 = vector.extract_strided_slice %389 {offsets = [320, 0], sizes = [32, 128], strides = [1, 1]} : vector<384x128xf32> to vector<32x128xf32>
    %429 = arith.mulf %5, %428 : vector<32x128xf32>
    %430 = arith.addf %427, %429 : vector<32x128xf32>
    %431 = arith.mulf %396, %430 : vector<32x128xf32>
    %432 = arith.addf %386, %431 : vector<32x128xf32>
    %c0_51 = arith.constant 0 : index
    %c0_52 = arith.constant 0 : index
    %c768 = arith.constant 768 : index
    %c0_53 = arith.constant 0 : index
    %433 = vector.load %arg3[%c0_51, %c0_52, %c768, %c0_53] : memref<1x1x1536x2xf32, #tpu.memory_space<vmem>>, vector<1x1x384x2xf32>
    %434 = vector.shape_cast %433 : vector<1x1x384x2xf32> to vector<384x2xf32>
    %cst_54 = arith.constant dense<0.000000e+00> : vector<384x128xf32>
    %435 = tpu.matmul %434, %6, %cst_54 {dimension_numbers = #tpu.dot_dimension_numbers<[1], [0], [0], [1], [0, 0, 1, 1], [], []>} : vector<384x2xf32>, vector<2x128xf32>, vector<384x128xf32> -> vector<384x128xf32>
    %cst_55 = arith.constant 2.000000e+00 : f32
    %436 = vector.broadcast %cst_55 : f32 to vector<32x128xf32>
    %437 = arith.subf %337, %436 : vector<32x128xf32>
    %438 = math.absf %437 : vector<32x128xf32>
    %cst_56 = arith.constant 1.000000e+00 : f32
    %439 = vector.broadcast %cst_56 : f32 to vector<32x128xf32>
    %440 = arith.subf %439, %438 : vector<32x128xf32>
    %cst_57 = arith.constant 0.000000e+00 : f32
    %441 = vector.broadcast %cst_57 : f32 to vector<32x128xf32>
    %442 = arith.maximumf %440, %441 : vector<32x128xf32>
    %443 = vector.extract_strided_slice %435 {offsets = [96, 0], sizes = [32, 128], strides = [1, 1]} : vector<384x128xf32> to vector<32x128xf32>
    %444 = vector.extract_strided_slice %435 {offsets = [0, 0], sizes = [32, 128], strides = [1, 1]} : vector<384x128xf32> to vector<32x128xf32>
    %445 = arith.mulf %1, %444 : vector<32x128xf32>
    %446 = arith.addf %443, %445 : vector<32x128xf32>
    %447 = vector.extract_strided_slice %435 {offsets = [32, 0], sizes = [32, 128], strides = [1, 1]} : vector<384x128xf32> to vector<32x128xf32>
    %448 = arith.mulf %3, %447 : vector<32x128xf32>
    %449 = arith.addf %446, %448 : vector<32x128xf32>
    %450 = vector.extract_strided_slice %435 {offsets = [64, 0], sizes = [32, 128], strides = [1, 1]} : vector<384x128xf32> to vector<32x128xf32>
    %451 = arith.mulf %5, %450 : vector<32x128xf32>
    %452 = arith.addf %449, %451 : vector<32x128xf32>
    %453 = arith.mulf %442, %452 : vector<32x128xf32>
    %454 = arith.addf %408, %453 : vector<32x128xf32>
    %455 = vector.extract_strided_slice %435 {offsets = [224, 0], sizes = [32, 128], strides = [1, 1]} : vector<384x128xf32> to vector<32x128xf32>
    %456 = vector.extract_strided_slice %435 {offsets = [128, 0], sizes = [32, 128], strides = [1, 1]} : vector<384x128xf32> to vector<32x128xf32>
    %457 = arith.mulf %1, %456 : vector<32x128xf32>
    %458 = arith.addf %455, %457 : vector<32x128xf32>
    %459 = vector.extract_strided_slice %435 {offsets = [160, 0], sizes = [32, 128], strides = [1, 1]} : vector<384x128xf32> to vector<32x128xf32>
    %460 = arith.mulf %3, %459 : vector<32x128xf32>
    %461 = arith.addf %458, %460 : vector<32x128xf32>
    %462 = vector.extract_strided_slice %435 {offsets = [192, 0], sizes = [32, 128], strides = [1, 1]} : vector<384x128xf32> to vector<32x128xf32>
    %463 = arith.mulf %5, %462 : vector<32x128xf32>
    %464 = arith.addf %461, %463 : vector<32x128xf32>
    %465 = arith.mulf %442, %464 : vector<32x128xf32>
    %466 = arith.addf %420, %465 : vector<32x128xf32>
    %467 = vector.extract_strided_slice %435 {offsets = [352, 0], sizes = [32, 128], strides = [1, 1]} : vector<384x128xf32> to vector<32x128xf32>
    %468 = vector.extract_strided_slice %435 {offsets = [256, 0], sizes = [32, 128], strides = [1, 1]} : vector<384x128xf32> to vector<32x128xf32>
    %469 = arith.mulf %1, %468 : vector<32x128xf32>
    %470 = arith.addf %467, %469 : vector<32x128xf32>
    %471 = vector.extract_strided_slice %435 {offsets = [288, 0], sizes = [32, 128], strides = [1, 1]} : vector<384x128xf32> to vector<32x128xf32>
    %472 = arith.mulf %3, %471 : vector<32x128xf32>
    %473 = arith.addf %470, %472 : vector<32x128xf32>
    %474 = vector.extract_strided_slice %435 {offsets = [320, 0], sizes = [32, 128], strides = [1, 1]} : vector<384x128xf32> to vector<32x128xf32>
    %475 = arith.mulf %5, %474 : vector<32x128xf32>
    %476 = arith.addf %473, %475 : vector<32x128xf32>
    %477 = arith.mulf %442, %476 : vector<32x128xf32>
    %478 = arith.addf %432, %477 : vector<32x128xf32>
    %c0_58 = arith.constant 0 : index
    %c0_59 = arith.constant 0 : index
    %c1152 = arith.constant 1152 : index
    %c0_60 = arith.constant 0 : index
    %479 = vector.load %arg3[%c0_58, %c0_59, %c1152, %c0_60] : memref<1x1x1536x2xf32, #tpu.memory_space<vmem>>, vector<1x1x384x2xf32>
    %480 = vector.shape_cast %479 : vector<1x1x384x2xf32> to vector<384x2xf32>
    %cst_61 = arith.constant dense<0.000000e+00> : vector<384x128xf32>
    %481 = tpu.matmul %480, %6, %cst_61 {dimension_numbers = #tpu.dot_dimension_numbers<[1], [0], [0], [1], [0, 0, 1, 1], [], []>} : vector<384x2xf32>, vector<2x128xf32>, vector<384x128xf32> -> vector<384x128xf32>
    %cst_62 = arith.constant 3.000000e+00 : f32
    %482 = vector.broadcast %cst_62 : f32 to vector<32x128xf32>
    %483 = arith.subf %337, %482 : vector<32x128xf32>
    %484 = math.absf %483 : vector<32x128xf32>
    %cst_63 = arith.constant 1.000000e+00 : f32
    %485 = vector.broadcast %cst_63 : f32 to vector<32x128xf32>
    %486 = arith.subf %485, %484 : vector<32x128xf32>
    %cst_64 = arith.constant 0.000000e+00 : f32
    %487 = vector.broadcast %cst_64 : f32 to vector<32x128xf32>
    %488 = arith.maximumf %486, %487 : vector<32x128xf32>
    %489 = vector.extract_strided_slice %481 {offsets = [96, 0], sizes = [32, 128], strides = [1, 1]} : vector<384x128xf32> to vector<32x128xf32>
    %490 = vector.extract_strided_slice %481 {offsets = [0, 0], sizes = [32, 128], strides = [1, 1]} : vector<384x128xf32> to vector<32x128xf32>
    %491 = arith.mulf %1, %490 : vector<32x128xf32>
    %492 = arith.addf %489, %491 : vector<32x128xf32>
    %493 = vector.extract_strided_slice %481 {offsets = [32, 0], sizes = [32, 128], strides = [1, 1]} : vector<384x128xf32> to vector<32x128xf32>
    %494 = arith.mulf %3, %493 : vector<32x128xf32>
    %495 = arith.addf %492, %494 : vector<32x128xf32>
    %496 = vector.extract_strided_slice %481 {offsets = [64, 0], sizes = [32, 128], strides = [1, 1]} : vector<384x128xf32> to vector<32x128xf32>
    %497 = arith.mulf %5, %496 : vector<32x128xf32>
    %498 = arith.addf %495, %497 : vector<32x128xf32>
    %499 = arith.mulf %488, %498 : vector<32x128xf32>
    %500 = arith.addf %454, %499 : vector<32x128xf32>
    %501 = vector.extract_strided_slice %481 {offsets = [224, 0], sizes = [32, 128], strides = [1, 1]} : vector<384x128xf32> to vector<32x128xf32>
    %502 = vector.extract_strided_slice %481 {offsets = [128, 0], sizes = [32, 128], strides = [1, 1]} : vector<384x128xf32> to vector<32x128xf32>
    %503 = arith.mulf %1, %502 : vector<32x128xf32>
    %504 = arith.addf %501, %503 : vector<32x128xf32>
    %505 = vector.extract_strided_slice %481 {offsets = [160, 0], sizes = [32, 128], strides = [1, 1]} : vector<384x128xf32> to vector<32x128xf32>
    %506 = arith.mulf %3, %505 : vector<32x128xf32>
    %507 = arith.addf %504, %506 : vector<32x128xf32>
    %508 = vector.extract_strided_slice %481 {offsets = [192, 0], sizes = [32, 128], strides = [1, 1]} : vector<384x128xf32> to vector<32x128xf32>
    %509 = arith.mulf %5, %508 : vector<32x128xf32>
    %510 = arith.addf %507, %509 : vector<32x128xf32>
    %511 = arith.mulf %488, %510 : vector<32x128xf32>
    %512 = arith.addf %466, %511 : vector<32x128xf32>
    %513 = vector.extract_strided_slice %481 {offsets = [352, 0], sizes = [32, 128], strides = [1, 1]} : vector<384x128xf32> to vector<32x128xf32>
    %514 = vector.extract_strided_slice %481 {offsets = [256, 0], sizes = [32, 128], strides = [1, 1]} : vector<384x128xf32> to vector<32x128xf32>
    %515 = arith.mulf %1, %514 : vector<32x128xf32>
    %516 = arith.addf %513, %515 : vector<32x128xf32>
    %517 = vector.extract_strided_slice %481 {offsets = [288, 0], sizes = [32, 128], strides = [1, 1]} : vector<384x128xf32> to vector<32x128xf32>
    %518 = arith.mulf %3, %517 : vector<32x128xf32>
    %519 = arith.addf %516, %518 : vector<32x128xf32>
    %520 = vector.extract_strided_slice %481 {offsets = [320, 0], sizes = [32, 128], strides = [1, 1]} : vector<384x128xf32> to vector<32x128xf32>
    %521 = arith.mulf %5, %520 : vector<32x128xf32>
    %522 = arith.addf %519, %521 : vector<32x128xf32>
    %523 = arith.mulf %488, %522 : vector<32x128xf32>
    %524 = arith.addf %478, %523 : vector<32x128xf32>
    %c0_65 = arith.constant 0 : index
    %c0_66 = arith.constant 0 : index
    %c0_67 = arith.constant 0 : index
    %c0_68 = arith.constant 0 : index
    %525 = vector.load %arg6[%c0_65, %c0_66, %c0_67, %c0_68] : memref<1x3x32x128xf32, #tpu.memory_space<vmem>>, vector<1x1x32x128xf32>
    %526 = vector.shape_cast %525 : vector<1x1x32x128xf32> to vector<32x128xf32>
    %527 = vector.shape_cast %500 : vector<32x128xf32> to vector<1x1x32x128xf32>
    tpu.vector_store %arg6[%c0_65, %c0_66, %c0_67, %c0_68], %527 {strides = array<i32>} : memref<1x3x32x128xf32, #tpu.memory_space<vmem>>, vector<1x1x32x128xf32>,
    %c0_69 = arith.constant 0 : index
    %c1_70 = arith.constant 1 : index
    %c0_71 = arith.constant 0 : index
    %c0_72 = arith.constant 0 : index
    %528 = vector.load %arg6[%c0_69, %c1_70, %c0_71, %c0_72] : memref<1x3x32x128xf32, #tpu.memory_space<vmem>>, vector<1x1x32x128xf32>
    %529 = vector.shape_cast %528 : vector<1x1x32x128xf32> to vector<32x128xf32>
    %530 = vector.shape_cast %512 : vector<32x128xf32> to vector<1x1x32x128xf32>
    tpu.vector_store %arg6[%c0_69, %c1_70, %c0_71, %c0_72], %530 {strides = array<i32>} : memref<1x3x32x128xf32, #tpu.memory_space<vmem>>, vector<1x1x32x128xf32>,
    %c0_73 = arith.constant 0 : index
    %c2_74 = arith.constant 2 : index
    %c0_75 = arith.constant 0 : index
    %c0_76 = arith.constant 0 : index
    %531 = vector.load %arg6[%c0_73, %c2_74, %c0_75, %c0_76] : memref<1x3x32x128xf32, #tpu.memory_space<vmem>>, vector<1x1x32x128xf32>
    %532 = vector.shape_cast %531 : vector<1x1x32x128xf32> to vector<32x128xf32>
    %533 = vector.shape_cast %524 : vector<32x128xf32> to vector<1x1x32x128xf32>
    tpu.vector_store %arg6[%c0_73, %c2_74, %c0_75, %c0_76], %533 {strides = array<i32>} : memref<1x3x32x128xf32, #tpu.memory_space<vmem>>, vector<1x1x32x128xf32>,
    return
  }
  func.func @transform_0(%arg0: i32, %arg1: i32) -> i32 {
    %c0_i32 = arith.constant 0 : i32
    %c0_i32_0 = arith.constant 0 : i32
    return %c0_i32 : i32
  }
  func.func @transform_1(%arg0: i32, %arg1: i32) -> (i32, i32, i32, i32) {
    %c0_i32 = arith.constant 0 : i32
    %c0_i32_0 = arith.constant 0 : i32
    %c0_i32_1 = arith.constant 0 : i32
    return %arg0, %arg1, %c0_i32, %c0_i32_0 : i32, i32, i32, i32
  }
  func.func @transform_2(%arg0: i32, %arg1: i32) -> (i32, i32) {
    %c0_i32 = arith.constant 0 : i32
    %c0_i32_0 = arith.constant 0 : i32
    %c0_i32_1 = arith.constant 0 : i32
    return %c0_i32, %c0_i32_0 : i32, i32
  }
  func.func @transform_3(%arg0: i32, %arg1: i32) -> (i32, i32, i32, i32) {
    %c0_i32 = arith.constant 0 : i32
    %c0_i32_0 = arith.constant 0 : i32
    %c0_i32_1 = arith.constant 0 : i32
    return %arg0, %c0_i32, %arg1, %c0_i32_0 : i32, i32, i32, i32
  }
  func.func @transform_4(%arg0: i32, %arg1: i32) -> (i32, i32, i32, i32) {
    %c0_i32 = arith.constant 0 : i32
    %c0_i32_0 = arith.constant 0 : i32
    %c0_i32_1 = arith.constant 0 : i32
    return %arg0, %c0_i32, %arg1, %c0_i32_0 : i32, i32, i32, i32
  }
}

</mosaic_0001>

<bundles_post_ra>
// kernel: bilateral_net_forward.1
= control target key start
LH: loop header
LB: loop body
LE: loop exit
PB: predicated region body
PF: predicated region fallthrough
CT: control target
= control target key end

     0   :  { %s6603_s0 = inlined_call_operand.vmem [shape: f32[81], index: 0, kind: input, shape index: {}]   ;;  %s6604_s1 = inlined_call_operand.vmem [shape: f32[2,1,1536,2], index: 1, kind: input, shape index: {}]   ;;  %s6605_s2 = inlined_call_operand.vmem [shape: f32[2,128], index: 2, kind: input, shape index: {}]   ;;  %s6606_s3 = inlined_call_operand.vmem [shape: f32[2,3,32,128], index: 3, kind: input, shape index: {}]   ;;  %s6607_s4 = inlined_call_operand.hbm [shape: f32[2,3,32,128], index: 4, kind: output, shape index: {}]  }
   0x1   :  { %6746 = sst [smem:[#allocation76_spill]] %s6603_s0 }
   0x2   :  { %6747 = sst [smem:[#allocation77_spill]] %s6604_s1 }
   0x3   :  { %6748 = sst [smem:[#allocation78_spill]] %s6605_s2 }
   0x4   :  { %9 = vsyncpa [#allocation4], 0 }
   0x5   :  { %10 = vsyncpa [#allocation3], 0 }
   0x6   :  { %12 = vsyncpa [#allocation3 + $0x1], 0  ;;  %s4665_s15 = smov 0   ;;  %s4667_s16 = smov 0  }
   0x7   :  { %s4669_s17 = smov 0   ;;  %s4671_s18 = smov 0  }
   0x8   :  { %s4673_s19 = smov 0   ;;  %s4675_s20 = smov 0  }
   0x9 LB: > { %6749 = sst [smem:[#allocation8_spill]] %s4614_s15  ;;  %s3627_s21 = sadd.s32 4294967295, %s4634_s20   ;;  %s4634_s20 = sphi %s4675_s20, %s18_s20   ;;  %s4630_s19 = sphi %s4673_s19, %s6991_s19   ;;  %s4626_s18 = sphi %s4671_s18, %s6990_s18   ;;  %s4622_s17 = sphi %s4669_s17, %s6989_s17   ;;  %s4618_s16 = sphi %s4667_s16, %s6993_s16   ;;  %s4614_s15 = sphi %s4665_s15, %s6992_s15  }
   0xa   : > { %6750 = sst [smem:[#allocation9_spill]] %s4622_s17  ;;  %s3628_s22 = sadd.s32 4294967294, %s4634_s20  }
   0xb   : > { %6751 = sst [smem:[#allocation10_spill]] %s4630_s19  ;;  %s30_s23 = sadd.s32 1, %s4630_s19 }
   0xc   : > { %s137_s24 = sadd.s32 1, %s4622_s17  ;;  %p32_p0 = scmp.ge.s32.totalorder %s30_s23, 2 }
   0xd   : > { %p147_p1 = scmp.ne.s32.totalorder %s4622_s17, %s4618_s16  ;;  %p148_p2 = scmp.eq.s32.totalorder %s3627_s21, 1 }
   0xe   : > { %p153_p3 = scmp.ne.s32.totalorder %s4618_s16, %s4614_s15  ;;  %s6995_s23 = smov (%p32_p0, %s30_s23), 0 }
   0xf   : > { %6752 = sst [smem:[#allocation11_spill]] %s6995_s23  ;;  %p4705_p4 = por %p148_p2, %p147_p1 }
  0x10   : > { %p154_p5 = scmp.eq.s32.totalorder %s3628_s22, 1  ;;  %s132_s26 = ssub.s32 %s4630_s19, %s6995_s23 }
  0x11   : > { %p3629_p6 = scmp.ge.s32.totalorder %s4634_s20, 1  ;;  %p135_p7 = scmp.eq.s32.totalorder %s132_s26, 0 }
  0x12   : > { %p4712_p8 = por %p154_p5, %p153_p3  ;;  %p161_p9 = scmp.lt.s32.totalorder %s4634_s20, 3 }
  0x13   : > { %s4718_s28 = scalar_select %p135_p7, %s4622_s17, %s137_s24  }
  0x14   : > { %s6754_s27 = scalar_select %p4712_p8, 1, 0 }
  0x15   : > { %6756 = sst [smem:[#allocation13_spill]] %s4718_s28  ;;  %p4720_p10 = pnand %p3629_p6, %p161_p9 }
  0x16   : > { %6755 = sst [smem:[#allocation12_spill]] %s6754_s27  ;;  %p4724_p11 = scmp.eq.s32.totalorder %s3627_s21, 0 }
  0x17   : > { %s6759_s0 = sld [smem:[#allocation76_spill]]  ;;  %p4449_p12 = pneg %p4720_p10 }
  0x19   : > { %p4450_p13 = pnand %p4724_p11, %p4449_p12 }
  0x1b   : > { %p4539_p1 = pneg %p4450_p13 }
  0x1d   : > { %s174_s7 = sshll.u32 %s6759_s0, 4  ;;  %s175_s7 = int_to_ptr.vmem [resolvable:$true] %s174_s7 }
  0x1e   : > { %s4537_s8 = scalar_lea.vmem %s175_s7, 16  ;;  %p4545_p5 = scmp.lt.s32.totalorder %s175_s7, %s175_s7 }
  0x1f   : > { %p4538_p0 = scmp.ne.s32.totalorder %s175_s7, %s4537_s8  ;;  %p4546_p6 = scmp.lt.s32.totalorder %s4537_s8, %s4537_s8 }
  0x21   : > { %p4540_p2 = pnand %p4539_p1, %p4538_p0  ;;  %p4547_p7 = por %p4546_p6, %p4545_p5 }
  0x23   : > { %p4541_p3 = pneg %p4540_p2 }
  0x25   : > { %p4548_p9 = pnand %p4547_p7, %p4541_p3 }
  0x27   : > { %4551 = shalt.err (!%p4548_p9)
}
  0x28   : > { %s4636_s9 = smov [#allocation2]   ;;  %215 = sbr.rel (%p4720_p10) target bundleno = 489 (0x1e9), region = 36 }
  0x29   : > { %4452 = dma.vmem_to_smem (!%p4450_p13), %s175_s7, 16, %s4636_s9, [#allocation4]  }
  0x2f   : > { %4605 = dma.done.wait (%p4724_p11), [#allocation4], 16  }
  0x30   : > { %4607 = vsyncadd (%p4724_p11), [#allocation4], 4294967280 }
  0x31   : > { %221 = sfence }
  0x32   : > { %s6760_s2 = sld [smem:[#allocation78_spill]]  ;;  %vm1241_vm0 = vcmask 1041408   ;;  %p255_p12 = scmp.lt.s32.totalorder %s4626_s18, 1  ;;  %vm1096_vm1 = vcmask 15360  }
  0x33   : > { %s6761_s1 = sld [smem:[#allocation77_spill]]  ;;  %s4866_s24 = sld [smem:[#allocation2]] }
  0x34   : > { %s4749_s12 = scalar_select %p255_p12, %s4626_s18, 1 }
  0x35   : > { %s4868_s26 = sld [smem:[#allocation2 + $0x10]]  ;;  %s4874_s30 = sld [smem:[#allocation2 + $0x1]] }
  0x36   : > { %s4440_s13 = smul.u32 1536, %s4749_s12  ;;  %s4870_s29 = sld [smem:[#allocation2 + $0x20]] }
  0x37   : > { %s4876_s5 = sld [smem:[#allocation2 + $0x11]]  ;;  %s4882_s6 = sld [smem:[#allocation2 + $0x30]] }
  0x38   : > { %v289_v0 = vld [vmem:[%s6760_s2] sm:$0x3]  ;;  %s4884_s7 = sld [smem:[#allocation2 + $0x21]]  ;;  %s4890_s9 = sld [smem:[#allocation2 + $0x2]] }
  0x39   : > { %4143 = vmatprep.subr.msk.mxu0 %vm1241_vm0, %v289_v0  ;;  %4217 = vmatprep.subr.msk.mxu1 %vm1241_vm0, %v289_v0  ;;  %s4758_s22 = scalar_lea.vmem %s6761_s1, %s4440_s13  ;;  %s4888_s8 = sld [smem:[#allocation2 + $0x31]] }
  0x3a   : > { %4144 = vmatpush3.msk.msra.mxu0 %vm1241_vm0, %v289_v0  ;;  %4218 = vmatpush3.msk.msra.mxu1 %vm1241_vm0, %v289_v0  ;;  %v1048_v1 = vld [vmem:[%s4758_s22] sm:$0xff]  ;;  %v1049_v3 = vld [vmem:[%s4758_s22 + $0x8] sm:$0xff]  ;;  %v1050_v5 = vld [vmem:[%s4758_s22 + $0x10] sm:$0xff]  ;;  %s4892_s10 = sld [smem:[#allocation2 + $0x40]]  ;;  %s4894_s11 = sld [smem:[#allocation2 + $0x12]] }
  0x3b   : > { %4291 = vmatprep.subr.msk.mxu0 %vm1241_vm0, %v289_v0  ;;  %4365 = vmatprep.subr.msk.mxu1 %vm1241_vm0, %v289_v0  ;;  %v1658_v2 = vld [vmem:[%s4758_s22 + $0x180] sm:$0xff]  ;;  %v1659_v4 = vld [vmem:[%s4758_s22 + $0x188] sm:$0xff]  ;;  %v1660_v6 = vld [vmem:[%s4758_s22 + $0x190] sm:$0xff]  ;;  %s4898_s13 = sld [smem:[#allocation2 + $0x41]]  ;;  %s4900_s14 = sld [smem:[#allocation2 + $0x22]] }
  0x3c   : > { %4145 = vmatprep.mubr.msk.f32.mxu0 %vm1096_vm1, %v1048_v1  ;;  %4219 = vmatprep.mubr.msk.f32.mxu1 %vm1096_vm1, %v1658_v2  ;;  %v1051_v7 = vld [vmem:[%s4758_s22 + $0x18] sm:$0xff]  ;;  %v1052_v9 = vld [vmem:[%s4758_s22 + $0x20] sm:$0xff]  ;;  %v1053_v11 = vld [vmem:[%s4758_s22 + $0x28] sm:$0xff]  ;;  %s4906_s21 = sld [smem:[#allocation2 + $0x32]]  ;;  %s4908_s0 = sld [smem:[#allocation2 + $0x3]] }
  0x3d   : > { %4146 = vmatmul.mubr.msk.f32.vlgmr.msra.gmra.mrb[0].mxu0 %vm1096_vm1, %v1049_v3  ;;  %4220 = vmatmul.mubr.msk.f32.vlgmr.msra.gmra.mrb[0].mxu1 %vm1096_vm1, %v1659_v4  ;;  %v1661_v8 = vld [vmem:[%s4758_s22 + $0x198] sm:$0xff]  ;;  %v1662_v10 = vld [vmem:[%s4758_s22 + $0x1a0] sm:$0xff]  ;;  %v1663_v12 = vld [vmem:[%s4758_s22 + $0x1a8] sm:$0xff]  ;;  %s4912_s1 = sld [smem:[#allocation2 + $0x42]]  ;;  %s4914_s2 = sld [smem:[#allocation2 + $0x13]]  ;;  %v4930_v3 = vstv %s4866_s24 }
  0x3e   : > { %4292 = vmatpush3.msk.msra.mxu0 %vm1241_vm0, %v289_v0  ;;  %4366 = vmatpush3.msk.msra.mxu1 %vm1241_vm0, %v289_v0  ;;  %v1054_v13 = vld [vmem:[%s4758_s22 + $0x30] sm:$0xff]  ;;  %v1055_v15 = vld [vmem:[%s4758_s22 + $0x38] sm:$0xff]  ;;  %v1056_v17 = vld [vmem:[%s4758_s22 + $0x40] sm:$0xff]  ;;  %s4441_s23 = smul.u32 96, %s4749_s12  ;;  %s4917_s19 = sld [smem:[#allocation2 + $0x23]]  ;;  %v4933_v4 = vstv %s4868_s26 }
  0x3f   : > { %4148 = vmatprep.mubr.msk.f32.mxu0 %vm1096_vm1, %v1050_v5  ;;  %4222 = vmatprep.mubr.msk.f32.mxu1 %vm1096_vm1, %v1660_v6  ;;  %v1664_v14 = vld [vmem:[%s4758_s22 + $0x1b0] sm:$0xff]  ;;  %v1665_v16 = vld [vmem:[%s4758_s22 + $0x1b8] sm:$0xff]  ;;  %v1666_v18 = vld [vmem:[%s4758_s22 + $0x1c0] sm:$0xff]  ;;  %s4921_s28 = sld [smem:[#allocation2 + $0x33]]  ;;  %v4936_v5 = vstv %s4870_s29  ;;  %s4938_s12 = sld [smem:[#allocation2 + $0x4]] }
  0x40   : > { %v1057_v19 = vld [vmem:[%s4758_s22 + $0x48] sm:$0xff]  ;;  %v1058_v21 = vld [vmem:[%s4758_s22 + $0x50] sm:$0xff]  ;;  %v1059_v23 = vld [vmem:[%s4758_s22 + $0x58] sm:$0xff]  ;;  %s4945_s15 = scalar_lea.vmem %s6606_s3, %s4441_s23  ;;  %s4959_s24 = sld [smem:[#allocation2 + $0x14]] }
  0x41   : > { %4149 = vmatmul.mubr.msk.f32.gmra.mrb[2].mxu0 %vm1096_vm1, %v1051_v7  ;;  %4223 = vmatmul.mubr.msk.f32.gmra.mrb[2].mxu1 %vm1096_vm1, %v1661_v8  ;;  %v1667_v20 = vld [vmem:[%s4758_s22 + $0x1c8] sm:$0xff]  ;;  %v1668_v22 = vld [vmem:[%s4758_s22 + $0x1d0] sm:$0xff]  ;;  %v1669_v24 = vld [vmem:[%s4758_s22 + $0x1d8] sm:$0xff]  ;;  %v4948_v8 = vstv %s4882_s6  ;;  %s4977_s17 = sld [smem:[#allocation2 + $0x43]]  ;;  %s4979_s23 = sld [smem:[#allocation2 + $0x24]] }
  0x42   : > { %4151 = vmatprep.mubr.msk.f32.mxu0 %vm1096_vm1, %v1052_v9  ;;  %4225 = vmatprep.mubr.msk.f32.mxu1 %vm1096_vm1, %v1662_v10  ;;  %v1060_v25 = vld [vmem:[%s4758_s22 + $0x60] sm:$0xff]  ;;  %v1061_v27 = vld [vmem:[%s4758_s22 + $0x68] sm:$0xff]  ;;  %v1062_v29 = vld [vmem:[%s4758_s22 + $0x70] sm:$0xff]  ;;  %v4951_v9 = vstv %s4874_s30  ;;  %s4995_s27 = sld [smem:[#allocation2 + $0x34]]  ;;  %s5071_s26 = sld [smem:[#allocation2 + $0x6]] }
  0x43   : > { %v1670_v26 = vld [vmem:[%s4758_s22 + $0x1e0] sm:$0xff]  ;;  %v1671_v28 = vld [vmem:[%s4758_s22 + $0x1e8] sm:$0xff]  ;;  %v1672_v30 = vld [vmem:[%s4758_s22 + $0x1f0] sm:$0xff]  ;;  %v4954_v10 = vstv %s4876_s5  ;;  %s5078_s29 = sld [smem:[#allocation2 + $0x16]]  ;;  %s5101_s5 = sld [smem:[#allocation2 + $0x45]] }
  0x44   : > { %v1063_v31 = vld [vmem:[%s4758_s22 + $0x78] sm:$0xff]  ;;  %v1064_v33 = vld [vmem:[%s4758_s22 + $0x80] sm:$0xff]  ;;  %v1065_v35 = vld [vmem:[%s4758_s22 + $0x88] sm:$0xff]  ;;  %6762 = vst [vmem:[#allocation14_spill] sm:$0xff] %v4954_v10  ;;  %s5080_s30 = sld [smem:[#allocation2 + $0x26]] }
  0x45   : > { %4152 = vmatmul.mubr.msk.f32.gmra.mrb[4].mxu0 %vm1096_vm1, %v1053_v11  ;;  %4226 = vmatmul.mubr.msk.f32.gmra.mrb[4].mxu1 %vm1096_vm1, %v1663_v12  ;;  %v1673_v32 = vld [vmem:[%s4758_s22 + $0x1f8] sm:$0xff]  ;;  %v1674_v34 = vld [vmem:[%s4758_s22 + $0x200] sm:$0xff]  ;;  %v1675_v36 = vld [vmem:[%s4758_s22 + $0x208] sm:$0xff]  ;;  %v4957_v11 = vstv %s4884_s7  ;;  %s5108_s6 = sld [smem:[#allocation2 + $0x36]]  ;;  %s5110_s7 = sld [smem:[#allocation2 + $0x7]] }
  0x46   : > { %4154 = vmatprep.mubr.msk.f32.mxu0 %vm1096_vm1, %v1054_v13  ;;  %4228 = vmatprep.mubr.msk.f32.mxu1 %vm1096_vm1, %v1664_v14  ;;  %v1066_v37 = vld [vmem:[%s4758_s22 + $0x90] sm:$0xff]  ;;  %v1067_v39 = vld [vmem:[%s4758_s22 + $0x98] sm:$0xff]  ;;  %v1068_v41 = vld [vmem:[%s4758_s22 + $0xa0] sm:$0xff]  ;;  %6763 = vst [vmem:[#allocation15_spill] sm:$0xff] %v4957_v11  ;;  %v4966_v14 = vstv %s4888_s8  ;;  %s5116_s8 = sld [smem:[#allocation2 + $0x17]] }
  0x47   : > { %v1676_v38 = vld [vmem:[%s4758_s22 + $0x210] sm:$0xff]  ;;  %v1677_v40 = vld [vmem:[%s4758_s22 + $0x218] sm:$0xff]  ;;  %v1678_v42 = vld [vmem:[%s4758_s22 + $0x220] sm:$0xff] }
  0x48   : > { %v1069_v43 = vld [vmem:[%s4758_s22 + $0xa8] sm:$0xff]  ;;  %v1070_v45 = vld [vmem:[%s4758_s22 + $0xb0] sm:$0xff]  ;;  %v1071_v47 = vld [vmem:[%s4758_s22 + $0xb8] sm:$0xff] }
  0x49   : > { %4155 = vmatmul.mubr.msk.f32.gmra.mrb[6].mxu0 %vm1096_vm1, %v1055_v15  ;;  %4229 = vmatmul.mubr.msk.f32.gmra.mrb[6].mxu1 %vm1096_vm1, %v1665_v16  ;;  %v1679_v44 = vld [vmem:[%s4758_s22 + $0x228] sm:$0xff]  ;;  %v1680_v46 = vld [vmem:[%s4758_s22 + $0x230] sm:$0xff]  ;;  %v1681_v48 = vld [vmem:[%s4758_s22 + $0x238] sm:$0xff]  ;;  %v4969_v15 = vstv %s4890_s9  ;;  %s5129_s9 = sld [smem:[#allocation2 + $0x46]] }
  0x4a   : > { %4157 = vmatprep.mubr.msk.f32.mxu0 %vm1096_vm1, %v1056_v17  ;;  %4231 = vmatprep.mubr.msk.f32.mxu1 %vm1096_vm1, %v1666_v18  ;;  %v1072_v49 = vld [vmem:[%s4758_s22 + $0xc0] sm:$0xff]  ;;  %v1073_v51 = vld [vmem:[%s4758_s22 + $0xc8] sm:$0xff]  ;;  %v1074_v53 = vld [vmem:[%s4758_s22 + $0xd0] sm:$0xff]  ;;  %6764 = vst [vmem:[#allocation16_spill] sm:$0xff] %v4969_v15  ;;  %v4972_v16 = vstv %s4894_s11  ;;  %s5138_s11 = sld [smem:[#allocation2 + $0x37]] }
  0x4b   : > { %v1682_v50 = vld [vmem:[%s4758_s22 + $0x240] sm:$0xff]  ;;  %v1683_v52 = vld [vmem:[%s4758_s22 + $0x248] sm:$0xff]  ;;  %v1684_v54 = vld [vmem:[%s4758_s22 + $0x250] sm:$0xff]  ;;  %6765 = vst [vmem:[#allocation17_spill] sm:$0xff] %v4972_v16  ;;  %v4975_v17 = vstv %s4908_s0  ;;  %s5020_s0 = sld [smem:[#allocation2 + $0x5]] }
  0x4c   : > { %v1075_v55 = vld [vmem:[%s4758_s22 + $0xd8] sm:$0xff]  ;;  %v1076_v57 = vld [vmem:[%s4758_s22 + $0xe0] sm:$0xff]  ;;  %v1077_v59 = vld [vmem:[%s4758_s22 + $0xe8] sm:$0xff]  ;;  %v4984_v18 = vstv %s4892_s10  ;;  %s5131_s10 = sld [smem:[#allocation2 + $0x27]] }
  0x4d   : > { %4158 = vmatmul.mubr.msk.f32.gmra.mrb[8].mxu0 %vm1096_vm1, %v1057_v19  ;;  %4232 = vmatmul.mubr.msk.f32.gmra.mrb[8].mxu1 %vm1096_vm1, %v1667_v20  ;;  %v1685_v56 = vld [vmem:[%s4758_s22 + $0x258] sm:$0xff]  ;;  %v1686_v58 = vld [vmem:[%s4758_s22 + $0x260] sm:$0xff]  ;;  %v1687_v60 = vld [vmem:[%s4758_s22 + $0x268] sm:$0xff]  ;;  %v4987_v19 = vstv %s4898_s13  ;;  %s5146_s13 = sld [smem:[#allocation2 + $0x8]] }
  0x4e   : > { %4160 = vmatprep.mubr.msk.f32.mxu0 %vm1096_vm1, %v1058_v21  ;;  %4234 = vmatprep.mubr.msk.f32.mxu1 %vm1096_vm1, %v1668_v22  ;;  %v1078_v61 = vld [vmem:[%s4758_s22 + $0xf0] sm:$0xff]  ;;  %v1079_v63 = vld [vmem:[%s4758_s22 + $0xf8] sm:$0xff]  ;;  %v1080_v1 = vld [vmem:[%s4758_s22 + $0x100] sm:$0xff]  ;;  %v4990_v20 = vstv %s4900_s14  ;;  %s5148_s14 = sld [smem:[#allocation2 + $0x18]] }
  0x4f   : > { %v1688_v62 = vld [vmem:[%s4758_s22 + $0x270] sm:$0xff]  ;;  %v1689_v0 = vld [vmem:[%s4758_s22 + $0x278] sm:$0xff]  ;;  %v1690_v2 = vld [vmem:[%s4758_s22 + $0x280] sm:$0xff]  ;;  %6766 = vst [vmem:[#allocation18_spill] sm:$0xff] %v4990_v20  ;;  %v4993_v21 = vstv %s4906_s21  ;;  %s5161_s21 = sld [smem:[#allocation2 + $0x28]] }
  0x50   : > { %v1081_v6 = vld [vmem:[%s4758_s22 + $0x108] sm:$0xff]  ;;  %v1082_v12 = vld [vmem:[%s4758_s22 + $0x110] sm:$0xff] }
  0x51   : > { %4161 = vmatmul.mubr.msk.f32.gmra.mrb[10].mxu0 %vm1096_vm1, %v1059_v23  ;;  %4235 = vmatmul.mubr.msk.f32.gmra.mrb[10].mxu1 %vm1096_vm1, %v1669_v24  ;;  %v1691_v7 = vld [vmem:[%s4758_s22 + $0x288] sm:$0xff]  ;;  %v1692_v13 = vld [vmem:[%s4758_s22 + $0x290] sm:$0xff]  ;;  %v5001_v23 = vstv %s4912_s1  ;;  %v5004_v24 = vstv %s4914_s2  ;;  %s5036_s1 = sld [smem:[#allocation2 + $0x15]]  ;;  %s5051_s2 = sld [smem:[#allocation2 + $0x44]] }
  0x52   : > { %4163 = vmatprep.mubr.msk.f32.mxu0 %vm1096_vm1, %v1060_v25  ;;  %4237 = vmatprep.mubr.msk.f32.mxu1 %vm1096_vm1, %v1670_v26  ;;  %v4998_v22 = vld [vmem:[%s4945_s15 + $0x8] sm:$0xff]  ;;  %6767 = vst [vmem:[#allocation19_spill] sm:$0xff] %v5001_v23  ;;  %v5007_v25 = vstv %s4917_s19  ;;  %s5053_s19 = sld [smem:[#allocation2 + $0x25]] }
  0x53   : > { %v5010_v26 = vld [vmem:[%s4945_s15 + $0x28] sm:$0xff] }
  0x55   : > { %4164 = vmatmul.mubr.msk.f32.gmra.mrb[12].mxu0 %vm1096_vm1, %v1061_v27  ;;  %4238 = vmatmul.mubr.msk.f32.gmra.mrb[12].mxu1 %vm1096_vm1, %v1671_v28  ;;  %v293_v27 = vmul.f32 %v4930_v3, %v4998_v22  ;;  %v339_v28 = vmul.f32 %v4951_v9, %v4998_v22 }
  0x56   : > { %4166 = vmatprep.mubr.msk.f32.mxu0 %vm1096_vm1, %v1062_v29  ;;  %4240 = vmatprep.mubr.msk.f32.mxu1 %vm1096_vm1, %v1672_v30  ;;  %v385_v29 = vmul.f32 %v4969_v15, %v4998_v22  ;;  %v431_v30 = vmul.f32 %v4975_v17, %v4998_v22 }
  0x59   : > { %4167 = vmatmul.mubr.msk.f32.gmra.mrb[14].mxu0 %vm1096_vm1, %v1063_v31  ;;  %4241 = vmatmul.mubr.msk.f32.gmra.mrb[14].mxu1 %vm1096_vm1, %v1673_v32  ;;  %v5025_v31 = vld [vmem:[%s4945_s15 + $0x48] sm:$0xff]  ;;  %v299_v32 = vmul.f32 %v5010_v26, %v4933_v4 }
  0x5a   : > { %4169 = vmatprep.mubr.msk.f32.mxu0 %vm1096_vm1, %v1064_v33  ;;  %4243 = vmatprep.mubr.msk.f32.mxu1 %vm1096_vm1, %v1674_v34  ;;  %v345_v33 = vmul.f32 %v5010_v26, %v4954_v10  ;;  %v391_v34 = vmul.f32 %v5010_v26, %v4972_v16 }
  0x5d   : > { %4170 = vmatmul.mubr.msk.f32.gmra.mrb[16].mxu0 %vm1096_vm1, %v1065_v35  ;;  %4244 = vmatmul.mubr.msk.f32.gmra.mrb[16].mxu1 %vm1096_vm1, %v1675_v36  ;;  %v5034_v35 = vstv %s4921_s28  ;;  %v1083_v36 = vld [vmem:[%s4758_s22 + $0x118] sm:$0xff]  ;;  %s5069_s28 = sld [smem:[#allocation2 + $0x35]] }
  0x5e   : > { %4172 = vmatprep.mubr.msk.f32.mxu0 %vm1096_vm1, %v1066_v37  ;;  %4246 = vmatprep.mubr.msk.f32.mxu1 %vm1096_vm1, %v1676_v38  ;;  %6768 = vst [vmem:[#allocation20_spill] sm:$0xff] %v5034_v35  ;;  %v1693_v37 = vld [vmem:[%s4758_s22 + $0x298] sm:$0xff]  ;;  %v309_v38 = vmul.f32 %v5025_v31, %v4936_v5 }
  0x61   : > { %4173 = vmatmul.mubr.msk.f32.gmra.mrb[18].mxu0 %vm1096_vm1, %v1067_v39  ;;  %4247 = vmatmul.mubr.msk.f32.gmra.mrb[18].mxu1 %vm1096_vm1, %v1677_v40  ;;  %v355_v39 = vmul.f32 %v5025_v31, %v4957_v11  ;;  %v401_v40 = vmul.f32 %v5025_v31, %v4990_v20 }
  0x62   : > { %4175 = vmatprep.mubr.msk.f32.mxu0 %vm1096_vm1, %v1068_v41  ;;  %4249 = vmatprep.mubr.msk.f32.mxu1 %vm1096_vm1, %v1678_v42  ;;  %v5049_v41 = vstv %s4938_s12  ;;  %v1084_v42 = vld [vmem:[%s4758_s22 + $0x120] sm:$0xff]  ;;  %s5170_s12 = sld [smem:[#allocation2 + $0x47]] }
  0x65   : > { %4176 = vmatmul.mubr.msk.f32.gmra.mrb[20].mxu0 %vm1096_vm1, %v1069_v43  ;;  %4250 = vmatmul.mubr.msk.f32.gmra.mrb[20].mxu1 %vm1096_vm1, %v1679_v44  ;;  %v1694_v43 = vld [vmem:[%s4758_s22 + $0x2a0] sm:$0xff]  ;;  %v303_v44 = vadd.f32 %v299_v32, %v293_v27  ;;  %v5106_v27 = vstv %s5036_s1  ;;  %s5218_s1 = sld [smem:[#allocation2 + $0x39]] }
  0x66   : > { %4178 = vmatprep.mubr.msk.f32.mxu0 %vm1096_vm1, %v1070_v45  ;;  %4252 = vmatprep.mubr.msk.f32.mxu1 %vm1096_vm1, %v1680_v46  ;;  %v349_v45 = vadd.f32 %v345_v33, %v339_v28  ;;  %v395_v46 = vadd.f32 %v391_v34, %v385_v29  ;;  %v529_v32 = vmul.f32 %v5010_v26, %v5106_v27  ;;  %v1087_v33 = vld [vmem:[%s4758_s22 + $0x138] sm:$0xff] }
  0x67   : > { %v1697_v34 = vld [vmem:[%s4758_s22 + $0x2b8] sm:$0xff] }
  0x69   : > { %4179 = vmatmul.mubr.msk.f32.gmra.mrb[22].mxu0 %vm1096_vm1, %v1071_v47  ;;  %4253 = vmatmul.mubr.msk.f32.gmra.mrb[22].mxu1 %vm1096_vm1, %v1681_v48  ;;  %v437_v47 = vmul.f32 %v5010_v26, %v5004_v24  ;;  %v447_v48 = vmul.f32 %v5025_v31, %v5007_v25 }
  0x6a   : > { %4181 = vmatprep.mubr.msk.f32.mxu0 %vm1096_vm1, %v1072_v49  ;;  %4255 = vmatprep.mubr.msk.f32.mxu1 %vm1096_vm1, %v1682_v50  ;;  %v477_v49 = vmul.f32 %v5049_v41, %v4998_v22  ;;  %v5064_v50 = vstv %s4959_s24  ;;  %s5181_s24 = sld [smem:[#allocation2 + $0x38]] }
  0x6b   : > { %6769 = vst [vmem:[#allocation21_spill] sm:$0xff] %v5064_v50 }
  0x6d   : > { %4182 = vmatmul.mubr.msk.f32.gmra.mrb[24].mxu0 %vm1096_vm1, %v1073_v51  ;;  %4256 = vmatmul.mubr.msk.f32.gmra.mrb[24].mxu1 %vm1096_vm1, %v1683_v52  ;;  %v5067_v51 = vstv %s4979_s23  ;;  %v313_v52 = vadd.f32 %v309_v38, %v303_v44  ;;  %v5124_v38 = vstv %s5051_s2  ;;  %s5193_s23 = sld [smem:[#allocation2 + $0x19]]  ;;  %s5220_s2 = sld [smem:[#allocation2 + $0xa]] }
  0x6e   : > { %4184 = vmatprep.mubr.msk.f32.mxu0 %vm1096_vm1, %v1074_v53  ;;  %4258 = vmatprep.mubr.msk.f32.mxu1 %vm1096_vm1, %v1684_v54  ;;  %v359_v53 = vadd.f32 %v355_v39, %v349_v45  ;;  %v405_v54 = vadd.f32 %v401_v40, %v395_v46  ;;  %6772 = vst [vmem:[#allocation24_spill] sm:$0xff] %v5124_v38  ;;  %v5127_v39 = vstv %s5053_s19  ;;  %v1088_v40 = vld [vmem:[%s4758_s22 + $0x140] sm:$0xff]  ;;  %s5229_s19 = sld [smem:[#allocation2 + $0x49]] }
  0x71   : > { %4185 = vmatmul.mubr.msk.f32.gmra.mrb[26].mxu0 %vm1096_vm1, %v1075_v55  ;;  %4259 = vmatmul.mubr.msk.f32.gmra.mrb[26].mxu1 %vm1096_vm1, %v1685_v56  ;;  %v5076_v55 = vstv %s4977_s17  ;;  %v1085_v56 = vld [vmem:[%s4758_s22 + $0x128] sm:$0xff]  ;;  %s5183_s17 = sld [smem:[#allocation2 + $0x9]] }
  0x72   : > { %4187 = vmatprep.mubr.msk.f32.mxu0 %vm1096_vm1, %v1076_v57  ;;  %4261 = vmatprep.mubr.msk.f32.mxu1 %vm1096_vm1, %v1686_v58  ;;  %6770 = vst [vmem:[#allocation22_spill] sm:$0xff] %v5076_v55  ;;  %v1695_v57 = vld [vmem:[%s4758_s22 + $0x2a8] sm:$0xff]  ;;  %v441_v58 = vadd.f32 %v437_v47, %v431_v30 }
  0x75   : > { %4188 = vmatmul.mubr.msk.f32.gmra.mrb[28].mxu0 %vm1096_vm1, %v1077_v59  ;;  %4262 = vmatmul.mubr.msk.f32.gmra.mrb[28].mxu1 %vm1096_vm1, %v1687_v60  ;;  %v483_v59 = vmul.f32 %v5010_v26, %v5064_v50  ;;  %v493_v60 = vmul.f32 %v5025_v31, %v5067_v51 }
  0x76   : > { %4190 = vmatprep.mubr.msk.f32.mxu0 %vm1096_vm1, %v1078_v61  ;;  %4264 = vmatprep.mubr.msk.f32.mxu1 %vm1096_vm1, %v1688_v62  ;;  %v5091_v61 = vstv %s4995_s27  ;;  %v1086_v62 = vld [vmem:[%s4758_s22 + $0x130] sm:$0xff]  ;;  %s5195_s27 = sld [smem:[#allocation2 + $0x29]] }
  0x77   : > { %6771 = vst [vmem:[#allocation23_spill] sm:$0xff] %v5091_v61 }
  0x79   : > { %4191 = vmatmul.mubr.msk.f32.gmra.mrb[30].mxu0 %vm1096_vm1, %v1079_v63  ;;  %4265 = vmatmul.mubr.msk.f32.gmra.mrb[30].mxu1 %vm1096_vm1, %v1689_v0  ;;  %v1696_v63 = vld [vmem:[%s4758_s22 + $0x2b0] sm:$0xff]  ;;  %v319_v0 = vadd.f32 %v4948_v8, %v313_v52  ;;  %v5144_v52 = vstv %s5069_s28  ;;  %s5238_s28 = sld [smem:[#allocation2 + $0x1a]] }
  0x7a   : > { %4193 = vmatprep.mubr.msk.f32.mxu0 %vm1096_vm1, %v1080_v1  ;;  %4267 = vmatprep.mubr.msk.f32.mxu1 %vm1096_vm1, %v1690_v2  ;;  %v365_v1 = vadd.f32 %v4966_v14, %v359_v53  ;;  %v411_v2 = vadd.f32 %v4993_v21, %v405_v54  ;;  %6773 = vst [vmem:[#allocation25_spill] sm:$0xff] %v5144_v52  ;;  %v5153_v54 = vstv %s5071_s26  ;;  %s5240_s26 = sld [smem:[#allocation2 + $0x2a]] }
  0x7b   : > { %v323_v28 = vmax.f32 %v319_v0, 0.0  ;;  %v569_v0 = vmul.f32 %v5153_v54, %v4998_v22 }
  0x7c   : > { %v369_v29 = vmax.f32 %v365_v1, 0.0  ;;  %v415_v30 = vmax.f32 %v411_v2, 0.0  ;;  %v1090_v1 = vld [vmem:[%s4758_s22 + $0x150] sm:$0xff] }
  0x7d   : > { %4194 = vmatmul.mubr.msk.f32.gmra.mrb[32].mxu0 %vm1096_vm1, %v1081_v6  ;;  %4268 = vmatmul.mubr.msk.f32.gmra.mrb[32].mxu1 %vm1096_vm1, %v1691_v7  ;;  %v5099_v6 = vstv %s5020_s0  ;;  %v451_v7 = vadd.f32 %v447_v48, %v441_v58  ;;  %v1089_v58 = vld [vmem:[%s4758_s22 + $0x148] sm:$0xff]  ;;  %v1700_v2 = vld [vmem:[%s4758_s22 + $0x2d0] sm:$0xff]  ;;  %s5205_s0 = sld [smem:[#allocation2 + $0x48]] }
  0x7e   : > { %4196 = vmatprep.mubr.msk.f32.mxu0 %vm1096_vm1, %v1082_v12  ;;  %4270 = vmatprep.mubr.msk.f32.mxu1 %vm1096_vm1, %v1692_v13  ;;  %v487_v12 = vadd.f32 %v483_v59, %v477_v49  ;;  %v523_v13 = vmul.f32 %v5099_v6, %v4998_v22  ;;  %v375_v44 = vmul.f32 %v4987_v19, %v369_v29  ;;  %v1699_v59 = vld [vmem:[%s4758_s22 + $0x2c8] sm:$0xff] }
  0x7f   : > { %v421_v45 = vmul.f32 %v5001_v23, %v415_v30  ;;  %v539_v49 = vmul.f32 %v5025_v31, %v5127_v39 }
  0x80   : > { %v533_v46 = vadd.f32 %v529_v32, %v523_v13  ;;  %v5188_v32 = vstv %s5108_s6  ;;  %s5275_s6 = sld [smem:[#allocation2 + $0x4a]] }
  0x81   : > { %4197 = vmatmul.mubr.msk.f32.gmra.mrb[34].mxu0 %vm1096_vm1, %v1083_v36  ;;  %4271 = vmatmul.mubr.msk.f32.gmra.mrb[34].mxu1 %vm1096_vm1, %v1693_v37  ;;  %v457_v36 = vadd.f32 %v5034_v35, %v451_v7  ;;  %v497_v37 = vadd.f32 %v493_v60, %v487_v12  ;;  %v5175_v12 = vstv %s5101_s5  ;;  %6777 = vst [vmem:[#allocation29_spill] sm:$0xff] %v5188_v32  ;;  %s5265_s5 = sld [smem:[#allocation2 + $0x1b]] }
  0x82   : > { %4199 = vmatprep.mubr.msk.f32.mxu0 %vm1096_vm1, %v1084_v42  ;;  %4273 = vmatprep.mubr.msk.f32.mxu1 %vm1096_vm1, %v1694_v43  ;;  %v1698_v42 = vld [vmem:[%s4758_s22 + $0x2c0] sm:$0xff]  ;;  %v329_v43 = vmul.f32 %v4984_v18, %v323_v28  ;;  %6776 = vst [vmem:[#allocation28_spill] sm:$0xff] %v5175_v12 }
  0x83   : > { %v461_v47 = vmax.f32 %v457_v36, 0.0  ;;  %v503_v48 = vadd.f32 %v5091_v61, %v497_v37 }
  0x84   : > { %v379_v53 = vadd.f32 %v375_v44, %v329_v43  ;;  %v1701_v43 = vld [vmem:[%s4758_s22 + $0x2d8] sm:$0xff] }
  0x85   : > { %4200 = vmatmul.mubr.msk.f32.gmra.mrb[36].mxu0 %vm1096_vm1, %v1085_v56  ;;  %4274 = vmatmul.mubr.msk.f32.gmra.mrb[36].mxu1 %vm1096_vm1, %v1695_v57  ;;  %v5156_v56 = vstv %s5078_s29  ;;  %v5159_v57 = vstv %s5080_s30  ;;  %v467_v60 = vmul.f32 %v5076_v55, %v461_v47  ;;  %v5216_v47 = vstv %s5131_s10  ;;  %s5252_s29 = sld [smem:[#allocation2 + $0x3a]]  ;;  %s5263_s30 = sld [smem:[#allocation2 + $0xb]] }
  0x86   : > { %4202 = vmatprep.mubr.msk.f32.mxu0 %vm1096_vm1, %v1086_v62  ;;  %4276 = vmatprep.mubr.msk.f32.mxu1 %vm1096_vm1, %v1696_v63  ;;  %6774 = vst [vmem:[#allocation26_spill] sm:$0xff] %v5156_v56  ;;  %6775 = vst [vmem:[#allocation27_spill] sm:$0xff] %v5159_v57  ;;  %v507_v62 = vmax.f32 %v503_v48, 0.0  ;;  %v543_v63 = vadd.f32 %v539_v49, %v533_v46  ;;  %v425_v7 = vadd.f32 %v421_v45, %v379_v53  ;;  %v1092_v48 = vld [vmem:[%s4758_s22 + $0x160] sm:$0xff]  ;;  %s5312_s10 = sld [smem:[#allocation2 + $0x1c]] }
  0x87   : > { %v575_v13 = vmul.f32 %v5010_v26, %v5156_v56  ;;  %v585_v28 = vmul.f32 %v5025_v31, %v5159_v57  ;;  %v5211_v45 = vstv %s5129_s9  ;;  %6781 = vst [vmem:[#allocation33_spill] sm:$0xff] %v5216_v47  ;;  %v1702_v49 = vld [vmem:[%s4758_s22 + $0x2e0] sm:$0xff]  ;;  %s5299_s9 = sld [smem:[#allocation2 + $0xc]] }
  0x88   : > { %v513_v29 = vmul.f32 %v5124_v38, %v507_v62  ;;  %v549_v30 = vadd.f32 %v5144_v52, %v543_v63  ;;  %v471_v36 = vadd.f32 %v467_v60, %v425_v7  ;;  %6780 = vst [vmem:[#allocation32_spill] sm:$0xff] %v5211_v45  ;;  %v5227_v60 = vstv %s5138_s11  ;;  %s5314_s11 = sld [smem:[#allocation2 + $0x2c]] }
  0x89   : > { %4203 = vmatmul.mubr.msk.f32.gmra.mrb[38].mxu0 %vm1096_vm1, %v1087_v33  ;;  %4277 = vmatmul.mubr.msk.f32.gmra.mrb[38].mxu1 %vm1096_vm1, %v1697_v34  ;;  %v5191_v33 = vstv %s5110_s7  ;;  %v1091_v34 = vld [vmem:[%s4758_s22 + $0x158] sm:$0xff]  ;;  %v579_v37 = vadd.f32 %v575_v13, %v569_v0  ;;  %6782 = vst [vmem:[#allocation34_spill] sm:$0xff] %v5227_v60  ;;  %v5233_v0 = vstv %s5146_s13  ;;  %s5286_s7 = sld [smem:[#allocation2 + $0x2b]] }
  0x8a   : > { %4205 = vmatprep.mubr.msk.f32.mxu0 %vm1096_vm1, %v1088_v40  ;;  %4279 = vmatprep.mubr.msk.f32.mxu1 %vm1096_vm1, %v1698_v42  ;;  %6778 = vst [vmem:[#allocation30_spill] sm:$0xff] %v5191_v33  ;;  %v615_v40 = vmul.f32 %v5191_v33, %v4998_v22  ;;  %v5203_v42 = vstv %s5116_s8  ;;  %v553_v44 = vmax.f32 %v549_v30, 0.0  ;;  %v517_v53 = vadd.f32 %v513_v29, %v471_v36  ;;  %v1093_v29 = vld [vmem:[%s4758_s22 + $0x168] sm:$0xff]  ;;  %s5288_s8 = sld [smem:[#allocation2 + $0x3b]] }
  0x8b   : > { %6779 = vst [vmem:[#allocation31_spill] sm:$0xff] %v5203_v42  ;;  %v621_v46 = vmul.f32 %v5010_v26, %v5203_v42  ;;  %6783 = vst [vmem:[#allocation35_spill] sm:$0xff] %v5233_v0  ;;  %v661_v7 = vmul.f32 %v5233_v0, %v4998_v22  ;;  %v1703_v30 = vld [vmem:[%s4758_s22 + $0x2e8] sm:$0xff]  ;;  %s5331_s13 = sld [smem:[#allocation2 + $0x4b]] }
  0x8c   : > { %v559_v62 = vmul.f32 %v5175_v12, %v553_v44  ;;  %v1704_v44 = vld [vmem:[%s4758_s22 + $0x2f0] sm:$0xff]  ;;  %v5323_v12 = vstv %s5229_s19  ;;  %s5422_s19 = sld [smem:[#allocation2 + $0xf]] }
  0x8d   : > { %4206 = vmatmul.mubr.msk.f32.gmra.mrb[40].mxu0 %vm1096_vm1, %v1089_v58  ;;  %4280 = vmatmul.mubr.msk.f32.gmra.mrb[40].mxu1 %vm1096_vm1, %v1699_v59  ;;  %v589_v58 = vadd.f32 %v585_v28, %v579_v37  ;;  %v631_v59 = vmul.f32 %v5025_v31, %v5216_v47  ;;  %v625_v63 = vadd.f32 %v621_v46, %v615_v40  ;;  %v5250_v28 = vstv %s5161_s21  ;;  %s5342_s21 = sld [smem:[#allocation2 + $0xd]] }
  0x8e   : > { %4208 = vmatprep.mubr.msk.f32.mxu0 %vm1096_vm1, %v1090_v1  ;;  %4282 = vmatprep.mubr.msk.f32.mxu1 %vm1096_vm1, %v1700_v2  ;;  %v5236_v1 = vstv %s5148_s14  ;;  %6785 = vst [vmem:[#allocation37_spill] sm:$0xff] %v5250_v28  ;;  %v5259_v37 = vstv %s5170_s12  ;;  %v677_v40 = vmul.f32 %v5025_v31, %v5250_v28  ;;  %6794 = vst [vmem:[#allocation46_spill] sm:$0xff] %v5323_v12  ;;  %v5329_v28 = vstv %s5240_s26  ;;  %s5333_s14 = sld [smem:[#allocation2 + $0x3c]]  ;;  %s5356_s12 = sld [smem:[#allocation2 + $0x1d]] }
  0x8f   : > { %6784 = vst [vmem:[#allocation36_spill] sm:$0xff] %v5236_v1  ;;  %v595_v2 = vadd.f32 %v5188_v32, %v589_v58  ;;  %v667_v13 = vmul.f32 %v5010_v26, %v5236_v1  ;;  %v635_v36 = vadd.f32 %v631_v59, %v625_v63  ;;  %6786 = vst [vmem:[#allocation38_spill] sm:$0xff] %v5259_v37  ;;  %v5284_v63 = vstv %s5195_s27  ;;  %s5381_s27 = sld [smem:[#allocation2 + $0xe]]  ;;  %s5444_s26 = sld [smem:[#allocation2 + $0x4d]] }
  0x90   : > { %6790 = vst [vmem:[#allocation42_spill] sm:$0xff] %v5284_v63  ;;  %6796 = vst [vmem:[#allocation48_spill] sm:$0xff] %v5329_v28 }
  0x91   : > { %4209 = vmatmul.mubr.msk.f32.gmra.mrb[42].mxu0 %vm1096_vm1, %v1091_v34  ;;  %4283 = vmatmul.mubr.msk.f32.gmra.mrb[42].mxu1 %vm1096_vm1, %v1701_v43  ;;  %v563_v34 = vadd.f32 %v559_v62, %v517_v53  ;;  %v1094_v43 = vld [vmem:[%s4758_s22 + $0x170] sm:$0xff]  ;;  %v599_v46 = vmax.f32 %v595_v2, 0.0  ;;  %v5273_v53 = vstv %s5183_s17  ;;  %v641_v58 = vadd.f32 %v5227_v60, %v635_v36  ;;  %v1095_v2 = vld [vmem:[%s4758_s22 + $0x178] sm:$0xff]  ;;  %s5366_s17 = sld [smem:[#allocation2 + $0x4c]] }
  0x92   : > { %4211 = vmatprep.mubr.msk.f32.mxu0 %vm1096_vm1, %v1092_v48  ;;  %4285 = vmatprep.mubr.msk.f32.mxu1 %vm1096_vm1, %v1702_v49  ;;  %v671_v48 = vadd.f32 %v667_v13, %v661_v7  ;;  %v5270_v49 = vstv %s5181_s24  ;;  %6788 = vst [vmem:[#allocation40_spill] sm:$0xff] %v5273_v53  ;;  %v707_v59 = vmul.f32 %v5273_v53, %v4998_v22  ;;  %v5281_v62 = vstv %s5193_s23  ;;  %s5358_s24 = sld [smem:[#allocation2 + $0x2d]] }
  0x93   : > { %6787 = vst [vmem:[#allocation39_spill] sm:$0xff] %v5270_v49  ;;  %6789 = vst [vmem:[#allocation41_spill] sm:$0xff] %v5281_v62  ;;  %v605_v7 = vmul.f32 %v5211_v45, %v599_v46  ;;  %v5295_v36 = vstv %s5205_s0  ;;  %v713_v60 = vmul.f32 %v5010_v26, %v5281_v62  ;;  %v723_v46 = vmul.f32 %v5025_v31, %v5284_v63  ;;  %v2876_v45 = vld [vmem:[%s4758_s22 + $0x480] sm:$0xff]  ;;  %s5379_s23 = sld [smem:[#allocation2 + $0x3d]]  ;;  %s5388_s0 = sld [smem:[#allocation2 + $0x1e]] }
  0x94   : > { %v681_v13 = vadd.f32 %v677_v40, %v671_v48  ;;  %6791 = vst [vmem:[#allocation43_spill] sm:$0xff] %v5295_v36  ;;  %v5307_v40 = vstv %s5218_s1  ;;  %v5310_v48 = vstv %s5220_s2  ;;  %v5326_v53 = vstv %s5238_s28  ;;  %s5402_s1 = sld [smem:[#allocation2 + $0x2e]]  ;;  %s5429_s28 = sld [smem:[#allocation2 + $0x1f]] }
  0x95   : > { %4212 = vmatmul.mubr.msk.f32.gmra.mrb[44].mxu0 %vm1096_vm1, %v1093_v29  ;;  %4286 = vmatmul.mubr.msk.f32.gmra.mrb[44].mxu1 %vm1096_vm1, %v1703_v30  ;;  %v1705_v29 = vld [vmem:[%s4758_s22 + $0x2f8] sm:$0xff]  ;;  %v645_v30 = vmax.f32 %v641_v58, 0.0  ;;  %6792 = vst [vmem:[#allocation44_spill] sm:$0xff] %v5307_v40  ;;  %6793 = vst [vmem:[#allocation45_spill] sm:$0xff] %v5310_v48  ;;  %v609_v62 = vadd.f32 %v605_v7, %v563_v34  ;;  %v717_v32 = vadd.f32 %v713_v60, %v707_v59  ;;  %v2268_v60 = vld [vmem:[%s4758_s22 + $0x308] sm:$0xff]  ;;  %s5420_s2 = sld [smem:[#allocation2 + $0x3e]] }
  0x96   : > { %4214 = vmatprep.mubr.msk.f32.mxu0 %vm1096_vm1, %v1094_v43  ;;  %4288 = vmatprep.mubr.msk.f32.mxu1 %vm1096_vm1, %v1704_v44  ;;  %v2267_v43 = vld [vmem:[%s4758_s22 + $0x300] sm:$0xff]  ;;  %v687_v44 = vadd.f32 %v5270_v49, %v681_v13  ;;  %v753_v58 = vmul.f32 %v5310_v48, %v4998_v22  ;;  %6795 = vst [vmem:[#allocation47_spill] sm:$0xff] %v5326_v53  ;;  %v5377_v48 = vstv %s5288_s8 }
  0x97   : > { %v651_v63 = vmul.f32 %v5259_v37, %v645_v30  ;;  %v727_v59 = vadd.f32 %v723_v46, %v717_v32  ;;  %v759_v7 = vmul.f32 %v5010_v26, %v5326_v53  ;;  %v769_v13 = vmul.f32 %v5025_v31, %v5329_v28  ;;  %6802 = vst [vmem:[#allocation54_spill] sm:$0xff] %v5377_v48 }
  0x98   : > { %v691_v34 = vmax.f32 %v687_v44, 0.0  ;;  %v5348_v30 = vstv %s5252_s29  ;;  %v5351_v32 = vstv %s5263_s30  ;;  %v5354_v46 = vstv %s5265_s5  ;;  %v2269_v44 = vld [vmem:[%s4758_s22 + $0x310] sm:$0xff]  ;;  %s5446_s29 = sld [smem:[#allocation2 + $0x2f]]  ;;  %s5464_s30 = sld [smem:[#allocation2 + $0x4e]] }
  0x99   : > { %4215 = vmatmul.mubr.msk.f32.gmra.mrb[46].mxu0 %vm1096_vm1, %v1095_v2  ;;  %4289 = vmatmul.mubr.msk.f32.gmra.mrb[46].mxu1 %vm1096_vm1, %v1705_v29  ;;  %v2877_v2 = vld [vmem:[%s4758_s22 + $0x488] sm:$0xff]  ;;  %v655_v29 = vadd.f32 %v651_v63, %v609_v62  ;;  %6797 = vst [vmem:[#allocation49_spill] sm:$0xff] %v5348_v30  ;;  %6798 = vst [vmem:[#allocation50_spill] sm:$0xff] %v5351_v32  ;;  %v763_v37 = vadd.f32 %v759_v7, %v753_v58  ;;  %v5369_v63 = vstv %s5275_s6  ;;  %v2270_v58 = vld [vmem:[%s4758_s22 + $0x318] sm:$0xff]  ;;  %s5472_s5 = sld [smem:[#allocation2 + $0x3f]] }
  0x9a   : > { %4293 = vmatprep.mubr.msk.f32.mxu0 %vm1096_vm1, %v2267_v43  ;;  %4367 = vmatprep.mubr.msk.f32.mxu1 %vm1096_vm1, %v2876_v45  ;;  %6799 = vst [vmem:[#allocation51_spill] sm:$0xff] %v5354_v46  ;;  %v2878_v43 = vld [vmem:[%s4758_s22 + $0x490] sm:$0xff]  ;;  %v697_v49 = vmul.f32 %v5295_v36, %v691_v34  ;;  %v733_v45 = vadd.f32 %v5307_v40, %v727_v59  ;;  %6800 = vst [vmem:[#allocation52_spill] sm:$0xff] %v5369_v63  ;;  %v5374_v53 = vstv %s5286_s7  ;;  %s5510_s6 = sld [smem:[#allocation2 + $0x4f]]  ;;  %s5622_s7 = sld [smem:[#allocation2 + $0x50]] }
  0x9b   : > { %v799_v62 = vmul.f32 %v5351_v32, %v4998_v22  ;;  %v805_v28 = vmul.f32 %v5010_v26, %v5354_v46  ;;  %6801 = vst [vmem:[#allocation53_spill] sm:$0xff] %v5374_v53  ;;  %v773_v7 = vadd.f32 %v769_v13, %v763_v37  ;;  %v815_v36 = vmul.f32 %v5025_v31, %v5374_v53  ;;  %v2271_v37 = vld [vmem:[%s4758_s22 + $0x320] sm:$0xff] }
  0x9c   : > { %v701_v34 = vadd.f32 %v697_v49, %v655_v29  ;;  %v737_v59 = vmax.f32 %v733_v45, 0.0  ;;  %v5394_v46 = vstv %s5299_s9  ;;  %v5400_v49 = vstv %s5314_s11  ;;  %v2880_v13 = vld [vmem:[%s4758_s22 + $0x4a0] sm:$0xff] }
  0x9d   : > { %4294 = vmatmul.mubr.msk.f32.vlgmr.msra.gmra.mrb[48].mxu0 %vm1096_vm1, %v2268_v60  ;;  %4368 = vmatmul.mubr.msk.f32.vlgmr.msra.gmra.mrb[48].mxu1 %vm1096_vm1, %v2877_v2  ;;  %v2879_v60 = vld [vmem:[%s4758_s22 + $0x498] sm:$0xff]  ;;  %v809_v40 = vadd.f32 %v805_v28, %v799_v62  ;;  %6803 = vst [vmem:[#allocation55_spill] sm:$0xff] %v5394_v46  ;;  %v5397_v2 = vstv %s5312_s10  ;;  %6805 = vst [vmem:[#allocation57_spill] sm:$0xff] %v5400_v49  ;;  %v5413_v62 = vstv %s5331_s13  ;;  %v5418_v32 = vstv %s5333_s14 }
  0x9e   : > { %4296 = vmatprep.mubr.msk.f32.mxu0 %vm1096_vm1, %v2269_v44  ;;  %4370 = vmatprep.mubr.msk.f32.mxu1 %vm1096_vm1, %v2878_v43  ;;  %6804 = vst [vmem:[#allocation56_spill] sm:$0xff] %v5397_v2  ;;  %v743_v29 = vmul.f32 %v5323_v12, %v737_v59  ;;  %v779_v44 = vadd.f32 %v5348_v30, %v773_v7  ;;  %6806 = vst [vmem:[#allocation58_spill] sm:$0xff] %v5413_v62  ;;  %v5427_v7 = vstv %s5342_s21  ;;  %v2272_v12 = vld [vmem:[%s4758_s22 + $0x328] sm:$0xff] }
  0x9f   : > { %v845_v43 = vmul.f32 %v5394_v46, %v4998_v22  ;;  %v851_v28 = vmul.f32 %v5010_v26, %v5397_v2  ;;  %v819_v45 = vadd.f32 %v815_v36, %v809_v40  ;;  %v861_v53 = vmul.f32 %v5025_v31, %v5400_v49  ;;  %6807 = vst [vmem:[#allocation59_spill] sm:$0xff] %v5418_v32  ;;  %v2881_v30 = vld [vmem:[%s4758_s22 + $0x4a8] sm:$0xff] }
  0xa0   : > { %v747_v36 = vadd.f32 %v743_v29, %v701_v34  ;;  %v783_v40 = vmax.f32 %v779_v44, 0.0  ;;  %6808 = vst [vmem:[#allocation60_spill] sm:$0xff] %v5427_v7  ;;  %v891_v34 = vmul.f32 %v5427_v7, %v4998_v22  ;;  %v5442_v29 = vstv %s5358_s24 }
  0xa1   : > { %4297 = vmatmul.mubr.msk.f32.gmra.mrb[50].mxu0 %vm1096_vm1, %v2270_v58  ;;  %4371 = vmatmul.mubr.msk.f32.gmra.mrb[50].mxu1 %vm1096_vm1, %v2879_v60  ;;  %v855_v59 = vadd.f32 %v851_v28, %v845_v43  ;;  %v825_v58 = vadd.f32 %v5377_v48, %v819_v45  ;;  %v5439_v60 = vstv %s5356_s12  ;;  %6810 = vst [vmem:[#allocation62_spill] sm:$0xff] %v5442_v29  ;;  %v5456_v7 = vstv %s5366_s17  ;;  %s4637_s12 = smov [#allocation5]  }
  0xa2   : > { %4299 = vmatprep.mubr.msk.f32.mxu0 %vm1096_vm1, %v2271_v37  ;;  %4373 = vmatprep.mubr.msk.f32.mxu1 %vm1096_vm1, %v2880_v13  ;;  %6809 = vst [vmem:[#allocation61_spill] sm:$0xff] %v5439_v60  ;;  %v2273_v37 = vld [vmem:[%s4758_s22 + $0x330] sm:$0xff]  ;;  %v789_v44 = vmul.f32 %v5369_v63, %v783_v40  ;;  %v897_v28 = vmul.f32 %v5010_v26, %v5439_v60  ;;  %6811 = vst [vmem:[#allocation63_spill] sm:$0xff] %v5456_v7  ;;  %v5459_v49 = vstv %s5379_s23  ;;  %v2883_v63 = vld [vmem:[%s4758_s22 + $0x4b8] sm:$0xff]  ;;  %s4556_s24 = sshll.u32 %s4637_s12, 4  ;;  %s4557_s24 = int_to_ptr.vmem [resolvable:$false] %s4556_s24 }
  0xa3   : > { %v2882_v13 = vld [vmem:[%s4758_s22 + $0x4b0] sm:$0xff]  ;;  %v865_v43 = vadd.f32 %v861_v53, %v855_v59  ;;  %v907_v45 = vmul.f32 %v5025_v31, %v5442_v29  ;;  %v829_v48 = vmax.f32 %v825_v58, 0.0  ;;  %6812 = vst [vmem:[#allocation64_spill] sm:$0xff] %v5459_v49  ;;  %v5462_v2 = vstv %s5381_s27  ;;  %v2274_v29 = vld [vmem:[%s4758_s22 + $0x338] sm:$0xff]  ;;  %s4558_s17 = scalar_lea.vmem %s4557_s24, 3072 }
  0xa4   : > { %6813 = vst [vmem:[#allocation65_spill] sm:$0xff] %v5462_v2  ;;  %v793_v53 = vadd.f32 %v789_v44, %v747_v36  ;;  %v901_v59 = vadd.f32 %v897_v28, %v891_v34  ;;  %v5470_v58 = vstv %s5388_s0  ;;  %v5484_v34 = vstv %s5402_s1  ;;  %v2275_v44 = vld [vmem:[%s4758_s22 + $0x340] sm:$0xff] }
  0xa5   : > { %4300 = vmatmul.mubr.msk.f32.gmra.mrb[52].mxu0 %vm1096_vm1, %v2272_v12  ;;  %4374 = vmatmul.mubr.msk.f32.gmra.mrb[52].mxu1 %vm1096_vm1, %v2881_v30  ;;  %v871_v40 = vadd.f32 %v5418_v32, %v865_v43  ;;  %6814 = vst [vmem:[#allocation66_spill] sm:$0xff] %v5470_v58  ;;  %v835_v12 = vmul.f32 %v5413_v62, %v829_v48  ;;  %6815 = vst [vmem:[#allocation67_spill] sm:$0xff] %v5484_v34  ;;  %v5491_v62 = vstv %s5420_s2 }
  0xa6   : > { %4302 = vmatprep.mubr.msk.f32.mxu0 %vm1096_vm1, %v2273_v37  ;;  %4376 = vmatprep.mubr.msk.f32.mxu1 %vm1096_vm1, %v2882_v13  ;;  %v937_v30 = vmul.f32 %v5462_v2, %v4998_v22  ;;  %v943_v36 = vmul.f32 %v5010_v26, %v5470_v58  ;;  %v2884_v37 = vld [vmem:[%s4758_s22 + $0x4c0] sm:$0xff]  ;;  %v911_v13 = vadd.f32 %v907_v45, %v901_v59  ;;  %v5494_v2 = vstv %s5422_s19  ;;  %v2276_v58 = vld [vmem:[%s4758_s22 + $0x348] sm:$0xff] }
  0xa7   : > { %v875_v43 = vmax.f32 %v871_v40, 0.0  ;;  %v953_v28 = vmul.f32 %v5025_v31, %v5484_v34  ;;  %v839_v32 = vadd.f32 %v835_v12, %v793_v53  ;;  %6816 = vst [vmem:[#allocation68_spill] sm:$0xff] %v5491_v62  ;;  %6817 = vst [vmem:[#allocation69_spill] sm:$0xff] %v5494_v2  ;;  %v2885_v45 = vld [vmem:[%s4758_s22 + $0x4c8] sm:$0xff]  ;;  %v5501_v40 = vld [vmem:[%s4945_s15] sm:$0xff]  ;;  %v983_v12 = vmul.f32 %v5494_v2, %v4998_v22 }
  0xa8   : > { %v947_v48 = vadd.f32 %v943_v36, %v937_v30  ;;  %v917_v59 = vadd.f32 %v5459_v49, %v911_v13  ;;  %v5508_v30 = vstv %s5429_s28  ;;  %v5521_v36 = vstv %s5444_s26  ;;  %v2277_v49 = vld [vmem:[%s4758_s22 + $0x350] sm:$0xff] }
  0xa9   : > { %4303 = vmatmul.mubr.msk.f32.gmra.mrb[54].mxu0 %vm1096_vm1, %v2274_v29  ;;  %4377 = vmatmul.mubr.msk.f32.gmra.mrb[54].mxu1 %vm1096_vm1, %v2883_v63  ;;  %v881_v53 = vmul.f32 %v5456_v7, %v875_v43  ;;  %6818 = vst [vmem:[#allocation70_spill] sm:$0xff] %v5508_v30  ;;  %v5515_v63 = vld [vmem:[%s4945_s15 + $0x20] sm:$0xff]  ;;  %6819 = vst [vmem:[#allocation71_spill] sm:$0xff] %v5521_v36  ;;  %v989_v22 = vmul.f32 %v5010_v26, %v5508_v30  ;;  %v5526_v13 = vstv %s5446_s29  ;;  %v2886_v7 = vld [vmem:[%s4758_s22 + $0x4d0] sm:$0xff] }
  0xaa   : > { %4305 = vmatprep.mubr.msk.f32.mxu0 %vm1096_vm1, %v2275_v44  ;;  %4379 = vmatprep.mubr.msk.f32.mxu1 %vm1096_vm1, %v2884_v37  ;;  %v5518_v29 = vld [vmem:[%s4945_s15 + $0x40] sm:$0xff]  ;;  %v957_v43 = vadd.f32 %v953_v28, %v947_v48  ;;  %6820 = vst [vmem:[#allocation72_spill] sm:$0xff] %v5526_v13  ;;  %v921_v44 = vmax.f32 %v917_v59, 0.0  ;;  %v999_v37 = vmul.f32 %v5025_v31, %v5526_v13  ;;  %v5534_v60 = vstv %s5464_s30  ;;  %v2887_v59 = vld [vmem:[%s4758_s22 + $0x4d8] sm:$0xff] }
  0xab   : > { %v885_v2 = vadd.f32 %v881_v53, %v839_v32  ;;  %6821 = vst [vmem:[#allocation73_spill] sm:$0xff] %v5534_v60  ;;  %v993_v46 = vadd.f32 %v989_v22, %v983_v12  ;;  %v292_v26 = vmul.f32 %v4930_v3, %v5501_v40  ;;  %v5542_v28 = vstv %s5472_s5  ;;  %v2278_v53 = vld [vmem:[%s4758_s22 + $0x358] sm:$0xff]  ;;  %v2279_v22 = vld [vmem:[%s4758_s22 + $0x360] sm:$0xff] }
  0xac   : > { %v963_v34 = vadd.f32 %v5491_v62, %v957_v43  ;;  %v927_v32 = vmul.f32 %v5521_v36, %v921_v44  ;;  %6822 = vst [vmem:[#allocation74_spill] sm:$0xff] %v5542_v28  ;;  %v298_v31 = vmul.f32 %v5515_v63, %v4933_v4  ;;  %v308_v48 = vmul.f32 %v5518_v29, %v4936_v5  ;;  %v2888_v44 = vld [vmem:[%s4758_s22 + $0x4e0] sm:$0xff] }
  0xad   : > { %4306 = vmatmul.mubr.msk.f32.gmra.mrb[56].mxu0 %vm1096_vm1, %v2276_v58  ;;  %4380 = vmatmul.mubr.msk.f32.gmra.mrb[56].mxu1 %vm1096_vm1, %v2885_v45  ;;  %v1003_v58 = vadd.f32 %v999_v37, %v993_v46  ;;  %v338_v45 = vmul.f32 %v4951_v9, %v5501_v40  ;;  %v344_v43 = vmul.f32 %v5515_v63, %v4954_v10 }
  0xae   : > { %4308 = vmatprep.mubr.msk.f32.mxu0 %vm1096_vm1, %v2277_v49  ;;  %4382 = vmatprep.mubr.msk.f32.mxu1 %vm1096_vm1, %v2886_v7  ;;  %v967_v12 = vmax.f32 %v963_v34, 0.0  ;;  %v931_v36 = vadd.f32 %v927_v32, %v885_v2  ;;  %v302_v62 = vadd.f32 %v298_v31, %v292_v26  ;;  %v354_v49 = vmul.f32 %v5518_v29, %v4957_v11 }
  0xaf   : > { %v384_v7 = vmul.f32 %v4969_v15, %v5501_v40  ;;  %v1009_v34 = vadd.f32 %v5542_v28, %v1003_v58  ;;  %v348_v37 = vadd.f32 %v344_v43, %v338_v45  ;;  %v390_v10 = vmul.f32 %v5515_v63, %v4972_v16  ;;  %v2889_v58 = vld [vmem:[%s4758_s22 + $0x4e8] sm:$0xff]  ;;  %v2890_v28 = vld [vmem:[%s4758_s22 + $0x4f0] sm:$0xff] }
  0xb0   : > { %v973_v46 = vmul.f32 %v5534_v60, %v967_v12  ;;  %v5569_v2 = vstv %s5510_s6  ;;  %v312_v26 = vadd.f32 %v308_v48, %v302_v62  ;;  %v400_v32 = vmul.f32 %v5518_v29, %v4990_v20  ;;  %v2280_v12 = vld [vmem:[%s4758_s22 + $0x368] sm:$0xff] }
  0xb1   : > { %4309 = vmatmul.mubr.msk.f32.gmra.mrb[58].mxu0 %vm1096_vm1, %v2278_v53  ;;  %4383 = vmatmul.mubr.msk.f32.gmra.mrb[58].mxu1 %vm1096_vm1, %v2887_v59  ;;  %v430_v31 = vmul.f32 %v4975_v17, %v5501_v40  ;;  %v1013_v43 = vmax.f32 %v1009_v34, 0.0  ;;  %v358_v53 = vadd.f32 %v354_v49, %v348_v37  ;;  %v394_v60 = vadd.f32 %v390_v10, %v384_v7  ;;  %v2281_v59 = vld [vmem:[%s4758_s22 + $0x370] sm:$0xff] }
  0xb2   : > { %4311 = vmatprep.mubr.msk.f32.mxu0 %vm1096_vm1, %v2279_v22  ;;  %4385 = vmatprep.mubr.msk.f32.mxu1 %vm1096_vm1, %v2888_v44  ;;  %v977_v45 = vadd.f32 %v973_v46, %v931_v36  ;;  %v318_v62 = vadd.f32 %v4948_v8, %v312_v26  ;;  %v436_v48 = vmul.f32 %v5515_v63, %v5004_v24 }
  0xb3   : > { %v446_v22 = vmul.f32 %v5518_v29, %v5007_v25  ;;  %v476_v44 = vmul.f32 %v5049_v41, %v5501_v40  ;;  %v1019_v36 = vmul.f32 %v5569_v2, %v1013_v43  ;;  %v364_v49 = vadd.f32 %v4966_v14, %v358_v53 }
  0xb4   : > { %v404_v10 = vadd.f32 %v400_v32, %v394_v60  ;;  %v482_v7 = vmul.f32 %v5515_v63, %v5064_v50  ;;  %v322_v46 = vmax.f32 %v318_v62, 0.0  ;;  %v440_v34 = vadd.f32 %v436_v48, %v430_v31  ;;  %v2282_v60 = vld [vmem:[%s4758_s22 + $0x378] sm:$0xff]  ;;  %v2283_v50 = vld [vmem:[%s4758_s22 + $0x380] sm:$0xff] }
  0xb5   : > { %4312 = vmatmul.mubr.msk.f32.gmra.mrb[60].mxu0 %vm1096_vm1, %v2280_v12  ;;  %4386 = vmatmul.mubr.msk.f32.gmra.mrb[60].mxu1 %vm1096_vm1, %v2889_v58  ;;  %v492_v37 = vmul.f32 %v5518_v29, %v5067_v51  ;;  %v522_v26 = vmul.f32 %v5099_v6, %v5501_v40  ;;  %v2891_v32 = vld [vmem:[%s4758_s22 + $0x4f8] sm:$0xff]  ;;  %v368_v43 = vmax.f32 %v364_v49, 0.0  ;;  %v2892_v58 = vld [vmem:[%s4758_s22 + $0x500] sm:$0xff]  ;;  %v528_v48 = vmul.f32 %v5515_v63, %v5106_v27 }
  0xb6   : > { %4314 = vmatprep.mubr.msk.f32.mxu0 %vm1096_vm1, %v2281_v59  ;;  %4388 = vmatprep.mubr.msk.f32.mxu1 %vm1096_vm1, %v2890_v28  ;;  %v410_v53 = vadd.f32 %v4993_v21, %v404_v10  ;;  %v486_v12 = vadd.f32 %v482_v7, %v476_v44  ;;  %v328_v31 = vmul.f32 %v4984_v18, %v322_v46 }
  0xb7   : > { %v450_v62 = vadd.f32 %v446_v22, %v440_v34  ;;  %v538_v59 = vmul.f32 %v5518_v29, %v5127_v39  ;;  %v5610_v28 = vadd.f32 %v1019_v36, %v977_v45  ;;  %v374_v49 = vmul.f32 %v4987_v19, %v368_v43  ;;  %v2284_v45 = vld [vmem:[%s4758_s22 + $0x388] sm:$0xff]  ;;  %v2894_v43 = vld [vmem:[%s4758_s22 + $0x510] sm:$0xff] }
  0xb8   : > { %v414_v10 = vmax.f32 %v410_v53, 0.0  ;;  %v496_v44 = vadd.f32 %v492_v37, %v486_v12  ;;  %v532_v7 = vadd.f32 %v528_v48, %v522_v26  ;;  %v568_v46 = vmul.f32 %v5153_v54, %v5501_v40  ;;  %v2893_v36 = vld [vmem:[%s4758_s22 + $0x508] sm:$0xff] }
  0xb9   : > { %4315 = vmatmul.mubr.msk.f32.gmra.mrb[62].mxu0 %vm1096_vm1, %v2282_v60  ;;  %4389 = vmatmul.mubr.msk.f32.gmra.mrb[62].mxu1 %vm1096_vm1, %v2891_v32  ;;  %v456_v22 = vadd.f32 %v5034_v35, %v450_v62  ;;  %v378_v34 = vadd.f32 %v374_v49, %v328_v31  ;;  %v2285_v32 = vld [vmem:[%s4758_s22 + $0x390] sm:$0xff]  ;;  %v584_v12 = vmul.f32 %v5518_v29, %v5159_v57 }
  0xba   : > { %4317 = vmatprep.mubr.msk.f32.mxu0 %vm1096_vm1, %v2283_v50  ;;  %4391 = vmatprep.mubr.msk.f32.mxu1 %vm1096_vm1, %v2892_v58  ;;  %v420_v37 = vmul.f32 %v5001_v23, %v414_v10  ;;  %v502_v60 = vadd.f32 %v5091_v61, %v496_v44  ;;  %v542_v53 = vadd.f32 %v538_v59, %v532_v7  ;;  %v2286_v44 = vld [vmem:[%s4758_s22 + $0x398] sm:$0xff] }
  0xbb   : > { %v460_v26 = vmax.f32 %v456_v22, 0.0  ;;  %v574_v50 = vmul.f32 %v5515_v63, %v5156_v56  ;;  %v614_v31 = vmul.f32 %v5191_v33, %v5501_v40  ;;  %v620_v48 = vmul.f32 %v5515_v63, %v5203_v42  ;;  %v2895_v22 = vld [vmem:[%s4758_s22 + $0x518] sm:$0xff] }
  0xbc   : > { %v424_v58 = vadd.f32 %v420_v37, %v378_v34  ;;  %v506_v62 = vmax.f32 %v502_v60, 0.0  ;;  %v548_v49 = vadd.f32 %v5144_v52, %v542_v53  ;;  %v630_v37 = vmul.f32 %v5518_v29, %v5216_v47  ;;  %v2896_v60 = vld [vmem:[%s4758_s22 + $0x520] sm:$0xff]  ;;  %v6839_v47 = vld [vmem:[#allocation44_spill] sm:$0xff]  ;;  %v6840_v33 = vld [vmem:[#allocation53_spill] sm:$0xff] }
  0xbd   : > { %4318 = vmatmul.mubr.msk.f32.gmra.mrb[64].mxu0 %vm1096_vm1, %v2284_v45  ;;  %4392 = vmatmul.mubr.msk.f32.gmra.mrb[64].mxu1 %vm1096_vm1, %v2893_v36  ;;  %v466_v59 = vmul.f32 %v5076_v55, %v460_v26  ;;  %v578_v10 = vadd.f32 %v574_v50, %v568_v46  ;;  %v624_v34 = vadd.f32 %v620_v48, %v614_v31  ;;  %v2287_v45 = vld [vmem:[%s4758_s22 + $0x3a0] sm:$0xff]  ;;  %v6823_v50 = vld [vmem:[#allocation37_spill] sm:$0xff]  ;;  %v6824_v31 = vld [vmem:[#allocation40_spill] sm:$0xff] }
  0xbe   : > { %4320 = vmatprep.mubr.msk.f32.mxu0 %vm1096_vm1, %v2285_v32  ;;  %4394 = vmatprep.mubr.msk.f32.mxu1 %vm1096_vm1, %v2894_v43  ;;  %v512_v7 = vmul.f32 %v5124_v38, %v506_v62  ;;  %v552_v26 = vmax.f32 %v548_v49, 0.0  ;;  %v660_v32 = vmul.f32 %v5233_v0, %v5501_v40  ;;  %v666_v53 = vmul.f32 %v5515_v63, %v5236_v1  ;;  %v6826_v49 = vld [vmem:[#allocation29_spill] sm:$0xff]  ;;  %v6828_v1 = vld [vmem:[#allocation34_spill] sm:$0xff] }
  0xbf   : > { %v470_v36 = vadd.f32 %v466_v59, %v424_v58  ;;  %v588_v46 = vadd.f32 %v584_v12, %v578_v10  ;;  %v634_v43 = vadd.f32 %v630_v37, %v624_v34  ;;  %v676_v62 = vmul.f32 %v5518_v29, %v6823_v50  ;;  %v6825_v58 = vld [vmem:[#allocation28_spill] sm:$0xff]  ;;  %v2288_v34 = vld [vmem:[%s4758_s22 + $0x3a8] sm:$0xff]  ;;  %v6829_v0 = vld [vmem:[#allocation41_spill] sm:$0xff] }
  0xc0   : > { %v706_v48 = vmul.f32 %v6824_v31, %v5501_v40  ;;  %v558_v59 = vmul.f32 %v6825_v58, %v552_v26  ;;  %v2897_v37 = vld [vmem:[%s4758_s22 + $0x528] sm:$0xff]  ;;  %v5666_v50 = vstv %s5622_s7  ;;  %v670_v31 = vadd.f32 %v666_v53, %v660_v32 }
  0xc1   : > { %4321 = vmatmul.mubr.msk.f32.gmra.mrb[66].mxu0 %vm1096_vm1, %v2286_v44  ;;  %4395 = vmatmul.mubr.msk.f32.gmra.mrb[66].mxu1 %vm1096_vm1, %v2895_v22  ;;  %v516_v12 = vadd.f32 %v512_v7, %v470_v36  ;;  %v594_v10 = vadd.f32 %v6826_v49, %v588_v46  ;;  %6827 = vst [vmem:[#allocation75_spill] sm:$0xff] %v5666_v50  ;;  %v2289_v22 = vld [vmem:[%s4758_s22 + $0x3b0] sm:$0xff]  ;;  %v6830_v46 = vld [vmem:[#allocation42_spill] sm:$0xff] }
  0xc2   : > { %4323 = vmatprep.mubr.msk.f32.mxu0 %vm1096_vm1, %v2287_v45  ;;  %4397 = vmatprep.mubr.msk.f32.mxu1 %vm1096_vm1, %v2896_v60  ;;  %v640_v38 = vadd.f32 %v6828_v1, %v634_v43  ;;  %v712_v44 = vmul.f32 %v5515_v63, %v6829_v0  ;;  %v2898_v7 = vld [vmem:[%s4758_s22 + $0x530] sm:$0xff]  ;;  %v722_v45 = vmul.f32 %v5518_v29, %v6830_v46  ;;  %v6831_v60 = vld [vmem:[#allocation45_spill] sm:$0xff]  ;;  %v6832_v43 = vld [vmem:[#allocation47_spill] sm:$0xff] }
  0xc3   : > { %v562_v36 = vadd.f32 %v558_v59, %v516_v12  ;;  %v598_v26 = vmax.f32 %v594_v10, 0.0  ;;  %v752_v58 = vmul.f32 %v6831_v60, %v5501_v40  ;;  %v680_v52 = vadd.f32 %v676_v62, %v670_v31  ;;  %v6833_v12 = vld [vmem:[#allocation32_spill] sm:$0xff]  ;;  %v6835_v46 = vld [vmem:[#allocation50_spill] sm:$0xff]  ;;  %v2899_v62 = vld [vmem:[%s4758_s22 + $0x538] sm:$0xff] }
  0xc4   : > { %v644_v49 = vmax.f32 %v640_v38, 0.0  ;;  %v716_v32 = vadd.f32 %v712_v44, %v706_v48  ;;  %v758_v53 = vmul.f32 %v5515_v63, %v6832_v43  ;;  %v6834_v10 = vld [vmem:[#allocation48_spill] sm:$0xff]  ;;  %v798_v60 = vmul.f32 %v6835_v46, %v5501_v40  ;;  %v2290_v38 = vld [vmem:[%s4758_s22 + $0x3b8] sm:$0xff]  ;;  %v6836_v31 = vld [vmem:[#allocation38_spill] sm:$0xff] }
  0xc5   : > { %4324 = vmatmul.mubr.msk.f32.gmra.mrb[68].mxu0 %vm1096_vm1, %v2288_v34  ;;  %4398 = vmatmul.mubr.msk.f32.gmra.mrb[68].mxu1 %vm1096_vm1, %v2897_v37  ;;  %v604_v59 = vmul.f32 %v6833_v12, %v598_v26  ;;  %v768_v1 = vmul.f32 %v5518_v29, %v6834_v10  ;;  %v6837_v44 = vld [vmem:[#allocation39_spill] sm:$0xff]  ;;  %v2291_v37 = vld [vmem:[%s4758_s22 + $0x3c0] sm:$0xff]  ;;  %v1029_v26 = vadd.f32 %v5666_v50, %v5610_v28 }
  0xc6   : > { %4326 = vmatprep.mubr.msk.f32.mxu0 %vm1096_vm1, %v2289_v22  ;;  %4400 = vmatprep.mubr.msk.f32.mxu1 %vm1096_vm1, %v2898_v7  ;;  %v650_v48 = vmul.f32 %v6836_v31, %v644_v49  ;;  %v686_v34 = vadd.f32 %v6837_v44, %v680_v52  ;;  %v726_v43 = vadd.f32 %v722_v45, %v716_v32  ;;  %v2900_v0 = vld [vmem:[%s4758_s22 + $0x540] sm:$0xff]  ;;  %v6838_v12 = vld [vmem:[#allocation51_spill] sm:$0xff] }
  0xc7   : > { %v608_v10 = vadd.f32 %v604_v59, %v562_v36  ;;  %v762_v46 = vadd.f32 %v758_v53, %v752_v58  ;;  %v804_v22 = vmul.f32 %v5515_v63, %v6838_v12  ;;  %v814_v52 = vmul.f32 %v5518_v29, %v6840_v33  ;;  %v6841_v49 = vld [vmem:[#allocation55_spill] sm:$0xff]  ;;  %v6843_v33 = vld [vmem:[#allocation56_spill] sm:$0xff] }
  0xc8   : > { %v690_v7 = vmax.f32 %v686_v34, 0.0  ;;  %v732_v42 = vadd.f32 %v6839_v47, %v726_v43  ;;  %v844_v45 = vmul.f32 %v6841_v49, %v5501_v40  ;;  %v2292_v32 = vld [vmem:[%s4758_s22 + $0x3c8] sm:$0xff]  ;;  %v850_v12 = vmul.f32 %v5515_v63, %v6843_v33  ;;  %v6844_v49 = vld [vmem:[#allocation57_spill] sm:$0xff]  ;;  %v6848_v33 = vld [vmem:[#allocation54_spill] sm:$0xff] }
  0xc9   : > { %4327 = vmatmul.mubr.msk.f32.gmra.mrb[70].mxu0 %vm1096_vm1, %v2290_v38  ;;  %4401 = vmatmul.mubr.msk.f32.gmra.mrb[70].mxu1 %vm1096_vm1, %v2899_v62  ;;  %v654_v28 = vadd.f32 %v650_v48, %v608_v10  ;;  %v772_v58 = vadd.f32 %v768_v1, %v762_v46  ;;  %v808_v36 = vadd.f32 %v804_v22, %v798_v60  ;;  %v2901_v43 = vld [vmem:[%s4758_s22 + $0x548] sm:$0xff]  ;;  %v2293_v62 = vld [vmem:[%s4758_s22 + $0x3d0] sm:$0xff]  ;;  %v6845_v46 = vld [vmem:[#allocation49_spill] sm:$0xff]  ;;  %4511 = vtanh.f32 %v1029_v26 }
  0xca   : > { %4329 = vmatprep.mubr.msk.f32.mxu0 %vm1096_vm1, %v2291_v37  ;;  %4403 = vmatprep.mubr.msk.f32.mxu1 %vm1096_vm1, %v2900_v0  ;;  %v6842_v53 = vld [vmem:[#allocation43_spill] sm:$0xff]  ;;  %v736_v34 = vmax.f32 %v732_v42, 0.0  ;;  %v860_v38 = vmul.f32 %v5518_v29, %v6844_v49  ;;  %v2902_v1 = vld [vmem:[%s4758_s22 + $0x550] sm:$0xff]  ;;  %v6846_v0 = vld [vmem:[#allocation46_spill] sm:$0xff]  ;;  %v854_v22 = vadd.f32 %v850_v12, %v844_v45 }
  0xcb   : > { %v696_v59 = vmul.f32 %v6842_v53, %v690_v7  ;;  %v778_v60 = vadd.f32 %v6845_v46, %v772_v58  ;;  %v818_v10 = vadd.f32 %v814_v52, %v808_v36  ;;  %v6847_v42 = vld [vmem:[#allocation60_spill] sm:$0xff]  ;;  %v2294_v52 = vld [vmem:[%s4758_s22 + $0x3d8] sm:$0xff] }
  0xcc   : > { %v742_v37 = vmul.f32 %v6846_v0, %v736_v34  ;;  %v890_v7 = vmul.f32 %v6847_v42, %v5501_v40  ;;  %v864_v45 = vadd.f32 %v860_v38, %v854_v22  ;;  %v6849_v58 = vld [vmem:[#allocation61_spill] sm:$0xff]  ;;  %v6854_v22 = vld [vmem:[#allocation58_spill] sm:$0xff] }
  0xcd   : > { %v700_v48 = vadd.f32 %v696_v59, %v654_v28  ;;  %4330 = vmatmul.mubr.msk.f32.gmra.mrb[72].mxu0 %vm1096_vm1, %v2292_v32  ;;  %4404 = vmatmul.mubr.msk.f32.gmra.mrb[72].mxu1 %vm1096_vm1, %v2901_v43  ;;  %v782_v49 = vmax.f32 %v778_v60, 0.0  ;;  %v824_v53 = vadd.f32 %v6848_v33, %v818_v10  ;;  %v2903_v28 = vld [vmem:[%s4758_s22 + $0x558] sm:$0xff]  ;;  %v896_v36 = vmul.f32 %v5515_v63, %v6849_v58  ;;  %v2295_v32 = vld [vmem:[%s4758_s22 + $0x3e0] sm:$0xff]  ;;  %v6850_v43 = vld [vmem:[#allocation52_spill] sm:$0xff] }
  0xce   : > { %4332 = vmatprep.mubr.msk.f32.mxu0 %vm1096_vm1, %v2293_v62  ;;  %4406 = vmatprep.mubr.msk.f32.mxu1 %vm1096_vm1, %v2902_v1  ;;  %v2904_v59 = vld [vmem:[%s4758_s22 + $0x560] sm:$0xff]  ;;  %v6851_v60 = vld [vmem:[#allocation59_spill] sm:$0xff]  ;;  %v998_v33 = vmul.f32 %v5518_v29, %v5526_v13 }
  0xcf   : > { %v746_v12 = vadd.f32 %v742_v37, %v700_v48  ;;  %v788_v26 = vmul.f32 %v6850_v43, %v782_v49  ;;  %v828_v34 = vmax.f32 %v824_v53, 0.0  ;;  %v870_v62 = vadd.f32 %v6851_v60, %v864_v45  ;;  %v6852_v10 = vld [vmem:[#allocation62_spill] sm:$0xff]  ;;  %v6853_v48 = vld [vmem:[#allocation65_spill] sm:$0xff]  ;;  %v2296_v60 = vld [vmem:[%s4758_s22 + $0x3e8] sm:$0xff] }
  0xd0   : > { %v900_v1 = vadd.f32 %v896_v36, %v890_v7  ;;  %v906_v42 = vmul.f32 %v5518_v29, %v6852_v10  ;;  %v936_v38 = vmul.f32 %v6853_v48, %v5501_v40  ;;  %v5740_v37 = vld [vmem:[%s4945_s15 + $0x18] sm:$0xff]  ;;  %v6855_v7 = vld [vmem:[#allocation66_spill] sm:$0xff]  ;;  %v6856_v58 = vld [vmem:[#allocation67_spill] sm:$0xff] }
  0xd1   : > { %4333 = vmatmul.mubr.msk.f32.gmra.mrb[74].mxu0 %vm1096_vm1, %v2294_v52  ;;  %4407 = vmatmul.mubr.msk.f32.gmra.mrb[74].mxu1 %vm1096_vm1, %v2903_v28  ;;  %v5743_v49 = vld [vmem:[%s4945_s15 + $0x38] sm:$0xff]  ;;  %v792_v53 = vadd.f32 %v788_v26, %v746_v12  ;;  %v834_v45 = vmul.f32 %v6854_v22, %v828_v34  ;;  %v942_v36 = vmul.f32 %v5515_v63, %v6855_v7  ;;  %v2905_v52 = vld [vmem:[%s4758_s22 + $0x568] sm:$0xff]  ;;  %v874_v28 = vmax.f32 %v870_v62, 0.0  ;;  %v2297_v34 = vld [vmem:[%s4758_s22 + $0x3f0] sm:$0xff] }
  0xd2   : > { %4335 = vmatprep.mubr.msk.f32.mxu0 %vm1096_vm1, %v2295_v32  ;;  %4409 = vmatprep.mubr.msk.f32.mxu1 %vm1096_vm1, %v2904_v59  ;;  %v5753_v48 = vld [vmem:[%s4945_s15 + $0x58] sm:$0xff]  ;;  %v910_v10 = vadd.f32 %v906_v42, %v900_v1  ;;  %v952_v43 = vmul.f32 %v5518_v29, %v6856_v58  ;;  %v2906_v22 = vld [vmem:[%s4758_s22 + $0x570] sm:$0xff]  ;;  %v988_v59 = vmul.f32 %v5515_v63, %v5508_v30  ;;  %v6858_v62 = vld [vmem:[#allocation63_spill] sm:$0xff] }
  0xd3   : > { %v6857_v12 = vld [vmem:[#allocation69_spill] sm:$0xff]  ;;  %v838_v7 = vadd.f32 %v834_v45, %v792_v53  ;;  %v946_v32 = vadd.f32 %v942_v36, %v936_v38  ;;  %v880_v42 = vmul.f32 %v6858_v62, %v874_v28  ;;  %v6859_v1 = vld [vmem:[#allocation64_spill] sm:$0xff]  ;;  %v295_v58 = vmul.f32 %v4930_v3, %v5740_v37 }
  0xd4   : > { %v982_v26 = vmul.f32 %v6857_v12, %v5501_v40  ;;  %v916_v0 = vadd.f32 %v6859_v1, %v910_v10  ;;  %v301_v40 = vmul.f32 %v5743_v49, %v4933_v4  ;;  %v311_v29 = vmul.f32 %v5753_v48, %v4936_v5  ;;  %v2298_v10 = vld [vmem:[%s4758_s22 + $0x3f8] sm:$0xff]  ;;  %v2299_v1 = vld [vmem:[%s4758_s22 + $0x400] sm:$0xff] }
  0xd5   : > { %4336 = vmatmul.mubr.msk.f32.gmra.mrb[76].mxu0 %vm1096_vm1, %v2296_v60  ;;  %4410 = vmatmul.mubr.msk.f32.gmra.mrb[76].mxu1 %vm1096_vm1, %v2905_v52  ;;  %v956_v63 = vadd.f32 %v952_v43, %v946_v32  ;;  %v2907_v53 = vld [vmem:[%s4758_s22 + $0x578] sm:$0xff]  ;;  %v884_v45 = vadd.f32 %v880_v42, %v838_v7  ;;  %v341_v62 = vmul.f32 %v4951_v9, %v5740_v37  ;;  %v4512_v60 = vpop.eup %4511  ;;  %v2908_v52 = vld [vmem:[%s4758_s22 + $0x580] sm:$0xff]  ;;  %v6860_v43 = vld [vmem:[#allocation68_spill] sm:$0xff] }
  0xd6   : > { %v992_v38 = vadd.f32 %v988_v59, %v982_v26  ;;  %4338 = vmatprep.mubr.msk.f32.mxu0 %vm1096_vm1, %v2297_v34  ;;  %4412 = vmatprep.mubr.msk.f32.mxu1 %vm1096_vm1, %v2906_v22  ;;  %v920_v36 = vmax.f32 %v916_v0, 0.0  ;;  %v305_v28 = vadd.f32 %v301_v40, %v295_v58  ;;  %v6861_v59 = vld [vmem:[#allocation14_spill] sm:$0xff]  ;;  %v357_v22 = vmul.f32 %v5753_v48, %v4957_v11  ;;  %v6862_v7 = vld [vmem:[#allocation71_spill] sm:$0xff]  ;;  %v2301_v11 = vld [vmem:[%s4758_s22 + $0x410] sm:$0xff] }
  0xd7   : > { %v962_v26 = vadd.f32 %v6860_v43, %v956_v63  ;;  %v347_v34 = vmul.f32 %v5743_v49, %v6861_v59  ;;  %v387_v42 = vmul.f32 %v4969_v15, %v5740_v37  ;;  %v393_v40 = vmul.f32 %v5743_v49, %v4972_v16  ;;  %v6863_v63 = vld [vmem:[#allocation74_spill] sm:$0xff] }
  0xd8   : > { %v1002_v32 = vadd.f32 %v998_v33, %v992_v38  ;;  %v926_v0 = vmul.f32 %v6862_v7, %v920_v36  ;;  %v315_v58 = vadd.f32 %v311_v29, %v305_v28  ;;  %v403_v36 = vmul.f32 %v5753_v48, %v4990_v20  ;;  %v2300_v29 = vld [vmem:[%s4758_s22 + $0x408] sm:$0xff] }
  0xd9   : > { %4339 = vmatmul.mubr.msk.f32.gmra.mrb[78].mxu0 %vm1096_vm1, %v2298_v10  ;;  %4413 = vmatmul.mubr.msk.f32.gmra.mrb[78].mxu1 %vm1096_vm1, %v2907_v53  ;;  %v966_v33 = vmax.f32 %v962_v26, 0.0  ;;  %v351_v43 = vadd.f32 %v347_v34, %v341_v62  ;;  %v2909_v28 = vld [vmem:[%s4758_s22 + $0x588] sm:$0xff]  ;;  %v1037_v7 = vadd.f32 1.0, %v4512_v60  ;;  %v397_v10 = vadd.f32 %v393_v40, %v387_v42  ;;  %v2910_v53 = vld [vmem:[%s4758_s22 + $0x590] sm:$0xff]  ;;  %v6864_v26 = vld [vmem:[#allocation73_spill] sm:$0xff] }
  0xda   : > { %v1008_v38 = vadd.f32 %v6863_v63, %v1002_v32  ;;  %4341 = vmatprep.mubr.msk.f32.mxu0 %vm1096_vm1, %v2299_v1  ;;  %4415 = vmatprep.mubr.msk.f32.mxu1 %vm1096_vm1, %v2908_v52  ;;  %v930_v16 = vadd.f32 %v926_v0, %v884_v45  ;;  %v321_v15 = vadd.f32 %v4948_v8, %v315_v58  ;;  %v2911_v58 = vld [vmem:[%s4758_s22 + $0x598] sm:$0xff] }
  0xdb   : > { %v972_v32 = vmul.f32 %v6864_v26, %v966_v33  ;;  %v361_v34 = vadd.f32 %v357_v22, %v351_v43  ;;  %v433_v1 = vmul.f32 %v4975_v17, %v5740_v37  ;;  %v407_v52 = vadd.f32 %v403_v36, %v397_v10  ;;  %v2303_v36 = vld [vmem:[%s4758_s22 + $0x420] sm:$0xff] }
  0xdc   : > { %v1012_v62 = vmax.f32 %v1008_v38, 0.0  ;;  %v325_v20 = vmax.f32 %v321_v15, 0.0  ;;  %v439_v45 = vmul.f32 %v5743_v49, %v5004_v24  ;;  %v449_v60 = vmul.f32 %v5753_v48, %v5007_v25  ;;  %v2302_v15 = vld [vmem:[%s4758_s22 + $0x418] sm:$0xff] }
  0xdd   : > { %4342 = vmatmul.mubr.msk.f32.gmra.mrb[80].mxu0 %vm1096_vm1, %v2300_v29  ;;  %4416 = vmatmul.mubr.msk.f32.gmra.mrb[80].mxu1 %vm1096_vm1, %v2909_v28  ;;  %v976_v0 = vadd.f32 %v972_v32, %v930_v16  ;;  %v367_v22 = vadd.f32 %v4966_v14, %v361_v34  ;;  %v1041_v42 = vmul.f32 2.0, %v1037_v7  ;;  %v413_v33 = vadd.f32 %v4993_v21, %v407_v52  ;;  %v2912_v29 = vld [vmem:[%s4758_s22 + $0x5a0] sm:$0xff] }
  0xde   : > { %v1018_v43 = vmul.f32 %v5569_v2, %v1012_v62  ;;  %4344 = vmatprep.mubr.msk.f32.mxu0 %vm1096_vm1, %v2301_v11  ;;  %4418 = vmatprep.mubr.msk.f32.mxu1 %vm1096_vm1, %v2910_v53  ;;  %v331_v40 = vmul.f32 %v4984_v18, %v325_v20  ;;  %v443_v38 = vadd.f32 %v439_v45, %v433_v1  ;;  %v6865_v11 = vld [vmem:[#allocation21_spill] sm:$0xff]  ;;  %v2304_v45 = vld [vmem:[%s4758_s22 + $0x428] sm:$0xff] }
  0xdf   : > { %v371_v28 = vmax.f32 %v367_v22, 0.0  ;;  %v479_v10 = vmul.f32 %v5049_v41, %v5740_v37  ;;  %v485_v53 = vmul.f32 %v5743_v49, %v6865_v11  ;;  %v417_v32 = vmax.f32 %v413_v33, 0.0  ;;  %v2914_v33 = vld [vmem:[%s4758_s22 + $0x5b0] sm:$0xff] }
  0xe0   : > { %v1022_v16 = vadd.f32 %v1018_v43, %v976_v0  ;;  %v453_v62 = vadd.f32 %v449_v60, %v443_v38  ;;  %v495_v20 = vmul.f32 %v5753_v48, %v5067_v51  ;;  %v525_v7 = vmul.f32 %v5099_v6, %v5740_v37  ;;  %v2913_v60 = vld [vmem:[%s4758_s22 + $0x5a8] sm:$0xff] }
  0xe1   : > { %4345 = vmatmul.mubr.msk.f32.gmra.mrb[82].mxu0 %vm1096_vm1, %v2302_v15  ;;  %4419 = vmatmul.mubr.msk.f32.gmra.mrb[82].mxu1 %vm1096_vm1, %v2911_v58  ;;  %v377_v1 = vmul.f32 %v4987_v19, %v371_v28  ;;  %v489_v52 = vadd.f32 %v485_v53, %v479_v10  ;;  %v5840_v0 = vadd.f32 -0.5, %v1041_v42  ;;  %v423_v43 = vmul.f32 %v5001_v23, %v417_v32  ;;  %v2305_v58 = vld [vmem:[%s4758_s22 + $0x430] sm:$0xff] }
  0xe2   : > { %v1028_v34 = vadd.f32 %v5666_v50, %v1022_v16  ;;  %4347 = vmatprep.mubr.msk.f32.mxu0 %vm1096_vm1, %v2303_v36  ;;  %4421 = vmatprep.mubr.msk.f32.mxu1 %vm1096_vm1, %v2912_v29  ;;  %v459_v22 = vadd.f32 %v5034_v35, %v453_v62  ;;  %v531_v15 = vmul.f32 %v5743_v49, %v5106_v27  ;;  %v2920_v35 = vld [vmem:[%s4758_s22 + $0x5e0] sm:$0xff] }
  0xe3   : > { %6866 = vst [vmem:[#allocation38_spill] sm:$0xff] %v5840_v0  ;;  %v381_v38 = vadd.f32 %v377_v1, %v331_v40  ;;  %v499_v36 = vadd.f32 %v495_v20, %v489_v52  ;;  %v541_v29 = vmul.f32 %v5753_v48, %v5127_v39  ;;  %v571_v28 = vmul.f32 %v5153_v54, %v5740_v37  ;;  %v2306_v20 = vld [vmem:[%s4758_s22 + $0x438] sm:$0xff] }
  0xe4   : > { %4513 = vtanh.f32 %v1028_v34  ;;  %v463_v16 = vmax.f32 %v459_v22, 0.0  ;;  %v535_v42 = vadd.f32 %v531_v15, %v525_v7  ;;  %v577_v10 = vmul.f32 %v5743_v49, %v5156_v56  ;;  %v2915_v7 = vld [vmem:[%s4758_s22 + $0x5b8] sm:$0xff]  ;;  %v6867_v15 = vld [vmem:[#allocation30_spill] sm:$0xff] }
  0xe5   : > { %4348 = vmatmul.mubr.msk.f32.gmra.mrb[84].mxu0 %vm1096_vm1, %v2304_v45  ;;  %4422 = vmatmul.mubr.msk.f32.gmra.mrb[84].mxu1 %vm1096_vm1, %v2913_v60  ;;  %v1551_v40 = vand.u32 2147483647, %v5840_v0  ;;  %v427_v53 = vadd.f32 %v423_v43, %v381_v38  ;;  %v505_v32 = vadd.f32 %v5091_v61, %v499_v36  ;;  %v587_v62 = vmul.f32 %v5753_v48, %v5159_v57  ;;  %v2307_v60 = vld [vmem:[%s4758_s22 + $0x440] sm:$0xff]  ;;  %v6868_v36 = vld [vmem:[#allocation31_spill] sm:$0xff]  ;;  %v6870_v57 = vld [vmem:[#allocation25_spill] sm:$0xff] }
  0xe6   : > { %4350 = vmatprep.mubr.msk.f32.mxu0 %vm1096_vm1, %v2305_v58  ;;  %4424 = vmatprep.mubr.msk.f32.mxu1 %vm1096_vm1, %v2914_v33  ;;  %v5865_v34 = vadd.f32 -1.0, %v5840_v0  ;;  %v469_v1 = vmul.f32 %v5076_v55, %v463_v16  ;;  %v545_v52 = vadd.f32 %v541_v29, %v535_v42  ;;  %v581_v45 = vadd.f32 %v577_v10, %v571_v28  ;;  %v2916_v43 = vld [vmem:[%s4758_s22 + $0x5c0] sm:$0xff]  ;;  %v6869_v33 = vld [vmem:[#allocation33_spill] sm:$0xff]  ;;  %v6871_v29 = vld [vmem:[#allocation35_spill] sm:$0xff] }
  0xe7   : > { %v509_v22 = vmax.f32 %v505_v32, 0.0  ;;  %v617_v38 = vmul.f32 %v6867_v15, %v5740_v37  ;;  %v623_v58 = vmul.f32 %v5743_v49, %v6868_v36  ;;  %v633_v61 = vmul.f32 %v5753_v48, %v6869_v33  ;;  %v6872_v10 = vld [vmem:[#allocation24_spill] sm:$0xff] }
  0xe8   : > { %v473_v0 = vadd.f32 %v469_v1, %v427_v53  ;;  %v551_v56 = vadd.f32 %v6870_v57, %v545_v52  ;;  %v591_v16 = vadd.f32 %v587_v62, %v581_v45  ;;  %v663_v42 = vmul.f32 %v6871_v29, %v5740_v37  ;;  %v6873_v36 = vld [vmem:[#allocation36_spill] sm:$0xff]  ;;  %v2308_v62 = vld [vmem:[%s4758_s22 + $0x448] sm:$0xff]  ;;  %v6874_v45 = vld [vmem:[#allocation29_spill] sm:$0xff] }
  0xe9   : > { %4351 = vmatmul.mubr.msk.f32.gmra.mrb[86].mxu0 %vm1096_vm1, %v2306_v20  ;;  %4425 = vmatmul.mubr.msk.f32.gmra.mrb[86].mxu1 %vm1096_vm1, %v2915_v7  ;;  %v5881_v28 = vsub.f32 1.0, %v1551_v40  ;;  %v515_v32 = vmul.f32 %v6872_v10, %v509_v22  ;;  %v627_v55 = vadd.f32 %v623_v58, %v617_v38  ;;  %v669_v53 = vmul.f32 %v5743_v49, %v6873_v36  ;;  %v2917_v1 = vld [vmem:[%s4758_s22 + $0x5c8] sm:$0xff]  ;;  %v6875_v20 = vld [vmem:[#allocation37_spill] sm:$0xff]  ;;  %v6876_v40 = vld [vmem:[#allocation40_spill] sm:$0xff] }
  0xea   : > { %4353 = vmatprep.mubr.msk.f32.mxu0 %vm1096_vm1, %v2307_v60  ;;  %4427 = vmatprep.mubr.msk.f32.mxu1 %vm1096_vm1, %v2916_v43  ;;  %v555_v52 = vmax.f32 %v551_v56, 0.0  ;;  %v597_v29 = vadd.f32 %v6874_v45, %v591_v16  ;;  %v679_v7 = vmul.f32 %v5753_v48, %v6875_v20  ;;  %v709_v57 = vmul.f32 %v6876_v40, %v5740_v37  ;;  %v2309_v22 = vld [vmem:[%s4758_s22 + $0x450] sm:$0xff]  ;;  %v6877_v60 = vld [vmem:[#allocation41_spill] sm:$0xff]  ;;  %v6879_v16 = vld [vmem:[#allocation42_spill] sm:$0xff] }
  0xeb   : > { %v2918_v38 = vld [vmem:[%s4758_s22 + $0x5d0] sm:$0xff]  ;;  %v519_v58 = vadd.f32 %v515_v32, %v473_v0  ;;  %v637_v10 = vadd.f32 %v633_v61, %v627_v55  ;;  %v673_v36 = vadd.f32 %v669_v53, %v663_v42  ;;  %v715_v43 = vmul.f32 %v5743_v49, %v6877_v60  ;;  %v6880_v20 = vld [vmem:[#allocation45_spill] sm:$0xff]  ;;  %v6881_v61 = vld [vmem:[#allocation34_spill] sm:$0xff] }
  0xec   : > { %v6878_v33 = vld [vmem:[#allocation28_spill] sm:$0xff]  ;;  %v601_v15 = vmax.f32 %v597_v29, 0.0  ;;  %v725_v45 = vmul.f32 %v5753_v48, %v6879_v16  ;;  %v755_v23 = vmul.f32 %v6880_v20, %v5740_v37  ;;  %v2310_v29 = vld [vmem:[%s4758_s22 + $0x458] sm:$0xff] }
  0xed   : > { %v561_v56 = vmul.f32 %v6878_v33, %v555_v52  ;;  %4354 = vmatmul.mubr.msk.f32.gmra.mrb[88].mxu0 %vm1096_vm1, %v2308_v62  ;;  %4428 = vmatmul.mubr.msk.f32.gmra.mrb[88].mxu1 %vm1096_vm1, %v2917_v1  ;;  %v643_v0 = vadd.f32 %v6881_v61, %v637_v10  ;;  %v683_v42 = vadd.f32 %v679_v7, %v673_v36  ;;  %v2919_v53 = vld [vmem:[%s4758_s22 + $0x5d8] sm:$0xff]  ;;  %v6882_v16 = vld [vmem:[#allocation32_spill] sm:$0xff]  ;;  %v6883_v33 = vld [vmem:[#allocation47_spill] sm:$0xff] }
  0xee   : > { %v4514_v40 = vpop.eup %4513  ;;  %v719_v32 = vadd.f32 %v715_v43, %v709_v57  ;;  %4356 = vmatprep.mubr.msk.f32.mxu0 %vm1096_vm1, %v2309_v22  ;;  %4430 = vmatprep.mubr.msk.f32.mxu1 %vm1096_vm1, %v2918_v38  ;;  %v607_v60 = vmul.f32 %v6882_v16, %v601_v15  ;;  %v761_v62 = vmul.f32 %v5743_v49, %v6883_v33  ;;  %v2311_v1 = vld [vmem:[%s4758_s22 + $0x460] sm:$0xff]  ;;  %v6884_v10 = vld [vmem:[#allocation48_spill] sm:$0xff] }
  0xef   : > { %v1036_v52 = vadd.f32 1.0, %v4514_v40  ;;  %v565_v20 = vadd.f32 %v561_v56, %v519_v58  ;;  %v647_v55 = vmax.f32 %v643_v0, 0.0  ;;  %v689_v36 = vadd.f32 %v6837_v44, %v683_v42  ;;  %v6885_v58 = vld [vmem:[#allocation50_spill] sm:$0xff]  ;;  %v6886_v0 = vld [vmem:[#allocation51_spill] sm:$0xff] }
  0xf0   : > { %v729_v57 = vadd.f32 %v725_v45, %v719_v32  ;;  %v771_v7 = vmul.f32 %v5753_v48, %v6884_v10  ;;  %v765_v40 = vadd.f32 %v761_v62, %v755_v23  ;;  %v801_v15 = vmul.f32 %v6885_v58, %v5740_v37  ;;  %v2312_v23 = vld [vmem:[%s4758_s22 + $0x468] sm:$0xff]  ;;  %v2313_v62 = vld [vmem:[%s4758_s22 + $0x470] sm:$0xff] }
  0xf1   : > { %v1040_v22 = vmul.f32 2.0, %v1036_v52  ;;  %v611_v38 = vadd.f32 %v607_v60, %v565_v20  ;;  %4357 = vmatmul.mubr.msk.f32.gmra.mrb[90].mxu0 %vm1096_vm1, %v2310_v29  ;;  %4431 = vmatmul.mubr.msk.f32.gmra.mrb[90].mxu1 %vm1096_vm1, %v2919_v53  ;;  %v653_v43 = vmul.f32 %v6836_v31, %v647_v55  ;;  %v693_v56 = vmax.f32 %v689_v36, 0.0  ;;  %v2921_v20 = vld [vmem:[%s4758_s22 + $0x5e8] sm:$0xff]  ;;  %v6888_v29 = vld [vmem:[#allocation53_spill] sm:$0xff]  ;;  %v2922_v36 = vld [vmem:[%s4758_s22 + $0x5f0] sm:$0xff] }
  0xf2   : > { %v735_v45 = vadd.f32 %v6839_v47, %v729_v57  ;;  %v807_v42 = vmul.f32 %v5743_v49, %v6886_v0  ;;  %4359 = vmatprep.mubr.msk.f32.mxu0 %vm1096_vm1, %v2311_v1  ;;  %4433 = vmatprep.mubr.msk.f32.mxu1 %vm1096_vm1, %v2920_v35  ;;  %v775_v32 = vadd.f32 %v771_v7, %v765_v40  ;;  %v6889_v55 = vld [vmem:[#allocation55_spill] sm:$0xff]  ;;  %v6891_v40 = vld [vmem:[#allocation56_spill] sm:$0xff] }
  0xf3   : > { %v5932_v60 = vadd.f32 -0.5, %v1040_v22  ;;  %v817_v53 = vmul.f32 %v5753_v48, %v6888_v29  ;;  %v847_v52 = vmul.f32 %v6889_v55, %v5740_v37  ;;  %v657_v57 = vadd.f32 %v653_v43, %v611_v38  ;;  %v6890_v0 = vld [vmem:[#allocation43_spill] sm:$0xff]  ;;  %v6892_v38 = vld [vmem:[#allocation46_spill] sm:$0xff] }
  0xf4   : > { %v699_v1 = vmul.f32 %v6890_v0, %v693_v56  ;;  %v739_v47 = vmax.f32 %v735_v45, 0.0  ;;  %v811_v35 = vadd.f32 %v807_v42, %v801_v15  ;;  %v781_v7 = vadd.f32 %v6845_v46, %v775_v32  ;;  %v2314_v15 = vld [vmem:[%s4758_s22 + $0x478] sm:$0xff]  ;;  %v6905_v46 = vld [vmem:[#allocation67_spill] sm:$0xff] }
  0xf5   : > { %6887 = vst [vmem:[#allocation39_spill] sm:$0xff] %v5932_v60  ;;  %v1550_v58 = vand.u32 2147483647, %v5932_v60  ;;  %v3826_v22 = vadd.f32 -1.0, %v5932_v60  ;;  %v853_v29 = vmul.f32 %v5743_v49, %v6891_v40  ;;  %4360 = vmatmul.mubr.msk.f32.gmra.mrb[92].mxu0 %vm1096_vm1, %v2312_v23  ;;  %4434 = vmatmul.mubr.msk.f32.gmra.mrb[92].mxu1 %vm1096_vm1, %v2921_v20  ;;  %v2923_v56 = vld [vmem:[%s4758_s22 + $0x5f8] sm:$0xff]  ;;  %v5954_v45 = vmax.f32 %v5881_v28, 0.0 }
  0xf6   : > { %v703_v55 = vadd.f32 %v699_v1, %v657_v57  ;;  %v745_v43 = vmul.f32 %v6892_v38, %v739_v47  ;;  %v821_v10 = vadd.f32 %v817_v53, %v811_v35  ;;  %4362 = vmatprep.mubr.msk.f32.mxu0 %vm1096_vm1, %v2313_v62  ;;  %4436 = vmatprep.mubr.msk.f32.mxu1 %vm1096_vm1, %v2922_v36  ;;  %v785_v32 = vmax.f32 %v781_v7, 0.0  ;;  %v6894_v20 = vld [vmem:[#allocation54_spill] sm:$0xff]  ;;  %v6895_v1 = vld [vmem:[#allocation57_spill] sm:$0xff]  ;;  %v6896_v53 = vld [vmem:[#allocation60_spill] sm:$0xff]  ;;  %s252_s22 = sand.u32 1, %s4618_s16  }
  0xf7   : > { %6893 = vst [vmem:[#allocation14_spill] sm:$0xff] %v5954_v45  ;;  %v2159_v42 = vand.u32 2147483647, %v3826_v22  ;;  %v857_v60 = vadd.f32 %v853_v29, %v847_v52  ;;  %v863_v47 = vmul.f32 %v5753_v48, %v6895_v1  ;;  %v893_v62 = vmul.f32 %v6896_v53, %v5740_v37  ;;  %v6898_v22 = vld [vmem:[#allocation52_spill] sm:$0xff]  ;;  %v6899_v29 = vld [vmem:[#allocation61_spill] sm:$0xff]  ;;  %v6902_v53 = vld [vmem:[#allocation66_spill] sm:$0xff] }
  0xf8   : > { %v749_v23 = vadd.f32 %v745_v43, %v703_v55  ;;  %v827_v57 = vadd.f32 %v6894_v20, %v821_v10  ;;  %v6897_v36 = vand.u32 2147483647, %v5865_v34  ;;  %v5965_v28 = vsub.f32 1.0, %v1550_v58  ;;  %v6900_v43 = vld [vmem:[#allocation62_spill] sm:$0xff]  ;;  %v6901_v34 = vld [vmem:[#allocation65_spill] sm:$0xff]  ;;  %v5977_v20 = vld [vmem:[%s4945_s15 + $0x10] sm:$0xff] }
  0xf9   : > { %v791_v7 = vmul.f32 %v6898_v22, %v785_v32  ;;  %v899_v55 = vmul.f32 %v5743_v49, %v6899_v29  ;;  %4363 = vmatmul.mubr.msk.f32.gmra.mrb[94].mxu0 %vm1096_vm1, %v2314_v15  ;;  %4437 = vmatmul.mubr.msk.f32.gmra.mrb[94].mxu1 %vm1096_vm1, %v2923_v56  ;;  %v867_v52 = vadd.f32 %v863_v47, %v857_v60  ;;  %v5980_v58 = vld [vmem:[%s4945_s15 + $0x30] sm:$0xff]  ;;  %v5982_v32 = vsub.f32 1.0, %v2159_v42  ;;  %v6903_v60 = vld [vmem:[#allocation58_spill] sm:$0xff]  ;;  %v6904_v47 = vld [vmem:[#allocation59_spill] sm:$0xff]  ;;  %s6438_s8 = smul.u32 96, %s252_s22 }
  0xfa   : > { %v5963_v35 = vsub.f32 1.0, %v6897_v36  ;;  %v831_v10 = vmax.f32 %v827_v57, 0.0  ;;  %v909_v45 = vmul.f32 %v5753_v48, %v6900_v43  ;;  %v939_v36 = vmul.f32 %v6901_v34, %v5740_v37  ;;  %v5987_v56 = vld [vmem:[%s4945_s15 + $0x50] sm:$0xff] }
  0xfb   : > { %v795_v22 = vadd.f32 %v791_v7, %v749_v23  ;;  %v903_v29 = vadd.f32 %v899_v55, %v893_v62  ;;  %v945_v15 = vmul.f32 %v5743_v49, %v6902_v53  ;;  %v873_v43 = vadd.f32 %v6904_v47, %v867_v52  ;;  %s6454_s9 = scalar_lea.vmem [#allocation5], %s6438_s8 }
  0xfc   : > { %v837_v57 = vmul.f32 %v6903_v60, %v831_v10  ;;  %v955_v34 = vmul.f32 %v5753_v48, %v6905_v46  ;;  %v985_v1 = vmul.f32 %v6857_v12, %v5740_v37  ;;  %v991_v23 = vmul.f32 %v5743_v49, %v5508_v30  ;;  %v6906_v60 = vld [vmem:[#allocation64_spill] sm:$0xff]  ;;  %v6909_v30 = vld [vmem:[#allocation15_spill] sm:$0xff]  ;;  %s3515_s10 = sshll.u32 %s6454_s9, 4  ;;  %s6546_s10 = int_to_ptr.vmem [resolvable:$true] %s3515_s10 }
  0xfd   : > { %v913_v40 = vadd.f32 %v909_v45, %v903_v29  ;;  %v949_v42 = vadd.f32 %v945_v15, %v939_v36  ;;  %v1001_v62 = vmul.f32 %v5753_v48, %v5526_v13  ;;  %v877_v55 = vmax.f32 %v873_v43, 0.0  ;;  %v6907_v29 = vld [vmem:[#allocation63_spill] sm:$0xff]  ;;  %s4552_s21 = scalar_lea.vmem %s6546_s10, 1536  ;;  %p4559_p0 = scmp.lt.s32.totalorder %s6546_s10, %s4557_s24 }
  0xfe   : > { %v841_v7 = vadd.f32 %v837_v57, %v795_v22  ;;  %v294_v10 = vmul.f32 %v4930_v3, %v5977_v20  ;;  %v300_v52 = vmul.f32 %v5980_v58, %v4933_v4  ;;  %v995_v12 = vadd.f32 %v991_v23, %v985_v1  ;;  %v6908_v57 = vld [vmem:[#allocation68_spill] sm:$0xff]  ;;  %p4553_p10 = scmp.ne.s32.totalorder %s6546_s10, %s4552_s21  ;;  %p4560_p1 = scmp.lt.s32.totalorder %s4558_s17, %s4552_s21 }
  0xff   : > { %v919_v46 = vadd.f32 %v6906_v60, %v913_v40  ;;  %v959_v53 = vadd.f32 %v955_v34, %v949_v42  ;;  %v310_v45 = vmul.f32 %v5987_v56, %v4936_v5  ;;  %v883_v36 = vmul.f32 %v6907_v29, %v877_v55  ;;  %v6910_v5 = vld [vmem:[#allocation16_spill] sm:$0xff]  ;;  %v6911_v55 = vld [vmem:[#allocation71_spill] sm:$0xff]  ;;  %v6912_v29 = vld [vmem:[#allocation17_spill] sm:$0xff] }
 0x100   : > { %v304_v15 = vadd.f32 %v300_v52, %v294_v10  ;;  %v340_v22 = vmul.f32 %v4951_v9, %v5977_v20  ;;  %v346_v43 = vmul.f32 %v5980_v58, %v6861_v59  ;;  %v1005_v4 = vadd.f32 %v1001_v62, %v995_v12  ;;  %p4554_p11 = pnand %p4553_p10, %p4705_p4  ;;  %p4561_p2 = por %p4560_p1, %p4559_p0 }
 0x101   : > { %v923_v3 = vmax.f32 %v919_v46, 0.0  ;;  %v965_v13 = vadd.f32 %v6908_v57, %v959_v53  ;;  %v356_v40 = vmul.f32 %v5987_v56, %v6909_v30  ;;  %v887_v1 = vadd.f32 %v883_v36, %v841_v7  ;;  %v6913_v53 = vld [vmem:[#allocation18_spill] sm:$0xff] }
 0x102   : > { %v314_v34 = vadd.f32 %v310_v45, %v304_v15  ;;  %v350_v42 = vadd.f32 %v346_v43, %v340_v22  ;;  %v386_v23 = vmul.f32 %v6910_v5, %v5977_v20  ;;  %v1011_v9 = vadd.f32 %v6863_v63, %v1005_v4  ;;  %p4555_p13 = pneg %p4554_p11 }
 0x103   : > { %v929_v10 = vmul.f32 %v6911_v55, %v923_v3  ;;  %v969_v52 = vmax.f32 %v965_v13, 0.0  ;;  %v392_v46 = vmul.f32 %v5980_v58, %v6912_v29  ;;  %v402_v30 = vmul.f32 %v5987_v56, %v6913_v53 }
 0x104   : > { %v320_v59 = vadd.f32 %v4948_v8, %v314_v34  ;;  %v360_v12 = vadd.f32 %v356_v40, %v350_v42  ;;  %v432_v62 = vmul.f32 %v4975_v17, %v5977_v20  ;;  %v1015_v36 = vmax.f32 %v1011_v9, 0.0  ;;  %p4562_p3 = pnand %p4561_p2, %p4555_p13 }
 0x105   : > { %v933_v7 = vadd.f32 %v929_v10, %v887_v1  ;;  %v975_v45 = vmul.f32 %v6864_v26, %v969_v52  ;;  %v396_v15 = vadd.f32 %v392_v46, %v386_v23  ;;  %v438_v29 = vmul.f32 %v5980_v58, %v5004_v24  ;;  %v6914_v46 = vld [vmem:[#allocation20_spill] sm:$0xff] }
 0x106   : > { %v324_v13 = vmax.f32 %v320_v59, 0.0  ;;  %v366_v22 = vadd.f32 %v4966_v14, %v360_v12  ;;  %v448_v8 = vmul.f32 %v5987_v56, %v5007_v25  ;;  %v1021_v3 = vmul.f32 %v5569_v2, %v1015_v36  ;;  %v6918_v36 = vld [vmem:[#allocation23_spill] sm:$0xff] }
 0x107   : > { %v979_v43 = vadd.f32 %v975_v45, %v933_v7  ;;  %v406_v4 = vadd.f32 %v402_v30, %v396_v15  ;;  %v478_v17 = vmul.f32 %v5049_v41, %v5977_v20  ;;  %v442_v34 = vadd.f32 %v438_v29, %v432_v62  ;;  %v6916_v30 = vld [vmem:[#allocation26_spill] sm:$0xff]  ;;  %v6917_v62 = vld [vmem:[#allocation27_spill] sm:$0xff] }
 0x108   : > { %v330_v40 = vmul.f32 %v4984_v18, %v324_v13  ;;  %v370_v1 = vmax.f32 %v366_v22, 0.0  ;;  %v484_v14 = vmul.f32 %v5980_v58, %v6865_v11  ;;  %v494_v25 = vmul.f32 %v5987_v56, %v5067_v51 }
 0x109   : > { %v1025_v42 = vadd.f32 %v1021_v3, %v979_v43  ;;  %v412_v24 = vadd.f32 %v4993_v21, %v406_v4  ;;  %v524_v5 = vmul.f32 %v5099_v6, %v5977_v20  ;;  %v452_v10 = vadd.f32 %v448_v8, %v442_v34  ;;  %v6920_v8 = vld [vmem:[#allocation31_spill] sm:$0xff]  ;;  %v6921_v3 = vld [vmem:[#allocation33_spill] sm:$0xff] }
 0x10a   : > { %v376_v23 = vmul.f32 %v4987_v19, %v370_v1  ;;  %v488_v41 = vadd.f32 %v484_v14, %v478_v17  ;;  %v530_v18 = vmul.f32 %v5980_v58, %v5106_v27  ;;  %v540_v11 = vmul.f32 %v5987_v56, %v5127_v39  ;;  %v6915_v19 = vld [vmem:[#allocation19_spill] sm:$0xff]  ;;  %v6922_v17 = vld [vmem:[#allocation22_spill] sm:$0xff]  ;;  %v6923_v34 = vld [vmem:[#allocation25_spill] sm:$0xff] }
 0x10b   : > { %v1031_v52 = vadd.f32 %v5666_v50, %v1025_v42  ;;  %v416_v9 = vmax.f32 %v412_v24, 0.0  ;;  %v570_v21 = vmul.f32 %v5153_v54, %v5977_v20  ;;  %v458_v59 = vadd.f32 %v6914_v46, %v452_v10  ;;  %v6919_v54 = vld [vmem:[#allocation30_spill] sm:$0xff]  ;;  %v6924_v42 = vld [vmem:[#allocation35_spill] sm:$0xff]  ;;  %v6926_v46 = vld [vmem:[#allocation24_spill] sm:$0xff] }
 0x10c   : > { %v380_v51 = vadd.f32 %v376_v23, %v330_v40  ;;  %v498_v6 = vadd.f32 %v494_v25, %v488_v41  ;;  %v534_v12 = vadd.f32 %v530_v18, %v524_v5  ;;  %v576_v27 = vmul.f32 %v5980_v58, %v6916_v30  ;;  %v6925_v18 = vld [vmem:[#allocation36_spill] sm:$0xff] }
 0x10d   : > { %4515 = vtanh.f32 %v1031_v52  ;;  %v422_v53 = vmul.f32 %v6915_v19, %v416_v9  ;;  %v586_v7 = vmul.f32 %v5987_v56, %v6917_v62  ;;  %v462_v45 = vmax.f32 %v458_v59, 0.0  ;;  %v6079_v19 = vld [vmem:[%s4945_s15 + $0x8] sm:$0xff] }
 0x10e   : > { %v504_v39 = vadd.f32 %v6918_v36, %v498_v6  ;;  %v544_v15 = vadd.f32 %v540_v11, %v534_v12  ;;  %v616_v13 = vmul.f32 %v6919_v54, %v5977_v20  ;;  %v580_v29 = vadd.f32 %v576_v27, %v570_v21  ;;  %v6927_v6 = vld [vmem:[#allocation37_spill] sm:$0xff]  ;;  %6928 = vst [vmem:[#allocation74_spill] sm:$0xff] %v6079_v19  ;;  %v6930_v36 = vld [vmem:[#allocation40_spill] sm:$0xff] }
 0x10f   : > { %v426_v22 = vadd.f32 %v422_v53, %v380_v51  ;;  %v622_v43 = vmul.f32 %v5980_v58, %v6920_v8  ;;  %v632_v4 = vmul.f32 %v5987_v56, %v6921_v3  ;;  %v468_v40 = vmul.f32 %v6922_v17, %v462_v45  ;;  %v6929_v27 = vld [vmem:[#allocation29_spill] sm:$0xff]  ;;  %v6097_v3 = vld [vmem:[%s4945_s15] sm:$0xff] }
 0x110   : > { %v508_v1 = vmax.f32 %v504_v39, 0.0  ;;  %v550_v14 = vadd.f32 %v6923_v34, %v544_v15  ;;  %v662_v24 = vmul.f32 %v6924_v42, %v5977_v20  ;;  %v4147_v25 = vpop.f32.mrb[0].mxu0  ;;  %v4221_v5 = vpop.f32.mrb[0].mxu1  ;;  %v6068_v23 = vmax.f32 %v5963_v35, 0.0  ;;  %6933 = vst [vmem:[#allocation73_spill] sm:$0xff] %v6097_v3 }
 0x111   : > { %v590_v10 = vadd.f32 %v586_v7, %v580_v29  ;;  %v626_v41 = vadd.f32 %v622_v43, %v616_v13  ;;  %v668_v52 = vmul.f32 %v5980_v58, %v6925_v18  ;;  %v1311_v9 = vpop.f32.mrb[1].mxu0  ;;  %v1916_v11 = vpop.f32.mrb[1].mxu1  ;;  %v6073_v21 = vmax.f32 %v5965_v28, 0.0  ;;  %v6932_v43 = vld [vmem:[#allocation41_spill] sm:$0xff] }
 0x112   : > { %v472_v51 = vadd.f32 %v468_v40, %v426_v22  ;;  %v514_v59 = vmul.f32 %v6926_v46, %v508_v1  ;;  %v678_v12 = vmul.f32 %v5987_v56, %v6927_v6  ;;  %v6082_v35 = vmul.f32 %v6079_v19, %v4147_v25  ;;  %v6931_v22 = vld [vmem:[#allocation28_spill] sm:$0xff]  ;;  %v6935_v6 = vld [vmem:[#allocation45_spill] sm:$0xff] }
 0x113   : > { %v6085_v53 = vmax.f32 %v5982_v32, 0.0  ;;  %v554_v30 = vmax.f32 %v550_v14, 0.0  ;;  %v596_v62 = vadd.f32 %v6929_v27, %v590_v10  ;;  %v636_v7 = vadd.f32 %v632_v4, %v626_v41  ;;  %v6934_v10 = vld [vmem:[#allocation42_spill] sm:$0xff] }
 0x114   : > { %v518_v28 = vadd.f32 %v514_v59, %v472_v51  ;;  %v672_v45 = vadd.f32 %v668_v52, %v662_v24  ;;  %v708_v39 = vmul.f32 %v6930_v36, %v5977_v20  ;;  %v6091_v15 = vmul.f32 %v6079_v19, %v4221_v5  ;;  %v4150_v54 = vpop.f32.mrb[2].mxu0  ;;  %v4224_v13 = vpop.f32.mrb[2].mxu1  ;;  %v6957_v19 = vld [vmem:[#allocation67_spill] sm:$0xff] }
 0x115   : > { %v560_v29 = vmul.f32 %v6931_v22, %v554_v30  ;;  %v600_v8 = vmax.f32 %v596_v62, 0.0  ;;  %v714_v32 = vmul.f32 %v5980_v58, %v6932_v43  ;;  %v6100_v17 = vmul.f32 %v6097_v3, %v1311_v9  ;;  %v1321_v40 = vpop.f32.mrb[3].mxu0  ;;  %v1926_v1 = vpop.f32.mrb[3].mxu1 }
 0x116   : > { %v6103_v4 = vmul.f32 %v6097_v3, %v1916_v11  ;;  %v642_v34 = vadd.f32 %v6881_v61, %v636_v7  ;;  %v682_v14 = vadd.f32 %v678_v12, %v672_v45  ;;  %v6107_v24 = vmul.f32 %v4150_v54, %v5740_v37  ;;  %v6128_v7 = vld [vmem:[%s4945_s15 + $0x28] sm:$0xff] }
 0x117   : > { %v4516_v42 = vpop.eup %4515  ;;  %v564_v25 = vadd.f32 %v560_v29, %v518_v28  ;;  %v606_v5 = vmul.f32 %v6882_v16, %v600_v8  ;;  %v724_v41 = vmul.f32 %v5987_v56, %v6934_v10  ;;  %v718_v11 = vadd.f32 %v714_v32, %v708_v39  ;;  %6936 = vst [vmem:[#allocation21_spill] sm:$0xff] %v6128_v7  ;;  %v6939_v8 = vld [vmem:[#allocation50_spill] sm:$0xff] }
 0x118   : > { %v1039_v18 = vadd.f32 1.0, %v4516_v42  ;;  %v646_v52 = vmax.f32 %v642_v34, 0.0  ;;  %v688_v9 = vadd.f32 %v6837_v44, %v682_v14  ;;  %v6114_v51 = vmul.f32 %v4224_v13, %v5740_v37  ;;  %v4153_v61 = vpop.f32.mrb[4].mxu0  ;;  %v4227_v46 = vpop.f32.mrb[4].mxu1  ;;  %v6940_v34 = vld [vmem:[#allocation44_spill] sm:$0xff]  ;;  %v6941_v42 = vld [vmem:[#allocation51_spill] sm:$0xff] }
 0x119   : > { %v610_v59 = vadd.f32 %v606_v5, %v564_v25  ;;  %v754_v12 = vmul.f32 %v6935_v6, %v5977_v20  ;;  %v760_v16 = vmul.f32 %v5980_v58, %v6883_v33  ;;  %v6121_v30 = vmul.f32 %v1321_v40, %v5977_v20  ;;  %v1331_v44 = vpop.f32.mrb[5].mxu0  ;;  %v1936_v62 = vpop.f32.mrb[5].mxu1  ;;  %v6937_v33 = vld [vmem:[#allocation48_spill] sm:$0xff]  ;;  %v6147_v5 = vld [vmem:[%s4945_s15 + $0x20] sm:$0xff] }
 0x11a   : > { %v6124_v27 = vmul.f32 %v1926_v1, %v5977_v20  ;;  %v1043_v28 = vmul.f32 2.0, %v1039_v18  ;;  %v652_v37 = vmul.f32 %v6836_v31, %v646_v52  ;;  %v6131_v45 = vmul.f32 %v6128_v7, %v4153_v61  ;;  %6942 = vst [vmem:[#allocation32_spill] sm:$0xff] %v6147_v5 }
 0x11b   : > { %v692_v36 = vmax.f32 %v688_v9, 0.0  ;;  %v728_v39 = vadd.f32 %v724_v41, %v718_v11  ;;  %v770_v54 = vmul.f32 %v5987_v56, %v6937_v33  ;;  %v6136_v13 = vmul.f32 %v6128_v7, %v4227_v46  ;;  %v6944_v33 = vld [vmem:[#allocation55_spill] sm:$0xff] }
 0x11c   : > { %v6138_v22 = vadd.f32 -0.5, %v1043_v28  ;;  %v764_v29 = vadd.f32 %v760_v16, %v754_v12  ;;  %v800_v31 = vmul.f32 %v6939_v8, %v5977_v20  ;;  %v4156_v43 = vpop.f32.mrb[6].mxu0  ;;  %v4230_v32 = vpop.f32.mrb[6].mxu1  ;;  %v656_v40 = vadd.f32 %v652_v37, %v610_v59  ;;  %v6943_v59 = vld [vmem:[#allocation53_spill] sm:$0xff] }
 0x11d   : > { %v698_v1 = vmul.f32 %v6890_v0, %v692_v36  ;;  %v734_v14 = vadd.f32 %v6940_v34, %v728_v39  ;;  %v806_v25 = vmul.f32 %v5980_v58, %v6941_v42  ;;  %v6150_v10 = vmul.f32 %v6147_v5, %v1331_v44  ;;  %v1341_v18 = vpop.f32.mrb[7].mxu0  ;;  %v1946_v52 = vpop.f32.mrb[7].mxu1 }
 0x11e   : > { %6938 = vst [vmem:[#allocation34_spill] sm:$0xff] %v6138_v22  ;;  %v6153_v41 = vmul.f32 %v6147_v5, %v1936_v62  ;;  %v1553_v9 = vand.u32 2147483647, %v6138_v22  ;;  %v3829_v11 = vadd.f32 -1.0, %v6138_v22  ;;  %v6158_v0 = vmul.f32 %v4156_v43, %v5743_v49 }
 0x11f   : > { %v6161_v61 = vmul.f32 %v4230_v32, %v5743_v49  ;;  %v738_v46 = vmax.f32 %v734_v14, 0.0  ;;  %v816_v6 = vmul.f32 %v5987_v56, %v6943_v59  ;;  %v774_v44 = vadd.f32 %v770_v54, %v764_v29  ;;  %v6945_v49 = vld [vmem:[#allocation56_spill] sm:$0xff]  ;;  %v6946_v14 = vld [vmem:[#allocation57_spill] sm:$0xff] }
 0x120   : > { %v1557_v12 = vsub.f32 1.0, %v1553_v9  ;;  %v2162_v16 = vand.u32 2147483647, %v3829_v11  ;;  %v810_v62 = vadd.f32 %v806_v25, %v800_v31  ;;  %v4159_v28 = vpop.f32.mrb[8].mxu0  ;;  %v4233_v37 = vpop.f32.mrb[8].mxu1  ;;  %v702_v36 = vadd.f32 %v698_v1, %v656_v40  ;;  %v6179_v1 = vld [vmem:[%s4945_s15 + $0x48] sm:$0xff] }
 0x121   : > { %v744_v39 = vmul.f32 %v6892_v38, %v738_v46  ;;  %v846_v8 = vmul.f32 %v6944_v33, %v5977_v20  ;;  %v852_v43 = vmul.f32 %v5980_v58, %v6945_v49  ;;  %v6171_v32 = vmul.f32 %v5980_v58, %v1341_v18  ;;  %v1351_v54 = vpop.f32.mrb[9].mxu0  ;;  %v1956_v29 = vpop.f32.mrb[9].mxu1  ;;  %6947 = vst [vmem:[#allocation47_spill] sm:$0xff] %v6179_v1  ;;  %v6948_v9 = vld [vmem:[#allocation49_spill] sm:$0xff]  ;;  %v6187_v11 = vld [vmem:[%s4945_s15 + $0x40] sm:$0xff] }
 0x122   : > { %v6174_v34 = vmul.f32 %v5980_v58, %v1946_v52  ;;  %v2166_v31 = vsub.f32 1.0, %v2162_v16  ;;  %v862_v40 = vmul.f32 %v5987_v56, %v6946_v14  ;;  %v1579_v38 = vmul.f32 %v6179_v1, %v4159_v28  ;;  %6949 = vst [vmem:[#allocation43_spill] sm:$0xff] %v6187_v11  ;;  %v6950_v16 = vld [vmem:[#allocation60_spill] sm:$0xff]  ;;  %v6951_v28 = vld [vmem:[#allocation61_spill] sm:$0xff] }
 0x123   : > { %v2188_v42 = vmul.f32 %v6179_v1, %v4233_v37  ;;  %v6183_v25 = vmax.f32 %v1557_v12, 0.0  ;;  %v780_v18 = vadd.f32 %v6948_v9, %v774_v44  ;;  %v1578_v52 = vmul.f32 %v6187_v11, %v1351_v54  ;;  %v6952_v12 = vld [vmem:[#allocation62_spill] sm:$0xff] }
 0x124   : > { %v820_v46 = vadd.f32 %v816_v6, %v810_v62  ;;  %v856_v59 = vadd.f32 %v852_v43, %v846_v8  ;;  %v892_v33 = vmul.f32 %v6950_v16, %v5977_v20  ;;  %v4162_v49 = vpop.f32.mrb[10].mxu0  ;;  %v4236_v14 = vpop.f32.mrb[10].mxu1  ;;  %v748_v22 = vadd.f32 %v744_v39, %v702_v36  ;;  %v6953_v62 = vld [vmem:[#allocation54_spill] sm:$0xff]  ;;  %v6954_v39 = vld [vmem:[#allocation52_spill] sm:$0xff] }
 0x125   : > { %v784_v5 = vmax.f32 %v780_v18, 0.0  ;;  %v898_v37 = vmul.f32 %v5980_v58, %v6951_v28  ;;  %v908_v1 = vmul.f32 %v5987_v56, %v6952_v12  ;;  %v2187_v44 = vmul.f32 %v6187_v11, %v1956_v29  ;;  %v6197_v9 = vpop.f32.mrb[11].mxu0  ;;  %v6199_v54 = vpop.f32.mrb[11].mxu1  ;;  %v6955_v28 = vld [vmem:[#allocation65_spill] sm:$0xff]  ;;  %v6956_v11 = vld [vmem:[#allocation66_spill] sm:$0xff] }
 0x126   : > { %v6201_v6 = vmax.f32 %v2166_v31, 0.0  ;;  %v826_v8 = vadd.f32 %v6953_v62, %v820_v46  ;;  %v866_v43 = vadd.f32 %v862_v40, %v856_v59  ;;  %v1581_v36 = vmul.f32 %v4162_v49, %v5753_v48  ;;  %v6958_v49 = vld [vmem:[#allocation69_spill] sm:$0xff] }
 0x127   : > { %v790_v18 = vmul.f32 %v6954_v39, %v784_v5  ;;  %v902_v16 = vadd.f32 %v898_v37, %v892_v33  ;;  %v938_v7 = vmul.f32 %v6955_v28, %v5977_v20  ;;  %v944_v3 = vmul.f32 %v5980_v58, %v6956_v11  ;;  %v6959_v33 = vld [vmem:[#allocation70_spill] sm:$0xff] }
 0x128   : > { %v830_v12 = vmax.f32 %v826_v8, 0.0  ;;  %v872_v29 = vadd.f32 %v6904_v47, %v866_v43  ;;  %v954_v31 = vmul.f32 %v5987_v56, %v6957_v19  ;;  %v4165_v50 = vpop.f32.mrb[12].mxu0  ;;  %v4239_v46 = vpop.f32.mrb[12].mxu1  ;;  %v984_v5 = vmul.f32 %v6958_v49, %v5977_v20  ;;  %v6960_v11 = vld [vmem:[#allocation58_spill] sm:$0xff] }
 0x129   : > { %v794_v40 = vadd.f32 %v790_v18, %v748_v22  ;;  %v912_v59 = vadd.f32 %v908_v1, %v902_v16  ;;  %v990_v37 = vmul.f32 %v5980_v58, %v6959_v33  ;;  %v1567_v62 = vadd.f32 %v4165_v50, %v6082_v35  ;;  %v1371_v8 = vpop.f32.mrb[13].mxu0  ;;  %v1976_v43 = vpop.f32.mrb[13].mxu1  ;;  %v6961_v50 = vld [vmem:[#allocation63_spill] sm:$0xff] }
 0x12a   : > { %v2176_v47 = vadd.f32 %v4239_v46, %v6091_v15  ;;  %v836_v39 = vmul.f32 %v6960_v11, %v830_v12  ;;  %v876_v28 = vmax.f32 %v872_v29, 0.0  ;;  %v1566_v19 = vadd.f32 %v6100_v17, %v1371_v8 }
 0x12b   : > { %v2175_v22 = vadd.f32 %v6103_v4, %v1976_v43  ;;  %v918_v1 = vadd.f32 %v6906_v60, %v912_v59  ;;  %v948_v18 = vadd.f32 %v944_v3, %v938_v7  ;;  %v1575_v16 = vadd.f32 %v6131_v45, %v1567_v62 }
 0x12c   : > { %v2184_v49 = vadd.f32 %v6136_v13, %v2176_v47  ;;  %v840_v33 = vadd.f32 %v836_v39, %v794_v40  ;;  %v882_v35 = vmul.f32 %v6961_v50, %v876_v28  ;;  %v1574_v15 = vadd.f32 %v6150_v10, %v1566_v19  ;;  %v4168_v12 = vpop.f32.mrb[14].mxu0  ;;  %v4242_v29 = vpop.f32.mrb[14].mxu1  ;;  %v6962_v10 = vld [vmem:[#allocation14_spill] sm:$0xff] }
 0x12d   : > { %v2183_v46 = vadd.f32 %v6153_v41, %v2175_v22  ;;  %v922_v11 = vmax.f32 %v918_v1, 0.0  ;;  %v958_v17 = vadd.f32 %v954_v31, %v948_v18  ;;  %v1583_v8 = vadd.f32 %v1579_v38, %v1575_v16  ;;  %v1381_v7 = vpop.f32.mrb[15].mxu0  ;;  %v1986_v45 = vpop.f32.mrb[15].mxu1  ;;  %v6964_v1 = vld [vmem:[#allocation72_spill] sm:$0xff] }
 0x12e   : > { %v2192_v4 = vadd.f32 %v2188_v42, %v2184_v49  ;;  %v1569_v60 = vadd.f32 %v4168_v12, %v6107_v24  ;;  %v2178_v3 = vadd.f32 %v4242_v29, %v6114_v51  ;;  %v2190_v13 = vmul.f32 %v4236_v14, %v5753_v48 }
 0x12f   : > { %v1582_v40 = vadd.f32 %v1578_v52, %v1574_v15  ;;  %v2191_v59 = vadd.f32 %v2187_v44, %v2183_v46  ;;  %v886_v62 = vadd.f32 %v882_v35, %v840_v33  ;;  %v1587_v47 = vmul.f32 %v1583_v8, %v6962_v10 }
 0x130   : > { %v2196_v41 = vmul.f32 %v2192_v4, %v6068_v23  ;;  %v1577_v43 = vadd.f32 %v6158_v0, %v1569_v60  ;;  %v2186_v38 = vadd.f32 %v6161_v61, %v2178_v3  ;;  %v928_v51 = vmul.f32 %v6911_v55, %v922_v11  ;;  %v4171_v48 = vpop.f32.mrb[16].mxu0  ;;  %v4245_v52 = vpop.f32.mrb[16].mxu1 }
 0x131   : > { %v1586_v42 = vmul.f32 %v1582_v40, %v6073_v21  ;;  %v2195_v24 = vmul.f32 %v2191_v59, %v6085_v53  ;;  %v964_v31 = vadd.f32 %v6908_v57, %v958_v17  ;;  %v994_v28 = vadd.f32 %v990_v37, %v984_v5  ;;  %v1391_v19 = vpop.f32.mrb[17].mxu0  ;;  %v1996_v22 = vpop.f32.mrb[17].mxu1  ;;  %v6966_v59 = vld [vmem:[#allocation75_spill] sm:$0xff] }
 0x132   : > { %v6239_v14 = vadd.f32 %v2196_v41, %v1587_v47  ;;  %v1585_v44 = vadd.f32 %v1581_v36, %v1577_v43  ;;  %v2194_v39 = vadd.f32 %v2190_v13, %v2186_v38  ;;  %v1000_v18 = vmul.f32 %v5987_v56, %v6964_v1  ;;  %v6272_v1 = vld [vmem:[%s4945_s15 + $0x18] sm:$0xff] }
 0x133   : > { %v6241_v0 = vadd.f32 %v2195_v24, %v1586_v42  ;;  %v968_v61 = vmax.f32 %v964_v31, 0.0  ;;  %v1568_v16 = vadd.f32 %v6121_v30, %v1381_v7  ;;  %v1580_v57 = vmul.f32 %v5987_v56, %v6197_v9  ;;  %v6967_v24 = vld [vmem:[#allocation74_spill] sm:$0xff]  ;;  %v6968_v31 = vld [vmem:[#allocation73_spill] sm:$0xff] }
 0x134   : > { %v1589_v55 = vmul.f32 %v1585_v44, %v6183_v25  ;;  %v2198_v49 = vmul.f32 %v2194_v39, %v6201_v6  ;;  %v2177_v36 = vadd.f32 %v6124_v27, %v1986_v45  ;;  %v932_v5 = vadd.f32 %v928_v51, %v886_v62  ;;  %v4174_v35 = vpop.f32.mrb[18].mxu0  ;;  %v4248_v15 = vpop.f32.mrb[18].mxu1 }
 0x135   : > { %6963 = vst [vmem:[#allocation46_spill] sm:$0xff] %v6241_v0  ;;  %v974_v37 = vmul.f32 %v6864_v26, %v968_v61  ;;  %v1004_v33 = vadd.f32 %v1000_v18, %v994_v28  ;;  %v1576_v50 = vadd.f32 %v6171_v32, %v1568_v16  ;;  %v2189_v30 = vmul.f32 %v5987_v56, %v6199_v54  ;;  %v1401_v12 = vpop.f32.mrb[19].mxu0  ;;  %v2006_v29 = vpop.f32.mrb[19].mxu1 }
 0x136   : > { %v6255_v46 = vadd.f32 %v2198_v49, %v1589_v55  ;;  %v2185_v9 = vadd.f32 %v6174_v34, %v2177_v36  ;;  %v1595_v51 = vmul.f32 %v6967_v24, %v4171_v48  ;;  %v2204_v44 = vmul.f32 %v6967_v24, %v4245_v52  ;;  %v6969_v48 = vld [vmem:[#allocation21_spill] sm:$0xff]  ;;  %v6970_v49 = vld [vmem:[#allocation32_spill] sm:$0xff] }
 0x137   : > { %v1010_v11 = vadd.f32 %v6863_v63, %v1004_v33  ;;  %v6259_v27 = vadd.f32 %v1580_v57, %v1576_v50  ;;  %v978_v26 = vadd.f32 %v974_v37, %v932_v5  ;;  %v2203_v39 = vmul.f32 %v6968_v31, %v1996_v22  ;;  %v6285_v5 = vld [vmem:[%s4945_s15 + $0x38] sm:$0xff] }
 0x138   : > { %6965 = vst [vmem:[#allocation59_spill] sm:$0xff] %v6255_v46  ;;  %v6261_v17 = vadd.f32 %v2189_v30, %v2185_v9  ;;  %v4177_v32 = vpop.f32.mrb[20].mxu0  ;;  %v4251_v4 = vpop.f32.mrb[20].mxu1  ;;  %v1597_v18 = vmul.f32 %v6272_v1, %v4174_v35  ;;  %v1596_v16 = vmul.f32 %v1401_v12, %v5977_v20  ;;  %v2206_v57 = vmul.f32 %v6272_v1, %v4248_v15  ;;  %v6971_v9 = vld [vmem:[#allocation47_spill] sm:$0xff] }
 0x139   : > { %v1014_v8 = vmax.f32 %v1010_v11, 0.0  ;;  %v1411_v60 = vpop.f32.mrb[21].mxu0  ;;  %v2016_v3 = vpop.f32.mrb[21].mxu1  ;;  %v6278_v55 = vmul.f32 %v2006_v29, %v5977_v20  ;;  %v2212_v22 = vmul.f32 %v6969_v48, %v4251_v4 }
 0x13a   : > { %v1602_v52 = vmul.f32 %v6970_v49, %v1411_v60  ;;  %v2211_v36 = vmul.f32 %v6970_v49, %v2016_v3  ;;  %v6972_v60 = vld [vmem:[#allocation43_spill] sm:$0xff] }
 0x13b   : > { %v1020_v54 = vmul.f32 %v5569_v2, %v1014_v8  ;;  %v1594_v2 = vmul.f32 %v6968_v31, %v1391_v19  ;;  %v1603_v19 = vmul.f32 %v6969_v48, %v4177_v32 }
 0x13c   : > { %v4180_v45 = vpop.f32.mrb[22].mxu0  ;;  %v4254_v13 = vpop.f32.mrb[22].mxu1 }
 0x13d   : > { %v1024_v7 = vadd.f32 %v1020_v54, %v978_v26  ;;  %v1421_v34 = vpop.f32.mrb[23].mxu0  ;;  %v2026_v40 = vpop.f32.mrb[23].mxu1  ;;  %v1605_v37 = vmul.f32 %v6285_v5, %v4180_v45  ;;  %v2214_v50 = vmul.f32 %v6285_v5, %v4254_v13 }
 0x13e   : > { %v1604_v33 = vmul.f32 %v5980_v58, %v1421_v34  ;;  %v2213_v35 = vmul.f32 %v5980_v58, %v2026_v40  ;;  %v6296_v34 = vld [vmem:[%s4945_s15 + $0x58] sm:$0xff] }
 0x13f   : > { %v1030_v63 = vadd.f32 %v6966_v59, %v1024_v7 }
 0x140   : > { %v4183_v62 = vpop.f32.mrb[24].mxu0  ;;  %v4257_v47 = vpop.f32.mrb[24].mxu1 }
 0x141   : > { %4517 = vtanh.f32 %v1030_v63  ;;  %v1431_v41 = vpop.f32.mrb[25].mxu0  ;;  %v2036_v43 = vpop.f32.mrb[25].mxu1  ;;  %v1611_v12 = vmul.f32 %v6971_v9, %v4183_v62  ;;  %v2220_v29 = vmul.f32 %v6971_v9, %v4257_v47 }
 0x142   : > { %v1610_v3 = vmul.f32 %v6972_v60, %v1431_v41  ;;  %v2219_v54 = vmul.f32 %v6972_v60, %v2036_v43 }
 0x144   : > { %v4186_v38 = vpop.f32.mrb[26].mxu0  ;;  %v4260_v42 = vpop.f32.mrb[26].mxu1 }
 0x145   : > { %v1441_v28 = vpop.f32.mrb[27].mxu0  ;;  %v6269_v61 = vpop.f32.mrb[27].mxu1  ;;  %v1613_v40 = vmul.f32 %v6296_v34, %v4186_v38  ;;  %v2222_v47 = vmul.f32 %v6296_v34, %v4260_v42 }
 0x146   : > { %v1612_v62 = vmul.f32 %v5987_v56, %v1441_v28 }
 0x148   : > { %v4189_v15 = vpop.f32.mrb[28].mxu0  ;;  %v4263_v30 = vpop.f32.mrb[28].mxu1 }
 0x149   : > { %v1599_v11 = vadd.f32 %v4189_v15, %v1595_v51  ;;  %v2208_v26 = vadd.f32 %v4263_v30, %v2204_v44  ;;  %v1451_v8 = vpop.f32.mrb[29].mxu0  ;;  %v2056_v32 = vpop.f32.mrb[29].mxu1 }
 0x14a   : > { %v1598_v7 = vadd.f32 %v1594_v2, %v1451_v8  ;;  %v2207_v45 = vadd.f32 %v2203_v39, %v2056_v32 }
 0x14b   : > { %v4518_v4 = vpop.eup %4517  ;;  %v1607_v59 = vadd.f32 %v1603_v19, %v1599_v11  ;;  %v2216_v63 = vadd.f32 %v2212_v22, %v2208_v26 }
 0x14c   : > { %v1038_v13 = vadd.f32 1.0, %v4518_v4  ;;  %v1606_v51 = vadd.f32 %v1602_v52, %v1598_v7  ;;  %v2215_v44 = vadd.f32 %v2211_v36, %v2207_v45  ;;  %v4192_v15 = vpop.f32.mrb[30].mxu0  ;;  %v4266_v30 = vpop.f32.mrb[30].mxu1 }
 0x14d   : > { %v1615_v46 = vadd.f32 %v1611_v12, %v1607_v59  ;;  %v2224_v43 = vadd.f32 %v2220_v29, %v2216_v63  ;;  %v1601_v2 = vadd.f32 %v4192_v15, %v1597_v18  ;;  %v1461_v39 = vpop.f32.mrb[31].mxu0  ;;  %v2066_v8 = vpop.f32.mrb[31].mxu1  ;;  %v2210_v0 = vadd.f32 %v4266_v30, %v2206_v57 }
 0x14e   : > { %v1042_v41 = vmul.f32 2.0, %v1038_v13  ;;  %v1614_v32 = vadd.f32 %v1610_v3, %v1606_v51  ;;  %v2223_v4 = vadd.f32 %v2219_v54, %v2215_v44  ;;  %v1600_v38 = vadd.f32 %v1596_v16, %v1461_v39 }
 0x14f   : > { %v1619_v28 = vmul.f32 %v1615_v46, %v6962_v10  ;;  %v2228_v42 = vmul.f32 %v2224_v43, %v6068_v23  ;;  %v1609_v52 = vadd.f32 %v1605_v37, %v1601_v2  ;;  %v2218_v12 = vadd.f32 %v2214_v50, %v2210_v0 }
 0x150   : > { %v6301_v19 = vadd.f32 -0.5, %v1042_v41  ;;  %v1618_v22 = vmul.f32 %v1614_v32, %v6073_v21  ;;  %v2227_v36 = vmul.f32 %v2223_v4, %v6085_v53  ;;  %v1608_v29 = vadd.f32 %v1604_v33, %v1600_v38  ;;  %v4195_v18 = vpop.f32.mrb[32].mxu0  ;;  %v4269_v11 = vpop.f32.mrb[32].mxu1 }
 0x151   : > { %v6309_v16 = vadd.f32 %v2228_v42, %v1619_v28  ;;  %v1617_v3 = vadd.f32 %v1613_v40, %v1609_v52  ;;  %v1471_v54 = vpop.f32.mrb[33].mxu0  ;;  %v2076_v46 = vpop.f32.mrb[33].mxu1  ;;  %v2226_v37 = vadd.f32 %v2222_v47, %v2218_v12  ;;  %v2209_v13 = vadd.f32 %v6278_v55, %v2066_v8 }
 0x152   : > { %v1552_v26 = vand.u32 2147483647, %v6301_v19  ;;  %v3828_v57 = vadd.f32 -1.0, %v6301_v19  ;;  %v6311_v7 = vadd.f32 %v2227_v36, %v1618_v22  ;;  %v1616_v45 = vadd.f32 %v1612_v62, %v1608_v29 }
 0x153   : > { %v1621_v33 = vmul.f32 %v1617_v3, %v6183_v25  ;;  %v2221_v50 = vmul.f32 %v5987_v56, %v6269_v61  ;;  %v2230_v63 = vmul.f32 %v2226_v37, %v6201_v6  ;;  %v2217_v51 = vadd.f32 %v2213_v35, %v2209_v13 }
 0x154   : > { %6973 = vst [vmem:[#allocation64_spill] sm:$0xff] %v6311_v7  ;;  %v1556_v59 = vsub.f32 1.0, %v1552_v26  ;;  %v2161_v0 = vand.u32 2147483647, %v3828_v57  ;;  %v4198_v44 = vpop.f32.mrb[34].mxu0  ;;  %v4272_v40 = vpop.f32.mrb[34].mxu1  ;;  %v2236_v13 = vmul.f32 %v6967_v24, %v4269_v11 }
 0x155   : > { %v1481_v41 = vpop.f32.mrb[35].mxu0  ;;  %v2086_v47 = vpop.f32.mrb[35].mxu1  ;;  %v6320_v62 = vadd.f32 %v2230_v63, %v1621_v33  ;;  %v2225_v55 = vadd.f32 %v2221_v50, %v2217_v51  ;;  %v1629_v50 = vmul.f32 %v6272_v1, %v4198_v44  ;;  %v2238_v51 = vmul.f32 %v6272_v1, %v4272_v40 }
 0x156   : > { %v6318_v15 = vmax.f32 %v1556_v59, 0.0  ;;  %v2165_v30 = vsub.f32 1.0, %v2161_v0  ;;  %v2235_v59 = vmul.f32 %v6968_v31, %v2076_v46  ;;  %v1628_v63 = vmul.f32 %v1481_v41, %v5977_v20 }
 0x157   : > { %6974 = vst [vmem:[#allocation68_spill] sm:$0xff] %v6320_v62 }
 0x158   : > { %v1588_v43 = vmul.f32 %v6259_v27, %v6318_v15  ;;  %v6324_v2 = vmax.f32 %v2165_v30, 0.0  ;;  %v1620_v61 = vmul.f32 %v1616_v45, %v6318_v15  ;;  %v4201_v39 = vpop.f32.mrb[36].mxu0  ;;  %v4275_v8 = vpop.f32.mrb[36].mxu1  ;;  %v1626_v45 = vmul.f32 %v6968_v31, %v1471_v54 }
 0x159   : > { %v1491_v4 = vpop.f32.mrb[37].mxu0  ;;  %v2096_v38 = vpop.f32.mrb[37].mxu1  ;;  %v2237_v30 = vmul.f32 %v2086_v47, %v5977_v20  ;;  %v2244_v54 = vmul.f32 %v6969_v48, %v4275_v8 }
 0x15a   : > { %v2197_v35 = vmul.f32 %v6261_v17, %v6324_v2  ;;  %v2229_v32 = vmul.f32 %v2225_v55, %v6324_v2  ;;  %v1627_v17 = vmul.f32 %v6967_v24, %v4195_v18  ;;  %v1635_v55 = vmul.f32 %v6969_v48, %v4201_v39 }
 0x15b   : > { %v1634_v18 = vmul.f32 %v6970_v49, %v1491_v4  ;;  %v2243_v11 = vmul.f32 %v6970_v49, %v2096_v38 }
 0x15c   : > { %v6330_v28 = vadd.f32 %v2197_v35, %v1588_v43  ;;  %v6332_v42 = vadd.f32 %v2229_v32, %v1620_v61  ;;  %v4204_v52 = vpop.f32.mrb[38].mxu0  ;;  %v4278_v22 = vpop.f32.mrb[38].mxu1 }
 0x15d   : > { %v1501_v27 = vpop.f32.mrb[39].mxu0  ;;  %v2106_v36 = vpop.f32.mrb[39].mxu1  ;;  %v1637_v46 = vmul.f32 %v6285_v5, %v4204_v52  ;;  %v2246_v44 = vmul.f32 %v6285_v5, %v4278_v22 }
 0x15e   : > { %6975 = vst [vmem:[#allocation15_spill] sm:$0xff] %v6332_v42  ;;  %v1636_v43 = vmul.f32 %v5980_v58, %v1501_v27  ;;  %v2245_v41 = vmul.f32 %v5980_v58, %v2106_v36 }
 0x160   : > { %v4207_v12 = vpop.f32.mrb[40].mxu0  ;;  %v4281_v29 = vpop.f32.mrb[40].mxu1 }
 0x161   : > { %v1511_v26 = vpop.f32.mrb[41].mxu0  ;;  %v2116_v57 = vpop.f32.mrb[41].mxu1  ;;  %v1643_v20 = vmul.f32 %v6971_v9, %v4207_v12  ;;  %v2252_v47 = vmul.f32 %v6971_v9, %v4281_v29 }
 0x162   : > { %v1642_v4 = vmul.f32 %v6972_v60, %v1511_v26  ;;  %v2251_v38 = vmul.f32 %v6972_v60, %v2116_v57 }
 0x164   : > { %v4210_v3 = vpop.f32.mrb[42].mxu0  ;;  %v4284_v37 = vpop.f32.mrb[42].mxu1 }
 0x165   : > { %v1521_v0 = vpop.f32.mrb[43].mxu0  ;;  %v2126_v33 = vpop.f32.mrb[43].mxu1  ;;  %v1645_v22 = vmul.f32 %v6296_v34, %v4210_v3  ;;  %v2254_v58 = vmul.f32 %v6296_v34, %v4284_v37 }
 0x166   : > { %v1644_v12 = vmul.f32 %v5987_v56, %v1521_v0  ;;  %v2253_v29 = vmul.f32 %v5987_v56, %v2126_v33 }
 0x168   : > { %v4213_v61 = vpop.f32.mrb[44].mxu0  ;;  %v4287_v40 = vpop.f32.mrb[44].mxu1 }
 0x169   : > { %v1631_v39 = vadd.f32 %v4213_v61, %v1627_v17  ;;  %v2240_v35 = vadd.f32 %v4287_v40, %v2236_v13  ;;  %v1531_v32 = vpop.f32.mrb[45].mxu0  ;;  %v2136_v8 = vpop.f32.mrb[45].mxu1 }
 0x16a   : > { %v1630_v52 = vadd.f32 %v1626_v45, %v1531_v32  ;;  %v2239_v27 = vadd.f32 %v2235_v59, %v2136_v8 }
 0x16b   : > { %v1639_v36 = vadd.f32 %v1635_v55, %v1631_v39  ;;  %v2248_v42 = vadd.f32 %v2244_v54, %v2240_v35 }
 0x16c   : > { %v1638_v17 = vadd.f32 %v1634_v18, %v1630_v52  ;;  %v2247_v13 = vadd.f32 %v2243_v11, %v2239_v27  ;;  %v4216_v61 = vpop.f32.mrb[46].mxu0  ;;  %v4290_v40 = vpop.f32.mrb[46].mxu1  ;;  %v6977_v52 = vld [vmem:[#allocation38_spill] sm:$0xff] }
 0x16d   : > { %v1647_v62 = vadd.f32 %v1643_v20, %v1639_v36  ;;  %v2256_v26 = vadd.f32 %v2252_v47, %v2248_v42  ;;  %v1633_v7 = vadd.f32 %v4216_v61, %v1629_v50  ;;  %v2242_v57 = vadd.f32 %v4290_v40, %v2238_v51  ;;  %v1541_v45 = vpop.f32.mrb[47].mxu0  ;;  %v2146_v59 = vpop.f32.mrb[47].mxu1 }
 0x16e   : > { %v1646_v32 = vadd.f32 %v1642_v4, %v1638_v17  ;;  %v2255_v3 = vadd.f32 %v2251_v38, %v2247_v13  ;;  %v1632_v8 = vadd.f32 %v1628_v63, %v1541_v45  ;;  %v2241_v37 = vadd.f32 %v2237_v30, %v2146_v59 }
 0x16f   : > { %v1651_v55 = vmul.f32 %v1647_v62, %v6962_v10  ;;  %v2260_v0 = vmul.f32 %v2256_v26, %v6068_v23  ;;  %v1641_v54 = vadd.f32 %v1637_v46, %v1633_v7  ;;  %v2250_v56 = vadd.f32 %v2246_v44, %v2242_v57 }
 0x170   : > { %v1650_v33 = vmul.f32 %v1646_v32, %v6073_v21  ;;  %v2259_v18 = vmul.f32 %v2255_v3, %v6085_v53  ;;  %v1640_v11 = vadd.f32 %v1636_v43, %v1632_v8  ;;  %v2249_v42 = vadd.f32 %v2245_v41, %v2241_v37  ;;  %v6362_v50 = vpop.f32.mrb[48].mxu0  ;;  %v6364_v51 = vpop.f32.mrb[48].mxu1 }
 0x171   : > { %v6366_v20 = vadd.f32 %v2260_v0, %v1651_v55  ;;  %v1649_v63 = vadd.f32 %v1645_v22, %v1641_v54  ;;  %v2258_v30 = vadd.f32 %v2254_v58, %v2250_v56  ;;  %v2525_v47 = vpop.f32.mrb[49].mxu0  ;;  %v6368_v10 = vpop.f32.mrb[49].mxu1  ;;  %v3880_v27 = vadd.f32 -2.0, %v6977_v52  ;;  %v6978_v58 = vld [vmem:[#allocation39_spill] sm:$0xff] }
 0x172   : > { %v6370_v23 = vadd.f32 %v2259_v18, %v1650_v33  ;;  %v1648_v7 = vadd.f32 %v1644_v12, %v1640_v11  ;;  %v2257_v62 = vadd.f32 %v2253_v29, %v2249_v42  ;;  %v3933_v22 = vadd.f32 -3.0, %v6977_v52  ;;  %v6979_v12 = vld [vmem:[#allocation34_spill] sm:$0xff] }
 0x173   : > { %v1653_v21 = vmul.f32 %v1649_v63, %v6183_v25  ;;  %v2262_v53 = vmul.f32 %v2258_v30, %v6201_v6  ;;  %v3879_v25 = vadd.f32 -2.0, %v6978_v58  ;;  %v3932_v6 = vadd.f32 -3.0, %v6978_v58 }
 0x174   : > { %v1652_v46 = vmul.f32 %v1648_v7, %v6318_v15  ;;  %v2261_v43 = vmul.f32 %v2257_v62, %v6324_v2  ;;  %v4298_v44 = vpop.f32.mrb[50].mxu0  ;;  %v4372_v41 = vpop.f32.mrb[50].mxu1  ;;  %v3882_v2 = vadd.f32 -2.0, %v6979_v12  ;;  %v3935_v29 = vadd.f32 -3.0, %v6979_v12 }
 0x175   : > { %v6376_v39 = vadd.f32 %v2262_v53, %v1653_v21  ;;  %v2535_v35 = vpop.f32.mrb[51].mxu0  ;;  %v3144_v4 = vpop.f32.mrb[51].mxu1  ;;  %v3881_v61 = vadd.f32 -2.0, %v6301_v19  ;;  %v3934_v40 = vadd.f32 -3.0, %v6301_v19  ;;  %v2769_v26 = vand.u32 2147483647, %v3880_v27 }
 0x176   : > { %v6378_v38 = vadd.f32 %v2261_v43, %v1652_v46  ;;  %v3378_v57 = vand.u32 2147483647, %v3933_v22  ;;  %v2768_v45 = vand.u32 2147483647, %v3879_v25  ;;  %v3377_v59 = vand.u32 2147483647, %v3932_v6 }
 0x177   : > { %v2771_v8 = vand.u32 2147483647, %v3882_v2  ;;  %v3380_v37 = vand.u32 2147483647, %v3935_v29  ;;  %v2770_v54 = vand.u32 2147483647, %v3881_v61  ;;  %v2781_v2 = vmul.f32 %v6967_v24, %v6362_v50 }
 0x178   : > { %6976 = vst [vmem:[#allocation16_spill] sm:$0xff] %v6378_v38  ;;  %v4301_v36 = vpop.f32.mrb[52].mxu0  ;;  %v4375_v15 = vpop.f32.mrb[52].mxu1  ;;  %v3379_v56 = vand.u32 2147483647, %v3934_v40  ;;  %v2773_v33 = vsub.f32 1.0, %v2769_v26  ;;  %v2780_v29 = vmul.f32 %v6968_v31, %v2525_v47 }
 0x179   : > { %v2545_v17 = vpop.f32.mrb[53].mxu0  ;;  %v3154_v13 = vpop.f32.mrb[53].mxu1  ;;  %v3382_v18 = vsub.f32 1.0, %v3378_v57  ;;  %v2772_v63 = vsub.f32 1.0, %v2768_v45  ;;  %v3381_v30 = vsub.f32 1.0, %v3377_v59  ;;  %v2775_v7 = vsub.f32 1.0, %v2771_v8 }
 0x17a   : > { %v3384_v19 = vsub.f32 1.0, %v3380_v37  ;;  %v2774_v53 = vsub.f32 1.0, %v2770_v54  ;;  %v3383_v46 = vsub.f32 1.0, %v3379_v56  ;;  %v6388_v43 = vmax.f32 %v2773_v33, 0.0  ;;  %v6414_v50 = vld [vmem:[%s4945_s15 + $0x10] sm:$0xff] }
 0x17b   : > { %v6390_v52 = vmax.f32 %v3382_v18, 0.0  ;;  %v6392_v58 = vmax.f32 %v2772_v63, 0.0  ;;  %v6394_v25 = vmax.f32 %v3381_v30, 0.0  ;;  %v6396_v6 = vmax.f32 %v2775_v7, 0.0 }
 0x17c   : > { %v4304_v32 = vpop.f32.mrb[54].mxu0  ;;  %v4378_v3 = vpop.f32.mrb[54].mxu1  ;;  %v6398_v12 = vmax.f32 %v3384_v19, 0.0  ;;  %v6403_v26 = vmax.f32 %v2774_v53, 0.0  ;;  %v6405_v57 = vmax.f32 %v3383_v46, 0.0  ;;  %v3390_v45 = vmul.f32 %v6967_v24, %v6364_v51 }
 0x17d   : > { %v2555_v55 = vpop.f32.mrb[55].mxu0  ;;  %v3164_v0 = vpop.f32.mrb[55].mxu1  ;;  %v3389_v59 = vmul.f32 %v6968_v31, %v6368_v10  ;;  %v2783_v8 = vmul.f32 %v6272_v1, %v4298_v44  ;;  %v3392_v37 = vmul.f32 %v6272_v1, %v4372_v41  ;;  %v2782_v47 = vmul.f32 %v6414_v50, %v2535_v35  ;;  %v6425_v41 = vld [vmem:[%s4945_s15 + $0x30] sm:$0xff] }
 0x17e   : > { %v3391_v54 = vmul.f32 %v6414_v50, %v3144_v4  ;;  %v2789_v56 = vmul.f32 %v6969_v48, %v4301_v36  ;;  %v3398_v33 = vmul.f32 %v6969_v48, %v4375_v15  ;;  %v2788_v18 = vmul.f32 %v6970_v49, %v2545_v17 }
 0x17f   : > { %v3397_v24 = vmul.f32 %v6970_v49, %v3154_v13  ;;  %v2791_v31 = vmul.f32 %v6285_v5, %v4304_v32  ;;  %v3400_v51 = vmul.f32 %v6285_v5, %v4378_v3  ;;  %v2790_v35 = vmul.f32 %v6425_v41, %v2555_v55 }
 0x180   : > { %v4307_v11 = vpop.f32.mrb[56].mxu0  ;;  %v4381_v42 = vpop.f32.mrb[56].mxu1  ;;  %v3399_v4 = vmul.f32 %v6425_v41, %v3164_v0 }
 0x181   : > { %v2565_v62 = vpop.f32.mrb[57].mxu0  ;;  %v3174_v21 = vpop.f32.mrb[57].mxu1  ;;  %v2797_v17 = vmul.f32 %v6971_v9, %v4307_v11  ;;  %v3406_v13 = vmul.f32 %v6971_v9, %v4381_v42 }
 0x182   : > { %v2796_v3 = vmul.f32 %v6972_v60, %v2565_v62  ;;  %v3405_v19 = vmul.f32 %v6972_v60, %v3174_v21 }
 0x184   : > { %v4310_v27 = vpop.f32.mrb[58].mxu0  ;;  %v4384_v22 = vpop.f32.mrb[58].mxu1 }
 0x185   : > { %v2575_v61 = vpop.f32.mrb[59].mxu0  ;;  %v3184_v40 = vpop.f32.mrb[59].mxu1  ;;  %v2799_v0 = vmul.f32 %v6296_v34, %v4310_v27  ;;  %v3408_v46 = vmul.f32 %v6296_v34, %v4384_v22 }
 0x188   : > { %v4313_v10 = vpop.f32.mrb[60].mxu0  ;;  %v4387_v44 = vpop.f32.mrb[60].mxu1 }
 0x189   : > { %v2785_v36 = vadd.f32 %v4313_v10, %v2781_v2  ;;  %v3394_v63 = vadd.f32 %v4387_v44, %v3390_v45  ;;  %v2585_v15 = vpop.f32.mrb[61].mxu0  ;;  %v3194_v30 = vpop.f32.mrb[61].mxu1 }
 0x18a   : > { %v2784_v32 = vadd.f32 %v2780_v29, %v2585_v15  ;;  %v3393_v7 = vadd.f32 %v3389_v59, %v3194_v30 }
 0x18b   : > { %v2793_v53 = vadd.f32 %v2789_v56, %v2785_v36  ;;  %v3402_v55 = vadd.f32 %v3398_v33, %v3394_v63  ;;  %v6441_v36 = vld [vmem:[%s4945_s15 + $0x50] sm:$0xff] }
 0x18c   : > { %v2792_v2 = vadd.f32 %v2788_v18, %v2784_v32  ;;  %v3401_v45 = vadd.f32 %v3397_v24, %v3393_v7  ;;  %v4316_v11 = vpop.f32.mrb[62].mxu0  ;;  %v4390_v10 = vpop.f32.mrb[62].mxu1  ;;  %v2798_v22 = vmul.f32 %v6441_v36, %v2575_v61 }
 0x18d   : > { %v2801_v42 = vadd.f32 %v2797_v17, %v2793_v53  ;;  %v3410_v29 = vadd.f32 %v3406_v13, %v3402_v55  ;;  %v2787_v59 = vadd.f32 %v4316_v11, %v2783_v8  ;;  %v3396_v44 = vadd.f32 %v4390_v10, %v3392_v37  ;;  %v2595_v62 = vpop.f32.mrb[63].mxu0  ;;  %v3204_v15 = vpop.f32.mrb[63].mxu1  ;;  %v6980_v53 = vld [vmem:[#allocation46_spill] sm:$0xff] }
 0x18e   : > { %v2800_v21 = vadd.f32 %v2796_v3, %v2792_v2  ;;  %v3409_v56 = vadd.f32 %v3405_v19, %v3401_v45  ;;  %v2786_v33 = vadd.f32 %v2782_v47, %v2595_v62  ;;  %v3395_v27 = vadd.f32 %v3391_v54, %v3204_v15 }
 0x18f   : > { %v2805_v18 = vmul.f32 %v2801_v42, %v6388_v43  ;;  %v2795_v24 = vadd.f32 %v2791_v31, %v2787_v59  ;;  %v3404_v63 = vadd.f32 %v3400_v51, %v3396_v44  ;;  %v3407_v8 = vmul.f32 %v6441_v36, %v3184_v40 }
 0x190   : > { %v2804_v37 = vmul.f32 %v2800_v21, %v6392_v58  ;;  %v2794_v30 = vadd.f32 %v2790_v35, %v2786_v33  ;;  %v3403_v17 = vadd.f32 %v3399_v4, %v3395_v27  ;;  %v4319_v13 = vpop.f32.mrb[64].mxu0  ;;  %v4393_v32 = vpop.f32.mrb[64].mxu1  ;;  %v3414_v47 = vmul.f32 %v3410_v29, %v6390_v52 }
 0x191   : > { %v2809_v7 = vadd.f32 %v2805_v18, %v6239_v14  ;;  %v2803_v54 = vadd.f32 %v2799_v0, %v2795_v24  ;;  %v3412_v3 = vadd.f32 %v3408_v46, %v3404_v63  ;;  %v2605_v61 = vpop.f32.mrb[65].mxu0  ;;  %v3214_v19 = vpop.f32.mrb[65].mxu1  ;;  %v3413_v51 = vmul.f32 %v3409_v56, %v6394_v25  ;;  %v6981_v0 = vld [vmem:[#allocation59_spill] sm:$0xff] }
 0x192   : > { %v2808_v31 = vadd.f32 %v2804_v37, %v6980_v53  ;;  %v2802_v40 = vadd.f32 %v2798_v22, %v2794_v30  ;;  %v3411_v55 = vadd.f32 %v3407_v8, %v3403_v17 }
 0x193   : > { %v3418_v2 = vadd.f32 %v3414_v47, %v2809_v7  ;;  %v2807_v35 = vmul.f32 %v2803_v54, %v6396_v6  ;;  %v3416_v10 = vmul.f32 %v3412_v3, %v6398_v12  ;;  %v6465_v47 = vld [vmem:[%s4945_s15 + $0x8] sm:$0xff]  ;;  %v6469_v3 = vld [vmem:[%s4945_s15] sm:$0xff] }
 0x194   : > { %v3417_v4 = vadd.f32 %v3413_v51, %v2808_v31  ;;  %v2806_v45 = vmul.f32 %v2802_v40, %v6403_v26  ;;  %v4322_v14 = vpop.f32.mrb[66].mxu0  ;;  %v4396_v11 = vpop.f32.mrb[66].mxu1  ;;  %v3415_v44 = vmul.f32 %v3411_v55, %v6405_v57  ;;  %v2813_v54 = vmul.f32 %v6465_v47, %v4319_v13 }
 0x195   : > { %3486 = vst [vmem:[%s6454_s9 + $0x8] sm:$0xff] %v3418_v2  ;;  %v2811_v46 = vadd.f32 %v2807_v35, %v6981_v0  ;;  %v2615_v42 = vpop.f32.mrb[67].mxu0  ;;  %v3224_v29 = vpop.f32.mrb[67].mxu1  ;;  %v2812_v53 = vmul.f32 %v6469_v3, %v2605_v61  ;;  %v3422_v40 = vmul.f32 %v6465_v47, %v4393_v32  ;;  %v3421_v55 = vmul.f32 %v6469_v3, %v3214_v19 }
 0x196   : > { %3485 = vst [vmem:[%s6454_s9] sm:$0xff] %v3417_v4  ;;  %v2810_v59 = vadd.f32 %v2806_v45, %v6330_v28  ;;  %v2815_v2 = vmul.f32 %v6272_v1, %v4322_v14  ;;  %v3424_v35 = vmul.f32 %v6272_v1, %v4396_v11  ;;  %v2814_v4 = vmul.f32 %v6414_v50, %v2615_v42 }
 0x197   : > { %v3420_v62 = vadd.f32 %v3416_v10, %v2811_v46  ;;  %v3423_v45 = vmul.f32 %v6414_v50, %v3224_v29 }
 0x198   : > { %v3419_v15 = vadd.f32 %v3415_v44, %v2810_v59  ;;  %v4325_v21 = vpop.f32.mrb[68].mxu0  ;;  %v4399_v56 = vpop.f32.mrb[68].mxu1 }
 0x199   : > { %3488 = vst [vmem:[%s6454_s9 + $0x18] sm:$0xff] %v3420_v62  ;;  %v2625_v33 = vpop.f32.mrb[69].mxu0  ;;  %v3234_v27 = vpop.f32.mrb[69].mxu1  ;;  %v2821_v13 = vmul.f32 %v6969_v48, %v4325_v21  ;;  %v3430_v0 = vmul.f32 %v6969_v48, %v4399_v56 }
 0x19a   : > { %3487 = vst [vmem:[%s6454_s9 + $0x10] sm:$0xff] %v3419_v15  ;;  %v2820_v61 = vmul.f32 %v6970_v49, %v2625_v33  ;;  %v3429_v46 = vmul.f32 %v6970_v49, %v3234_v27 }
 0x19c   : > { %v4328_v22 = vpop.f32.mrb[70].mxu0  ;;  %v4402_v18 = vpop.f32.mrb[70].mxu1 }
 0x19d   : > { %v2635_v24 = vpop.f32.mrb[71].mxu0  ;;  %v3244_v63 = vpop.f32.mrb[71].mxu1  ;;  %v2823_v32 = vmul.f32 %v6285_v5, %v4328_v22  ;;  %v3432_v19 = vmul.f32 %v6285_v5, %v4402_v18 }
 0x19e   : > { %v2822_v11 = vmul.f32 %v6425_v41, %v2635_v24  ;;  %v3431_v42 = vmul.f32 %v6425_v41, %v3244_v63 }
 0x1a0   : > { %v4331_v8 = vpop.f32.mrb[72].mxu0  ;;  %v4405_v37 = vpop.f32.mrb[72].mxu1 }
 0x1a1   : > { %v2645_v30 = vpop.f32.mrb[73].mxu0  ;;  %v3254_v28 = vpop.f32.mrb[73].mxu1  ;;  %v2829_v48 = vmul.f32 %v6971_v9, %v4331_v8  ;;  %v3438_v15 = vmul.f32 %v6971_v9, %v4405_v37 }
 0x1a2   : > { %v2828_v56 = vmul.f32 %v6972_v60, %v2645_v30  ;;  %v3437_v33 = vmul.f32 %v6972_v60, %v3254_v28 }
 0x1a4   : > { %v4334_v17 = vpop.f32.mrb[74].mxu0  ;;  %v4408_v7 = vpop.f32.mrb[74].mxu1 }
 0x1a5   : > { %v2655_v31 = vpop.f32.mrb[75].mxu0  ;;  %v3264_v51 = vpop.f32.mrb[75].mxu1  ;;  %v2831_v18 = vmul.f32 %v6296_v34, %v4334_v17  ;;  %v3440_v24 = vmul.f32 %v6296_v34, %v4408_v7 }
 0x1a6   : > { %v2830_v28 = vmul.f32 %v6441_v36, %v2655_v31 }
 0x1a8   : > { %v4337_v10 = vpop.f32.mrb[76].mxu0  ;;  %v4411_v14 = vpop.f32.mrb[76].mxu1 }
 0x1a9   : > { %v2817_v59 = vadd.f32 %v4337_v10, %v2813_v54  ;;  %v3426_v29 = vadd.f32 %v4411_v14, %v3422_v40  ;;  %v2665_v44 = vpop.f32.mrb[77].mxu0  ;;  %v3274_v62 = vpop.f32.mrb[77].mxu1 }
 0x1aa   : > { %v2816_v21 = vadd.f32 %v2812_v53, %v2665_v44  ;;  %v3425_v49 = vadd.f32 %v3421_v55, %v3274_v62 }
 0x1ab   : > { %v2825_v27 = vadd.f32 %v2821_v13, %v2817_v59  ;;  %v3434_v22 = vadd.f32 %v3430_v0, %v3426_v29  ;;  %v3439_v0 = vmul.f32 %v6441_v36, %v3264_v51 }
 0x1ac   : > { %v2824_v63 = vadd.f32 %v2820_v61, %v2816_v21  ;;  %v3433_v54 = vadd.f32 %v3429_v46, %v3425_v49  ;;  %v4340_v40 = vpop.f32.mrb[78].mxu0  ;;  %v4414_v10 = vpop.f32.mrb[78].mxu1 }
 0x1ad   : > { %v2833_v14 = vadd.f32 %v2829_v48, %v2825_v27  ;;  %v3442_v8 = vadd.f32 %v3438_v15, %v3434_v22  ;;  %v2819_v38 = vadd.f32 %v4340_v40, %v2815_v2  ;;  %v3428_v9 = vadd.f32 %v4414_v10, %v3424_v35  ;;  %v2675_v37 = vpop.f32.mrb[79].mxu0  ;;  %v3284_v53 = vpop.f32.mrb[79].mxu1  ;;  %v6982_v15 = vld [vmem:[#allocation64_spill] sm:$0xff] }
 0x1ae   : > { %v2832_v55 = vadd.f32 %v2828_v56, %v2824_v63  ;;  %v3441_v30 = vadd.f32 %v3437_v33, %v3433_v54  ;;  %v2818_v44 = vadd.f32 %v2814_v4, %v2675_v37  ;;  %v3427_v60 = vadd.f32 %v3423_v45, %v3284_v53  ;;  %v6983_v33 = vld [vmem:[#allocation68_spill] sm:$0xff]  ;;  %v6984_v63 = vld [vmem:[#allocation15_spill] sm:$0xff] }
 0x1af   : > { %v2837_v17 = vmul.f32 %v2833_v14, %v6388_v43  ;;  %v2827_v13 = vadd.f32 %v2823_v32, %v2819_v38  ;;  %v3436_v7 = vadd.f32 %v3432_v19, %v3428_v9  ;;  %v3446_v4 = vmul.f32 %v3442_v8, %v6390_v52 }
 0x1b0   : > { %v2836_v61 = vmul.f32 %v2832_v55, %v6392_v58  ;;  %v2826_v46 = vadd.f32 %v2822_v11, %v2818_v44  ;;  %v3435_v59 = vadd.f32 %v3431_v42, %v3427_v60  ;;  %v4343_v2 = vpop.f32.mrb[80].mxu0  ;;  %v4417_v35 = vpop.f32.mrb[80].mxu1  ;;  %v3445_v51 = vmul.f32 %v3441_v30, %v6394_v25 }
 0x1b1   : > { %v2841_v29 = vadd.f32 %v2837_v17, %v6309_v16  ;;  %v2835_v45 = vadd.f32 %v2831_v18, %v2827_v13  ;;  %v3444_v62 = vadd.f32 %v3440_v24, %v3436_v7  ;;  %v2685_v31 = vpop.f32.mrb[81].mxu0  ;;  %v3294_v48 = vpop.f32.mrb[81].mxu1 }
 0x1b2   : > { %v2840_v38 = vadd.f32 %v2836_v61, %v6982_v15  ;;  %v2834_v32 = vadd.f32 %v2830_v28, %v2826_v46  ;;  %v3443_v19 = vadd.f32 %v3439_v0, %v3435_v59  ;;  %v2845_v46 = vmul.f32 %v6465_v47, %v4343_v2  ;;  %v4534_v2 = vld [vmem:[%s4945_s15 + $0x20] sm:$0xff] }
 0x1b3   : > { %v3450_v11 = vadd.f32 %v3446_v4, %v2841_v29  ;;  %v2839_v42 = vmul.f32 %v2835_v45, %v6396_v6  ;;  %v3448_v22 = vmul.f32 %v3444_v62, %v6398_v12  ;;  %v2844_v59 = vmul.f32 %v6469_v3, %v2685_v31 }
 0x1b4   : > { %v3449_v21 = vadd.f32 %v3445_v51, %v2840_v38  ;;  %v2838_v16 = vmul.f32 %v2834_v32, %v6403_v26  ;;  %v4346_v49 = vpop.f32.mrb[82].mxu0  ;;  %v4420_v56 = vpop.f32.mrb[82].mxu1  ;;  %v3447_v40 = vmul.f32 %v3443_v19, %v6405_v57  ;;  %v3454_v29 = vmul.f32 %v6465_v47, %v4417_v35  ;;  %v4533_v19 = vld [vmem:[%s4945_s15 + $0x28] sm:$0xff] }
 0x1b5   : > { %3937 = vst [vmem:[%s6454_s9 + $0x28] sm:$0xff] %v3450_v11  ;;  %v2843_v27 = vadd.f32 %v2839_v42, %v6983_v33  ;;  %v2695_v18 = vpop.f32.mrb[83].mxu0  ;;  %v3304_v24 = vpop.f32.mrb[83].mxu1  ;;  %v3453_v4 = vmul.f32 %v6469_v3, %v3294_v48  ;;  %v2847_v15 = vmul.f32 %v6272_v1, %v4346_v49  ;;  %v3456_v51 = vmul.f32 %v6272_v1, %v4420_v56  ;;  %v4535_v1 = vld [vmem:[%s4945_s15 + $0x48] sm:$0xff] }
 0x1b6   : > { %3936 = vst [vmem:[%s6454_s9 + $0x20] sm:$0xff] %v3449_v21  ;;  %v2842_v54 = vadd.f32 %v2838_v16, %v6984_v63  ;;  %v2846_v38 = vmul.f32 %v6414_v50, %v2695_v18  ;;  %v3455_v32 = vmul.f32 %v6414_v50, %v3304_v24  ;;  %v4536_v24 = vld [vmem:[%s4945_s15 + $0x40] sm:$0xff]  ;;  %s4442_s15 = smul.u32 1536, %s4626_s18  ;;  %s6557_s18 = scalar_lea.sflag [#allocation3], %s252_s22 }
 0x1b7   : > { %v3452_v10 = vadd.f32 %v3448_v22, %v2843_v27 }
 0x1b8   : > { %v3451_v14 = vadd.f32 %v3447_v40, %v2842_v54  ;;  %v4349_v8 = vpop.f32.mrb[84].mxu0  ;;  %v4423_v9 = vpop.f32.mrb[84].mxu1  ;;  %s6551_s14 = scalar_lea.hbm %s6607_s4, %s4442_s15 }
 0x1b9   : > { %3939 = vst [vmem:[%s6454_s9 + $0x38] sm:$0xff] %v3452_v10  ;;  %v2705_v37 = vpop.f32.mrb[85].mxu0  ;;  %v3314_v53 = vpop.f32.mrb[85].mxu1  ;;  %v2853_v11 = vmul.f32 %v4533_v19, %v4349_v8  ;;  %v3462_v31 = vmul.f32 %v4533_v19, %v4423_v9 }
 0x1ba   : > { %3938 = vst [vmem:[%s6454_s9 + $0x30] sm:$0xff] %v3451_v14  ;;  %v2852_v42 = vmul.f32 %v4534_v2, %v2705_v37  ;;  %v3461_v47 = vmul.f32 %v4534_v2, %v3314_v53 }
 0x1bc   : > { %v4352_v55 = vpop.f32.mrb[86].mxu0  ;;  %v4426_v30 = vpop.f32.mrb[86].mxu1 }
 0x1bd   : > { %v2715_v44 = vpop.f32.mrb[87].mxu0  ;;  %v3324_v60 = vpop.f32.mrb[87].mxu1  ;;  %v2855_v3 = vmul.f32 %v6285_v5, %v4352_v55  ;;  %v3464_v48 = vmul.f32 %v6285_v5, %v4426_v30 }
 0x1be   : > { %v2854_v35 = vmul.f32 %v6425_v41, %v2715_v44  ;;  %v3463_v21 = vmul.f32 %v6425_v41, %v3324_v60 }
 0x1c0   : > { %v4355_v28 = vpop.f32.mrb[88].mxu0  ;;  %v4429_v17 = vpop.f32.mrb[88].mxu1 }
 0x1c1   : > { %v2725_v13 = vpop.f32.mrb[89].mxu0  ;;  %v3334_v7 = vpop.f32.mrb[89].mxu1  ;;  %v2861_v56 = vmul.f32 %v4535_v1, %v4355_v28  ;;  %v3470_v50 = vmul.f32 %v4535_v1, %v4429_v17 }
 0x1c2   : > { %v2860_v63 = vmul.f32 %v4536_v24, %v2725_v13  ;;  %v3469_v54 = vmul.f32 %v4536_v24, %v3334_v7 }
 0x1c4   : > { %v4358_v0 = vpop.f32.mrb[90].mxu0  ;;  %v4432_v61 = vpop.f32.mrb[90].mxu1 }
 0x1c5   : > { %v2735_v45 = vpop.f32.mrb[91].mxu0  ;;  %v3344_v62 = vpop.f32.mrb[91].mxu1  ;;  %v2863_v14 = vmul.f32 %v6296_v34, %v4358_v0  ;;  %v3472_v5 = vmul.f32 %v6296_v34, %v4432_v61 }
 0x1c6   : > { %v2862_v9 = vmul.f32 %v6441_v36, %v2735_v45  ;;  %v3471_v37 = vmul.f32 %v6441_v36, %v3344_v62 }
 0x1c8   : > { %v4361_v16 = vpop.f32.mrb[92].mxu0  ;;  %v4435_v49 = vpop.f32.mrb[92].mxu1 }
 0x1c9   : > { %v2849_v33 = vadd.f32 %v4361_v16, %v2845_v46  ;;  %v3458_v27 = vadd.f32 %v4435_v49, %v3454_v29  ;;  %v2745_v22 = vpop.f32.mrb[93].mxu0  ;;  %v3354_v18 = vpop.f32.mrb[93].mxu1 }
 0x1ca   : > { %v2848_v40 = vadd.f32 %v2844_v59, %v2745_v22  ;;  %v3457_v10 = vadd.f32 %v3453_v4, %v3354_v18 }
 0x1cb   : > { %v2857_v8 = vadd.f32 %v2853_v11, %v2849_v33  ;;  %v3466_v41 = vadd.f32 %v3462_v31, %v3458_v27 }
 0x1cc   : > { %v2856_v53 = vadd.f32 %v2852_v42, %v2848_v40  ;;  %v3465_v55 = vadd.f32 %v3461_v47, %v3457_v10  ;;  %v4364_v30 = vpop.f32.mrb[94].mxu0  ;;  %v4438_v44 = vpop.f32.mrb[94].mxu1 }
 0x1cd   : > { %v2865_v60 = vadd.f32 %v2861_v56, %v2857_v8  ;;  %v3474_v28 = vadd.f32 %v3470_v50, %v3466_v41  ;;  %v2851_v17 = vadd.f32 %v4364_v30, %v2847_v15  ;;  %v3460_v13 = vadd.f32 %v4438_v44, %v3456_v51  ;;  %v2755_v7 = vpop.f32.mrb[95].mxu0  ;;  %v3364_v46 = vpop.f32.mrb[95].mxu1 }
 0x1ce   : > { %v2864_v59 = vadd.f32 %v2860_v63, %v2856_v53  ;;  %v3473_v0 = vadd.f32 %v3469_v54, %v3465_v55  ;;  %v2850_v29 = vadd.f32 %v2846_v38, %v2755_v7  ;;  %v3459_v34 = vadd.f32 %v3455_v32, %v3364_v46 }
 0x1cf   : > { %v2869_v61 = vmul.f32 %v2865_v60, %v6388_v43  ;;  %v3478_v4 = vmul.f32 %v3474_v28, %v6390_v52  ;;  %v2859_v45 = vadd.f32 %v2855_v3, %v2851_v17  ;;  %v3468_v36 = vadd.f32 %v3464_v48, %v3460_v13  ;;  %v6985_v3 = vld [vmem:[#allocation16_spill] sm:$0xff] }
 0x1d0   : > { %v2868_v62 = vmul.f32 %v2864_v59, %v6392_v58  ;;  %v3477_v19 = vmul.f32 %v3473_v0, %v6394_v25  ;;  %v2858_v15 = vadd.f32 %v2854_v35, %v2850_v29  ;;  %v3467_v51 = vadd.f32 %v3463_v21, %v3459_v34 }
 0x1d1   : > { %v2873_v11 = vadd.f32 %v2869_v61, %v6366_v20  ;;  %v2867_v38 = vadd.f32 %v2863_v14, %v2859_v45  ;;  %v3476_v32 = vadd.f32 %v3472_v5, %v3468_v36 }
 0x1d2   : > { %v2872_v43 = vadd.f32 %v2868_v62, %v6370_v23  ;;  %v2866_v2 = vadd.f32 %v2862_v9, %v2858_v15  ;;  %v3475_v52 = vadd.f32 %v3471_v37, %v3467_v51 }
 0x1d3   : > { %v3482_v42 = vadd.f32 %v3478_v4, %v2873_v11  ;;  %v2871_v58 = vmul.f32 %v2867_v38, %v6396_v6  ;;  %v3480_v25 = vmul.f32 %v3476_v32, %v6398_v12 }
 0x1d4   : > { %v3481_v31 = vadd.f32 %v3477_v19, %v2872_v43  ;;  %v2870_v47 = vmul.f32 %v2866_v2, %v6403_v26  ;;  %v3479_v20 = vmul.f32 %v3475_v52, %v6405_v57 }
 0x1d5   : > { %3941 = vst [vmem:[%s6454_s9 + $0x48] sm:$0xff] %v3482_v42  ;;  %v2875_v23 = vadd.f32 %v2871_v58, %v6376_v39 }
 0x1d6   : > { %3940 = vst [vmem:[%s6454_s9 + $0x40] sm:$0xff] %v3481_v31  ;;  %v2874_v35 = vadd.f32 %v2870_v47, %v6985_v3 }
 0x1d7   : > { %v3484_v48 = vadd.f32 %v3480_v25, %v2875_v23 }
 0x1d8   : > { %v3483_v6 = vadd.f32 %v3479_v20, %v2874_v35 }
 0x1d9   : > { %3943 = vst [vmem:[%s6454_s9 + $0x58] sm:$0xff] %v3484_v48 }
 0x1da   : > { %3942 = vst [vmem:[%s6454_s9 + $0x50] sm:$0xff] %v3483_v6 }
 0x1db   : > { %4565 = shalt.err (!%p4562_p3)
}
 0x1dc   : > { %s4566_s23 = scalar_lea.hbm %s6551_s14, 1536  ;;  %s4570_s1 = scalar_lea.hbm %s6607_s4, 3072 }
 0x1dd   : > { %p4567_p5 = scmp.ne.s32.totalorder %s6551_s14, %s4566_s23  ;;  %p4571_p9 = scmp.lt.u32.totalorder %s6551_s14, %s6607_s4 }
 0x1de   : > { %p4572_p12 = scmp.lt.u32.totalorder %s4570_s1, %s4566_s23  ;;  %p4574_p11 = scmp.lt.u32.totalorder %s4566_s23, %s6551_s14 }
 0x1df   : > { %p4568_p6 = pnand %p4567_p5, %p4705_p4 }
 0x1e0   : > { %p4573_p10 = por %p4572_p12, %p4571_p9 }
 0x1e1   : > { %p4569_p7 = pneg %p4568_p6 }
 0x1e2   : > { %p4575_p13 = por %p4574_p11, %p4573_p10 }
 0x1e4   : > { %p4576_p0 = pnand %p4575_p13, %p4569_p7 }
 0x1e6   : > { %4579 = shalt.err (!%p4576_p0)
}
 0x1e7   : > { %s4638_s28 = smov 128   ;;  %s4639_s26 = smov 8  }
 0x1e8   : > { %4447 = dma.vmem_to_hbm [thread:$0]  (%p4705_p4), %s6546_s10, 1536, %s6551_s14, %s6557_s18, %s4638_s28, %s4638_s28, %s4639_s26  }
 0x1e9 PF: > { %s6986_s29 = sld [smem:[#allocation8_spill]]  ;;  %p4459_p1 = scmp.ge.s32.totalorder %s4634_s20, 2 }
 0x1eb   : > { %p4454_p2 = pnand %p4459_p1, %p4712_p8 }
 0x1ef   : > { %s3530_s5 = sand.u32 1, %s6986_s29  }
 0x1f0   : > { %s3531_s6 = scalar_lea.sflag [#allocation3], %s3530_s5 }
 0x1f1   : > { %4609 = dma.done.wait (!%p4454_p2), %s3531_s6, 1536  }
 0x1f2   : > { %4611 = vsyncadd (!%p4454_p2), %s3531_s6, 4294965760  ;;  %s18_s20 = sadd.s32 1, %s4634_s20   ;;  %s6988_s7 = sld [smem:[#allocation9_spill]] }
 0x1f3   : > { %p15_p3 = scmp.ge.s32.totalorder %s18_s20, 4   ;;  %s6989_s17 = sld [smem:[#allocation13_spill]] }
 0x1f4   : > { %s6990_s18 = sld [smem:[#allocation10_spill]]  ;;  %s6991_s19 = sld [smem:[#allocation11_spill]] }
 0x1f5   : > { %s6992_s15 = smov %s4618_s16  ;;  %17 = sbr.rel (!%p15_p3) target bundleno = 9 (0x9), region = 83 }
 0x1f8   : > { %s6993_s16 = smov %s6988_s7 }
 0x1fc   :  { %3536 = vsyncpa [#allocation3], 1 }
 0x1fd   :  { %3538 = vsyncpa [#allocation3 + $0x1], 1 }
 0x1fe   :  { %3539 = vsyncpa [#allocation4], 1 }
 0x1ff   :  { %3541 = vsyncpa [#allocation4 + $0x1], 1 }

</bundles_post_ra>
